<compile_context>
chip_gen: v7x
topology: tpu7x:2x2x1
jax: 0.10.0
libtpu: 0.0.40
codegen_flags: <defaults>
</compile_context>

<pallas_src>
import jax
import jax.numpy as jnp
from jax.experimental import pallas as pl
from jax.experimental.pallas import tpu as pltpu

_F32 = jnp.float32
_BF16 = jnp.bfloat16


# --------------------------------------------------------------------------
# Shared in-kernel helpers.
# --------------------------------------------------------------------------
def _conv_tile_max(x, w1, t1, w2, t2, w3):
    """x: (Bb, Nt, 3) f32 -> per-sample max over this tile: (Bb, 1024) f32.

    BN scales are pre-folded into w1/w2/w3 (wrapper); t1/t2 are pre-relu
    shifts; the bn3 shift is deferred past the max (added in the FC head).
    """
    bb, n_t, _ = x.shape
    m = bb * n_t

    # conv1 (1x1, K=3) on the VPU: three broadcast FMAs instead of a
    # degenerate K=3 MXU matmul.
    h1 = (x[:, :, 0:1] * w1[0:1, :]
          + x[:, :, 1:2] * w1[1:2, :]
          + x[:, :, 2:3] * w1[2:3, :])                        # (Bb, Nt, 64)
    h1 = jnp.maximum(h1.reshape(m, 64) + t1, 0.0)             # bn1 shift + relu

    # conv2 / conv3 on the MXU: bf16 operands, f32 accumulation.
    h2 = jnp.dot(h1.astype(_BF16), w2, preferred_element_type=_F32)   # (M,128)
    h2 = jnp.maximum(h2 + t2, 0.0)                            # bn2 shift + relu
    h3 = jnp.dot(h2.astype(_BF16), w3, preferred_element_type=_F32)   # (M,1024)

    return jnp.max(h3.reshape(bb, n_t, 1024), axis=1)         # (Bb, 1024)


def _fc_head(g, t3, wf1, bf1, wf2, bf2):
    """g: (Bb, 1024) pooled max (pre bn3-shift) -> (Bb, 128) padded logits."""
    g = g + t3                                                # deferred bn3 shift
    f1 = jnp.dot(g.astype(_BF16), wf1, preferred_element_type=_F32)   # (Bb,256)
    f1 = jnp.maximum(f1 + bf1, 0.0)                           # fc1 + relu
    out = jnp.dot(f1.astype(_BF16), wf2, preferred_element_type=_F32) # (Bb,128)
    return out + bf2


# --------------------------------------------------------------------------
# Kernel A (small B): conv stack + running point-max + fused FC head.
# --------------------------------------------------------------------------
def _fused_encoder_kernel(
    x_ref,                       # (Bb, Nt, 3)   f32
    w1_ref, t1_ref,              # (3, 64) f32,  (1, 64) f32
    w2_ref, t2_ref,              # (64, 128) bf16, (1, 128) f32
    w3_ref,                      # (128, 1024) bf16 (bn3 scale folded in)
    t3_ref,                      # (1, 1024) f32 (bn3 shift, applied post-max)
    wf1_ref, bf1_ref,            # (1024, 256) bf16, (1, 256) f32
    wf2_ref, bf2_ref,            # (256, 128) bf16 (padded), (1, 128) f32
    out_ref,                     # (Bb, 1, 128) f32 -- resident across N tiles
    pooled_acc,                  # VMEM scratch (Bb, 1024) f32
):
    nt = pl.program_id(1)
    tile_max = _conv_tile_max(x_ref[...], w1_ref[...], t1_ref[...],
                              w2_ref[...], t2_ref[...], w3_ref[...])

    @pl.when(nt == 0)
    def _():
        pooled_acc[...] = tile_max

    @pl.when(nt > 0)
    def _():
        pooled_acc[...] = jnp.maximum(pooled_acc[...], tile_max)

    @pl.when(nt == pl.num_programs(1) - 1)
    def _():
        logits = _fc_head(pooled_acc[...], t3_ref[...], wf1_ref[...],
                          bf1_ref[...], wf2_ref[...], bf2_ref[...])
        bb = out_ref.shape[0]
        out_ref[...] = logits.reshape(bb, 1, 128)


# --------------------------------------------------------------------------
# Kernels B (large B): conv+pool, then a separate batched FC head.
# --------------------------------------------------------------------------
def _conv_pool_kernel(x_ref, w1_ref, t1_ref, w2_ref, t2_ref, w3_ref,
                      pooled_ref):
    nt = pl.program_id(1)
    tile_max = _conv_tile_max(x_ref[...], w1_ref[...], t1_ref[...],
                              w2_ref[...], t2_ref[...], w3_ref[...])
    tile_max = tile_max[:, None, :]                            # (Bb, 1, 1024)

    @pl.when(nt == 0)
    def _():
        pooled_ref[...] = tile_max

    @pl.when(nt > 0)
    def _():
        pooled_ref[...] = jnp.maximum(pooled_ref[...], tile_max)


def _fc_head_kernel(g_ref, t3_ref, wf1_ref, bf1_ref, wf2_ref, bf2_ref,
                    out_ref):
    out_ref[...] = _fc_head(g_ref[...], t3_ref[...], wf1_ref[...],
                            bf1_ref[...], wf2_ref[...], bf2_ref[...])


# --------------------------------------------------------------------------
# Tiling heuristics.
# --------------------------------------------------------------------------
def _round_up(v, m):
    return ((v + m - 1) // m) * m


def _device_kind():
    try:
        return jax.devices()[0].device_kind.lower()
    except Exception:
        return ""


def _pick_tiles(B, N, *, is_v7x, block_b=None, block_n=None,
                target_rows=2048, cap_n=2048):
    # N tile: pad-to-tile scheme -- no unbounded whole-N fallback.  Pick the
    # smallest number of tiles such that block_n <= cap_n, rounded to a
    # multiple of 8; the wrapper pads the point axis with duplicated points.
    if block_n is None:
        n_tiles = -(-N // cap_n)
        block_n = _round_up(-(-N // n_tiles), 8)
    assert block_n % 8 == 0, "block_n must be a multiple of 8"
    n_pad = _round_up(N, block_n)

    # Batch tile: aim for ~target_rows MXU rows per grid step.
    if block_b is None:
        block_b = max(1, min(B, target_rows // block_n))
        if is_v7x and B >= 2:
            # Only on v7x (2 TensorCores): keep >=2 batch blocks so the
            # 'parallel' batch axis can be split across cores.
            # TODO(synk): for B==1 on v7x one TensorCore idles; would need a
            # per-core partial-max output keyed on an extra parallel N axis.
            block_b = min(block_b, max(1, B // 2))
        while B % block_b != 0:
            block_b -= 1
    assert B % block_b == 0, "block_b must divide B"
    return block_b, block_n, n_pad


# --------------------------------------------------------------------------
# Wrapper.
# --------------------------------------------------------------------------
def point_encoder_forward(x_ncw, params, *, block_b=None, block_n=None):
    """x_ncw: (B, 3, N) float32, PyTorch NCW layout. Returns (B, 100) f32."""
    B, c_in, N = x_ncw.shape
    assert c_in == 3
    eps = 1e-5

    # Fold BatchNorm (eval mode) + conv bias: scale goes INTO the weight
    # (before the bf16 cast), the shift stays additive.
    def fold(conv_w_oi, conv_b, gamma, beta, mean, var):
        scale = gamma / jnp.sqrt(var + eps)                    # (C_out,)
        w = (conv_w_oi.T * scale[None, :]).astype(_F32)        # (C_in, C_out)
        shift = ((conv_b - mean) * scale + beta)[None, :].astype(_F32)
        return w, shift

    w1, t1 = fold(params["conv1_w"], params["conv1_b"],
                  params["bn1_g"], params["bn1_b"],
                  params["bn1_m"], params["bn1_v"])
    w2, t2 = fold(params["conv2_w"], params["conv2_b"],
                  params["bn2_g"], params["bn2_b"],
                  params["bn2_m"], params["bn2_v"])
    w3, t3 = fold(params["conv3_w"], params["conv3_b"],
                  params["bn3_g"], params["bn3_b"],
                  params["bn3_m"], params["bn3_v"])
    w2 = w2.astype(_BF16)            # MXU operands in bf16, f32 accumulation
    w3 = w3.astype(_BF16)            # bn3 scale already folded in (can be <0)

    # FC head weights; 100-wide output padded to 128 lanes for dense stores.
    wf1 = params["fc1_w"].T.astype(_BF16)                      # (1024, 256)
    bf1 = params["fc1_b"][None, :].astype(_F32)                # (1, 256)
    wf2 = jnp.zeros((256, 128), _BF16).at[:, :100].set(
        params["fc2_w"].T.astype(_BF16))                       # (256, 128)
    bf2 = jnp.zeros((1, 128), _F32).at[:, :100].set(
        params["fc2_b"][None, :].astype(_F32))                 # (1, 128)

    kind = _device_kind()
    is_v7x = "v7" in kind
    # 64 MiB scoped VMEM on v5e/v6e (128 MiB physical, but v5e defaults to
    # 16 MiB scoped); stay at 48 MiB on v7x / unknown (64 MiB physical).
    vmem_limit = (64 << 20) if (kind and not is_v7x) else (48 << 20)

    block_b, block_n, n_pad = _pick_tiles(B, N, is_v7x=is_v7x,
                                          block_b=block_b, block_n=block_n)

    # Channels-last layout so the flattened point axis is the MXU M dim.
    # TODO(synk): keeping NCW (channel-major conv1 + lane-dim max) would avoid
    # this extra XLA pass over the input; low priority while MXU-bound.
    x = jnp.transpose(x_ncw, (0, 2, 1)).astype(_F32)           # (B, N, 3)
    if n_pad != N:
        # Pad the point axis by DUPLICATING a real point (zero padding would
        # corrupt the global max).
        pad = jnp.broadcast_to(x[:, :1, :], (B, n_pad - N, 3))
        x = jnp.concatenate([x, pad], axis=1)                  # (B, n_pad, 3)

    def _const(arr):
        # Whole-array block, resident across the grid (constant index map).
        return pl.BlockSpec(arr.shape, lambda b, n, _nd=arr.ndim: (0,) * _nd)

    grid = (B // block_b, n_pad // block_n)
    x_spec = pl.BlockSpec((block_b, block_n, 3), lambda b, n: (b, n, 0))
    conv_cparams = pltpu.CompilerParams(
        dimension_semantics=("parallel", "arbitrary"),
        vmem_limit_bytes=vmem_limit)

    if B <= 256:
        # Fused path: conv stack + point-max + FC head in one pallas_call.
        consts = (w1, t1, w2, t2, w3, t3, wf1, bf1, wf2, bf2)
        out = pl.pallas_call(
            _fused_encoder_kernel,
            out_shape=jax.ShapeDtypeStruct((B, 1, 128), _F32),
            grid_spec=pltpu.PrefetchScalarGridSpec(
                num_scalar_prefetch=0,
                grid=grid,
                in_specs=[x_spec] + [_const(c) for c in consts],
                out_specs=pl.BlockSpec((block_b, 1, 128),
                                       lambda b, n: (b, 0, 0)),
                scratch_shapes=[pltpu.VMEM((block_b, 1024), _F32)],
            ),
            compiler_params=conv_cparams,
        )(x, *consts)
        return out.reshape(B, 128)[:, :100]

    # Large-B path: conv+pool kernel, then a batched FC kernel (bigger FC M).
    conv_consts = (w1, t1, w2, t2, w3)
    pooled = pl.pallas_call(
        _conv_pool_kernel,
        out_shape=jax.ShapeDtypeStruct((B, 1, 1024), _F32),
        grid_spec=pltpu.PrefetchScalarGridSpec(
            num_scalar_prefetch=0,
            grid=grid,
            in_specs=[x_spec] + [_const(c) for c in conv_consts],
            out_specs=pl.BlockSpec((block_b, 1, 1024),
                                   lambda b, n: (b, 0, 0)),
        ),
        compiler_params=conv_cparams,
    )(x, *conv_consts)
    pooled = pooled.reshape(B, 1024)

    # FC head over the whole pooled batch; pad B to a multiple of the FC tile
    # (padded rows produce garbage that is sliced off below).
    fb = 256
    b_pad = _round_up(B, fb)
    if b_pad != B:
        pooled = jnp.concatenate(
            [pooled, jnp.zeros((b_pad - B, 1024), _F32)], axis=0)

    fc_consts = (t3, wf1, bf1, wf2, bf2)

    def _const_fc(arr):
        return pl.BlockSpec(arr.shape, lambda i, _nd=arr.ndim: (0,) * _nd)

    out = pl.pallas_call(
        _fc_head_kernel,
        out_shape=jax.ShapeDtypeStruct((b_pad, 128), _F32),
        grid_spec=pltpu.PrefetchScalarGridSpec(
            num_scalar_prefetch=0,
            grid=(b_pad // fb,),
            in_specs=[pl.BlockSpec((fb, 1024), lambda i: (i, 0))]
                     + [_const_fc(c) for c in fc_consts],
            out_specs=pl.BlockSpec((fb, 128), lambda i: (i, 0)),
        ),
        compiler_params=pltpu.CompilerParams(
            dimension_semantics=("parallel",),
            vmem_limit_bytes=vmem_limit),
    )(pooled, *fc_consts)
    return out[:B, :100]


# --------------------------------------------------------------------------
# Synthetic parameters + pure-JAX reference (PyTorch semantics, BN eval mode).
# --------------------------------------------------------------------------
def make_params(key):
    ks = jax.random.split(key, 16)
    f32 = jnp.float32

    def u(k, shape, scale=0.1):
        return jax.random.uniform(k, shape, f32, -scale, scale)

    return {
        "conv1_w": u(ks[0], (64, 3)),   "conv1_b": u(ks[1], (64,)),
        "conv2_w": u(ks[2], (128, 64)), "conv2_b": u(ks[3], (128,)),
        "conv3_w": u(ks[4], (1024, 128)), "conv3_b": u(ks[5], (1024,)),
        "fc1_w": u(ks[6], (256, 1024)), "fc1_b": u(ks[7], (256,)),
        "fc2_w": u(ks[8], (100, 256)),  "fc2_b": u(ks[9], (100,)),
        "bn1_g": 1.0 + u(ks[10], (64,)), "bn1_b": u(ks[11], (64,)),
        "bn1_m": u(ks[12], (64,)), "bn1_v": 1.0 + jnp.abs(u(ks[13], (64,))),
        "bn2_g": 1.0 + u(ks[14], (128,)), "bn2_b": u(ks[15], (128,)),
        "bn2_m": jnp.zeros((128,), f32), "bn2_v": jnp.ones((128,), f32),
        "bn3_g": jnp.ones((1024,), f32), "bn3_b": jnp.zeros((1024,), f32),
        "bn3_m": jnp.zeros((1024,), f32), "bn3_v": jnp.ones((1024,), f32),
    }


def reference_forward(x_ncw, params):
    eps = 1e-5

    def bn(x_bcn, g, b, m, v):
        return (x_bcn - m[None, :, None]) / jnp.sqrt(v[None, :, None] + eps) \
               * g[None, :, None] + b[None, :, None]

    def conv1x1(x_bcn, w_oi, b_o):
        return jnp.einsum("oc,bcn->bon", w_oi, x_bcn) + b_o[None, :, None]

    x = conv1x1(x_ncw, params["conv1_w"], params["conv1_b"])
    x = jax.nn.relu(bn(x, params["bn1_g"], params["bn1_b"],
                       params["bn1_m"], params["bn1_v"]))
    x = conv1x1(x, params["conv2_w"], params["conv2_b"])
    x = jax.nn.relu(bn(x, params["bn2_g"], params["bn2_b"],
                       params["bn2_m"], params["bn2_v"]))
    x = conv1x1(x, params["conv3_w"], params["conv3_b"])
    x = bn(x, params["bn3_g"], params["bn3_b"],
           params["bn3_m"], params["bn3_v"])
    x = jnp.max(x, axis=2)
    x = jax.nn.relu(x @ params["fc1_w"].T + params["fc1_b"])
    x = x @ params["fc2_w"].T + params["fc2_b"]
    return x


if __name__ == "__main__":
    key = jax.random.PRNGKey(0)
    kp, kx = jax.random.split(key)

    B, N = 2, 256  # small synthetic shapes (num_points = 256)
    params = make_params(kp)
    x = jax.random.normal(kx, (B, 3, N), jnp.float32)  # PyTorch NCW layout

    ref = reference_forward(x, params)

    # Default tiling (single N tile, fused FC head).
    out = jax.block_until_ready(point_encoder_forward(x, params))
    assert out.shape == (B, 100) and out.dtype == jnp.float32
    err = jnp.max(jnp.abs(out - ref))
    # bf16 matmul operands (f32 accumulation) -> relaxed tolerance vs f32 ref.
    assert jnp.allclose(out, ref, atol=5e-2, rtol=5e-2), f"max err {err}"

    # Exercise the N-tiled running-max accumulator path.
    out_tiled = jax.block_until_ready(
        point_encoder_forward(x, params, block_b=1, block_n=64))
    err_t = jnp.max(jnp.abs(out_tiled - ref))
    assert jnp.allclose(out_tiled, ref, atol=5e-2, rtol=5e-2), f"max err {err_t}"

    # Exercise the point-axis padding path (N not a multiple of 8).
    N2 = 100
    x2 = jax.random.normal(jax.random.PRNGKey(1), (B, 3, N2), jnp.float32)
    ref2 = reference_forward(x2, params)
    out2 = jax.block_until_ready(point_encoder_forward(x2, params))
    err2 = jnp.max(jnp.abs(out2 - ref2))
    assert jnp.allclose(out2, ref2, atol=5e-2, rtol=5e-2), f"max err {err2}"

    print("KERNEL_OK")
</pallas_src>

<mosaic_0001>
module attributes {stable_mosaic.version = 11 : i64} {
  func.func @_fused_encoder_kernel(%arg0: i32, %arg1: i32, %arg2: memref<2x256x3xf32, #tpu.memory_space<vmem>>, %arg3: memref<3x64xf32, #tpu.memory_space<vmem>>, %arg4: memref<1x64xf32, #tpu.memory_space<vmem>>, %arg5: memref<64x128xbf16, #tpu.memory_space<vmem>>, %arg6: memref<1x128xf32, #tpu.memory_space<vmem>>, %arg7: memref<128x1024xbf16, #tpu.memory_space<vmem>>, %arg8: memref<1x1024xf32, #tpu.memory_space<vmem>>, %arg9: memref<1024x256xbf16, #tpu.memory_space<vmem>>, %arg10: memref<1x256xf32, #tpu.memory_space<vmem>>, %arg11: memref<256x128xbf16, #tpu.memory_space<vmem>>, %arg12: memref<1x128xf32, #tpu.memory_space<vmem>>, %arg13: memref<2x1x128xf32, #tpu.memory_space<vmem>>, %arg14: memref<2x1024xf32, #tpu.memory_space<vmem>>) attributes {dimension_semantics = [#tpu.dimension_semantics<parallel>, #tpu.dimension_semantics<arbitrary>], iteration_bounds = array<i64: 1, 1>, scalar_prefetch = 0 : i64, scratch_operands = 1 : i64, tpu.core_type = #tpu.core_type<tc>, window_params = [{transform_indices = @transform_0, window_bounds = array<i64: 2, 256, 3>}, {pipeline_mode = #tpu.pipeline_mode<synchronous>, transform_indices = @transform_1, window_bounds = array<i64: 3, 64>}, {pipeline_mode = #tpu.pipeline_mode<synchronous>, transform_indices = @transform_2, window_bounds = array<i64: 1, 64>}, {pipeline_mode = #tpu.pipeline_mode<synchronous>, transform_indices = @transform_3, window_bounds = array<i64: 64, 128>}, {pipeline_mode = #tpu.pipeline_mode<synchronous>, transform_indices = @transform_4, window_bounds = array<i64: 1, 128>}, {pipeline_mode = #tpu.pipeline_mode<synchronous>, transform_indices = @transform_5, window_bounds = array<i64: 128, 1024>}, {pipeline_mode = #tpu.pipeline_mode<synchronous>, transform_indices = @transform_6, window_bounds = array<i64: 1, 1024>}, {pipeline_mode = #tpu.pipeline_mode<synchronous>, transform_indices = @transform_7, window_bounds = array<i64: 1024, 256>}, {pipeline_mode = #tpu.pipeline_mode<synchronous>, transform_indices = @transform_8, window_bounds = array<i64: 1, 256>}, {pipeline_mode = #tpu.pipeline_mode<synchronous>, transform_indices = @transform_9, window_bounds = array<i64: 256, 128>}, {pipeline_mode = #tpu.pipeline_mode<synchronous>, transform_indices = @transform_10, window_bounds = array<i64: 1, 128>}, {transform_indices = @transform_11, window_bounds = array<i64: 2, 1, 128>}]} {
    %c0 = arith.constant 0 : index
    %c0_0 = arith.constant 0 : index
    %c0_1 = arith.constant 0 : index
    %0 = vector.load %arg2[%c0, %c0_0, %c0_1] : memref<2x256x3xf32, #tpu.memory_space<vmem>>, vector<2x256x3xf32>
    %c0_2 = arith.constant 0 : index
    %c0_3 = arith.constant 0 : index
    %1 = vector.load %arg3[%c0_2, %c0_3] : memref<3x64xf32, #tpu.memory_space<vmem>>, vector<3x64xf32>
    %c0_4 = arith.constant 0 : index
    %c0_5 = arith.constant 0 : index
    %2 = vector.load %arg4[%c0_4, %c0_5] : memref<1x64xf32, #tpu.memory_space<vmem>>, vector<1x64xf32>
    %c0_6 = arith.constant 0 : index
    %c0_7 = arith.constant 0 : index
    %3 = vector.load %arg5[%c0_6, %c0_7] : memref<64x128xbf16, #tpu.memory_space<vmem>>, vector<64x128xbf16>
    %c0_8 = arith.constant 0 : index
    %c0_9 = arith.constant 0 : index
    %4 = vector.load %arg6[%c0_8, %c0_9] : memref<1x128xf32, #tpu.memory_space<vmem>>, vector<1x128xf32>
    %c0_10 = arith.constant 0 : index
    %c0_11 = arith.constant 0 : index
    %5 = vector.load %arg7[%c0_10, %c0_11] : memref<128x1024xbf16, #tpu.memory_space<vmem>>, vector<128x1024xbf16>
    %6 = vector.extract_strided_slice %0 {offsets = [0, 0, 0], sizes = [2, 256, 1], strides = [1, 1, 1]} : vector<2x256x3xf32> to vector<2x256x1xf32>
    %7 = vector.extract_strided_slice %1 {offsets = [0, 0], sizes = [1, 64], strides = [1, 1]} : vector<3x64xf32> to vector<1x64xf32>
    %8 = vector.shape_cast %7 : vector<1x64xf32> to vector<1x1x64xf32>
    %9 = vector.broadcast %6 : vector<2x256x1xf32> to vector<2x256x64xf32>
    %10 = vector.broadcast %8 : vector<1x1x64xf32> to vector<2x256x64xf32>
    %11 = arith.mulf %9, %10 : vector<2x256x64xf32>
    %12 = vector.extract_strided_slice %0 {offsets = [0, 0, 1], sizes = [2, 256, 1], strides = [1, 1, 1]} : vector<2x256x3xf32> to vector<2x256x1xf32>
    %13 = vector.extract_strided_slice %1 {offsets = [1, 0], sizes = [1, 64], strides = [1, 1]} : vector<3x64xf32> to vector<1x64xf32>
    %14 = vector.shape_cast %13 : vector<1x64xf32> to vector<1x1x64xf32>
    %15 = vector.broadcast %12 : vector<2x256x1xf32> to vector<2x256x64xf32>
    %16 = vector.broadcast %14 : vector<1x1x64xf32> to vector<2x256x64xf32>
    %17 = arith.mulf %15, %16 : vector<2x256x64xf32>
    %18 = arith.addf %11, %17 : vector<2x256x64xf32>
    %19 = vector.extract_strided_slice %0 {offsets = [0, 0, 2], sizes = [2, 256, 1], strides = [1, 1, 1]} : vector<2x256x3xf32> to vector<2x256x1xf32>
    %20 = vector.extract_strided_slice %1 {offsets = [2, 0], sizes = [1, 64], strides = [1, 1]} : vector<3x64xf32> to vector<1x64xf32>
    %21 = vector.shape_cast %20 : vector<1x64xf32> to vector<1x1x64xf32>
    %22 = vector.broadcast %19 : vector<2x256x1xf32> to vector<2x256x64xf32>
    %23 = vector.broadcast %21 : vector<1x1x64xf32> to vector<2x256x64xf32>
    %24 = arith.mulf %22, %23 : vector<2x256x64xf32>
    %25 = arith.addf %18, %24 : vector<2x256x64xf32>
    %26 = vector.shape_cast %25 : vector<2x256x64xf32> to vector<512x64xf32>
    %27 = vector.broadcast %2 : vector<1x64xf32> to vector<512x64xf32>
    %28 = arith.addf %26, %27 : vector<512x64xf32>
    %cst = arith.constant 0.000000e+00 : f32
    %29 = vector.broadcast %cst : f32 to vector<512x64xf32>
    %30 = arith.maximumf %28, %29 : vector<512x64xf32>
    %31 = arith.truncf %30 : vector<512x64xf32> to vector<512x64xbf16>
    %cst_12 = arith.constant dense<0.000000e+00> : vector<512x128xf32>
    %32 = tpu.matmul %31, %3, %cst_12 {dimension_numbers = #tpu.dot_dimension_numbers<[1], [0], [0], [1], [0, 0, 1, 1], [], []>} : vector<512x64xbf16>, vector<64x128xbf16>, vector<512x128xf32> -> vector<512x128xf32>
    %33 = vector.broadcast %4 : vector<1x128xf32> to vector<512x128xf32>
    %34 = arith.addf %32, %33 : vector<512x128xf32>
    %cst_13 = arith.constant 0.000000e+00 : f32
    %35 = vector.broadcast %cst_13 : f32 to vector<512x128xf32>
    %36 = arith.maximumf %34, %35 : vector<512x128xf32>
    %37 = arith.truncf %36 : vector<512x128xf32> to vector<512x128xbf16>
    %cst_14 = arith.constant dense<0.000000e+00> : vector<512x1024xf32>
    %38 = tpu.matmul %37, %5, %cst_14 {dimension_numbers = #tpu.dot_dimension_numbers<[1], [0], [0], [1], [0, 0, 1, 1], [], []>} : vector<512x128xbf16>, vector<128x1024xbf16>, vector<512x1024xf32> -> vector<512x1024xf32>
    %39 = vector.shape_cast %38 : vector<512x1024xf32> to vector<2x256x1024xf32>
    %cst_15 = arith.constant dense<0xFF800000> : vector<2x1024xf32>
    %40 = vector.multi_reduction <maximumf>, %39, %cst_15 [1] : vector<2x256x1024xf32> to vector<2x1024xf32>
    %c0_i32 = arith.constant 0 : i32
    %41 = arith.cmpi eq, %arg1, %c0_i32 : i32
    %42 = arith.extui %41 : i1 to i32
    %c0_i32_16 = arith.constant 0 : i32
    %43 = arith.cmpi ne, %42, %c0_i32_16 : i32
    scf.if %43 {
      %c0_21 = arith.constant 0 : index
      %c0_22 = arith.constant 0 : index
      %50 = vector.load %arg14[%c0_21, %c0_22] : memref<2x1024xf32, #tpu.memory_space<vmem>>, vector<2x1024xf32>
      tpu.vector_store %arg14[%c0_21, %c0_22], %40 {strides = array<i32>} : memref<2x1024xf32, #tpu.memory_space<vmem>>, vector<2x1024xf32>,
    } else {
    }
    %c0_i32_17 = arith.constant 0 : i32
    %44 = arith.cmpi sgt, %arg1, %c0_i32_17 : i32
    %45 = arith.extui %44 : i1 to i32
    %c0_i32_18 = arith.constant 0 : i32
    %46 = arith.cmpi ne, %45, %c0_i32_18 : i32
    scf.if %46 {
      %c0_21 = arith.constant 0 : index
      %c0_22 = arith.constant 0 : index
      %50 = vector.load %arg14[%c0_21, %c0_22] : memref<2x1024xf32, #tpu.memory_space<vmem>>, vector<2x1024xf32>
      %51 = arith.maximumf %50, %40 : vector<2x1024xf32>
      %c0_23 = arith.constant 0 : index
      %c0_24 = arith.constant 0 : index
      %52 = vector.load %arg14[%c0_23, %c0_24] : memref<2x1024xf32, #tpu.memory_space<vmem>>, vector<2x1024xf32>
      tpu.vector_store %arg14[%c0_23, %c0_24], %51 {strides = array<i32>} : memref<2x1024xf32, #tpu.memory_space<vmem>>, vector<2x1024xf32>,
    } else {
    }
    %c0_i32_19 = arith.constant 0 : i32
    %47 = arith.cmpi eq, %arg1, %c0_i32_19 : i32
    %48 = arith.extui %47 : i1 to i32
    %c0_i32_20 = arith.constant 0 : i32
    %49 = arith.cmpi ne, %48, %c0_i32_20 : i32
    scf.if %49 {
      %c0_21 = arith.constant 0 : index
      %c0_22 = arith.constant 0 : index
      %50 = vector.load %arg14[%c0_21, %c0_22] : memref<2x1024xf32, #tpu.memory_space<vmem>>, vector<2x1024xf32>
      %c0_23 = arith.constant 0 : index
      %c0_24 = arith.constant 0 : index
      %51 = vector.load %arg8[%c0_23, %c0_24] : memref<1x1024xf32, #tpu.memory_space<vmem>>, vector<1x1024xf32>
      %c0_25 = arith.constant 0 : index
      %c0_26 = arith.constant 0 : index
      %52 = vector.load %arg9[%c0_25, %c0_26] : memref<1024x256xbf16, #tpu.memory_space<vmem>>, vector<1024x256xbf16>
      %c0_27 = arith.constant 0 : index
      %c0_28 = arith.constant 0 : index
      %53 = vector.load %arg10[%c0_27, %c0_28] : memref<1x256xf32, #tpu.memory_space<vmem>>, vector<1x256xf32>
      %c0_29 = arith.constant 0 : index
      %c0_30 = arith.constant 0 : index
      %54 = vector.load %arg11[%c0_29, %c0_30] : memref<256x128xbf16, #tpu.memory_space<vmem>>, vector<256x128xbf16>
      %c0_31 = arith.constant 0 : index
      %c0_32 = arith.constant 0 : index
      %55 = vector.load %arg12[%c0_31, %c0_32] : memref<1x128xf32, #tpu.memory_space<vmem>>, vector<1x128xf32>
      %56 = vector.broadcast %51 : vector<1x1024xf32> to vector<2x1024xf32>
      %57 = arith.addf %50, %56 : vector<2x1024xf32>
      %58 = arith.truncf %57 : vector<2x1024xf32> to vector<2x1024xbf16>
      %cst_33 = arith.constant dense<0.000000e+00> : vector<2x256xf32>
      %59 = tpu.matmul %58, %52, %cst_33 {dimension_numbers = #tpu.dot_dimension_numbers<[1], [0], [0], [1], [0, 0, 1, 1], [], []>} : vector<2x1024xbf16>, vector<1024x256xbf16>, vector<2x256xf32> -> vector<2x256xf32>
      %60 = vector.broadcast %53 : vector<1x256xf32> to vector<2x256xf32>
      %61 = arith.addf %59, %60 : vector<2x256xf32>
      %cst_34 = arith.constant 0.000000e+00 : f32
      %62 = vector.broadcast %cst_34 : f32 to vector<2x256xf32>
      %63 = arith.maximumf %61, %62 : vector<2x256xf32>
      %64 = arith.truncf %63 : vector<2x256xf32> to vector<2x256xbf16>
      %cst_35 = arith.constant dense<0.000000e+00> : vector<2x128xf32>
      %65 = tpu.matmul %64, %54, %cst_35 {dimension_numbers = #tpu.dot_dimension_numbers<[1], [0], [0], [1], [0, 0, 1, 1], [], []>} : vector<2x256xbf16>, vector<256x128xbf16>, vector<2x128xf32> -> vector<2x128xf32>
      %66 = vector.broadcast %55 : vector<1x128xf32> to vector<2x128xf32>
      %67 = arith.addf %65, %66 : vector<2x128xf32>
      %68 = vector.shape_cast %67 : vector<2x128xf32> to vector<2x1x128xf32>
      %c0_36 = arith.constant 0 : index
      %c0_37 = arith.constant 0 : index
      %c0_38 = arith.constant 0 : index
      %69 = vector.load %arg13[%c0_36, %c0_37, %c0_38] : memref<2x1x128xf32, #tpu.memory_space<vmem>>, vector<2x1x128xf32>
      tpu.vector_store %arg13[%c0_36, %c0_37, %c0_38], %68 {strides = array<i32>} : memref<2x1x128xf32, #tpu.memory_space<vmem>>, vector<2x1x128xf32>,
    } else {
    }
    return
  }
  func.func @transform_0(%arg0: i32, %arg1: i32) -> (i32, i32, i32) {
    %c0_i32 = arith.constant 0 : i32
    %c0_i32_0 = arith.constant 0 : i32
    return %arg0, %arg1, %c0_i32 : i32, i32, i32
  }
  func.func @transform_1(%arg0: i32, %arg1: i32) -> (i32, i32) {
    %c0_i32 = arith.constant 0 : i32
    %c0_i32_0 = arith.constant 0 : i32
    %c0_i32_1 = arith.constant 0 : i32
    return %c0_i32, %c0_i32_0 : i32, i32
  }
  func.func @transform_2(%arg0: i32, %arg1: i32) -> (i32, i32) {
    %c0_i32 = arith.constant 0 : i32
    %c0_i32_0 = arith.constant 0 : i32
    %c0_i32_1 = arith.constant 0 : i32
    return %c0_i32, %c0_i32_0 : i32, i32
  }
  func.func @transform_3(%arg0: i32, %arg1: i32) -> (i32, i32) {
    %c0_i32 = arith.constant 0 : i32
    %c0_i32_0 = arith.constant 0 : i32
    %c0_i32_1 = arith.constant 0 : i32
    return %c0_i32, %c0_i32_0 : i32, i32
  }
  func.func @transform_4(%arg0: i32, %arg1: i32) -> (i32, i32) {
    %c0_i32 = arith.constant 0 : i32
    %c0_i32_0 = arith.constant 0 : i32
    %c0_i32_1 = arith.constant 0 : i32
    return %c0_i32, %c0_i32_0 : i32, i32
  }
  func.func @transform_5(%arg0: i32, %arg1: i32) -> (i32, i32) {
    %c0_i32 = arith.constant 0 : i32
    %c0_i32_0 = arith.constant 0 : i32
    %c0_i32_1 = arith.constant 0 : i32
    return %c0_i32, %c0_i32_0 : i32, i32
  }
  func.func @transform_6(%arg0: i32, %arg1: i32) -> (i32, i32) {
    %c0_i32 = arith.constant 0 : i32
    %c0_i32_0 = arith.constant 0 : i32
    %c0_i32_1 = arith.constant 0 : i32
    return %c0_i32, %c0_i32_0 : i32, i32
  }
  func.func @transform_7(%arg0: i32, %arg1: i32) -> (i32, i32) {
    %c0_i32 = arith.constant 0 : i32
    %c0_i32_0 = arith.constant 0 : i32
    %c0_i32_1 = arith.constant 0 : i32
    return %c0_i32, %c0_i32_0 : i32, i32
  }
  func.func @transform_8(%arg0: i32, %arg1: i32) -> (i32, i32) {
    %c0_i32 = arith.constant 0 : i32
    %c0_i32_0 = arith.constant 0 : i32
    %c0_i32_1 = arith.constant 0 : i32
    return %c0_i32, %c0_i32_0 : i32, i32
  }
  func.func @transform_9(%arg0: i32, %arg1: i32) -> (i32, i32) {
    %c0_i32 = arith.constant 0 : i32
    %c0_i32_0 = arith.constant 0 : i32
    %c0_i32_1 = arith.constant 0 : i32
    return %c0_i32, %c0_i32_0 : i32, i32
  }
  func.func @transform_10(%arg0: i32, %arg1: i32) -> (i32, i32) {
    %c0_i32 = arith.constant 0 : i32
    %c0_i32_0 = arith.constant 0 : i32
    %c0_i32_1 = arith.constant 0 : i32
    return %c0_i32, %c0_i32_0 : i32, i32
  }
  func.func @transform_11(%arg0: i32, %arg1: i32) -> (i32, i32, i32) {
    %c0_i32 = arith.constant 0 : i32
    %c0_i32_0 = arith.constant 0 : i32
    %c0_i32_1 = arith.constant 0 : i32
    return %arg0, %c0_i32, %c0_i32_0 : i32, i32, i32
  }
}

</mosaic_0001>

<bundles_post_ra>
// kernel: tpu_custom_call.1
= control target key start
LH: loop header
LB: loop body
LE: loop exit
PB: predicated region body
PF: predicated region fallthrough
CT: control target
= control target key end

     0   :  { %16 = vsyncpa [#allocation4], 0  ;;  %s8588_s0 = inlined_call_operand.hbm [shape: f32[2,256,3], index: 0, kind: input, shape index: {}]   ;;  %s8589_s1 = inlined_call_operand.hbm [shape: f32[3,64], index: 1, kind: input, shape index: {}]   ;;  %s8590_s2 = inlined_call_operand.hbm [shape: f32[1,64], index: 2, kind: input, shape index: {}]   ;;  %s8591_s3 = inlined_call_operand.hbm [shape: bf16[64,128], index: 3, kind: input, shape index: {}]   ;;  %s8592_s4 = inlined_call_operand.hbm [shape: f32[1,128], index: 4, kind: input, shape index: {}]   ;;  %s8593_s5 = inlined_call_operand.hbm [shape: bf16[128,1024], index: 5, kind: input, shape index: {}]   ;;  %s8594_s6 = inlined_call_operand.hbm [shape: f32[1,1024], index: 6, kind: input, shape index: {}]   ;;  %s8595_s7 = inlined_call_operand.hbm [shape: bf16[1024,256], index: 7, kind: input, shape index: {}]   ;;  %s8596_s8 = inlined_call_operand.hbm [shape: f32[1,256], index: 8, kind: input, shape index: {}]   ;;  %s8597_s9 = inlined_call_operand.hbm [shape: bf16[256,128], index: 9, kind: input, shape index: {}]   ;;  %s8598_s10 = inlined_call_operand.hbm [shape: f32[1,128], index: 10, kind: input, shape index: {}]   ;;  %s8599_s11 = inlined_call_operand.hbm [shape: f32[2,1,128], index: 11, kind: output, shape index: {}]  }
   0x1   :  { %17 = vsyncpa [#allocation7], 0 }
   0x2   :  { %18 = vsyncpa [#allocation10], 0 }
   0x3   :  { %19 = vsyncpa [#allocation13], 0 }
   0x4   :  { %20 = vsyncpa [#allocation16], 0 }
   0x5   :  { %21 = vsyncpa [#allocation19], 0 }
   0x6   :  { %22 = vsyncpa [#allocation5], 0  ;;  %s7012_s17 = smov [#allocation6]   ;;  %s7013_s19 = smov [#allocation9]  }
   0x7   :  { %s41_s18 = sshll.u32 %s7012_s17, 4  ;;  %s60_s20 = sshll.u32 %s7013_s19, 4  ;;  %s42_s18 = int_to_ptr.vmem [resolvable:$true] %s41_s18  ;;  %s7097_s20 = int_to_ptr.vmem [resolvable:$true] %s60_s20 }
   0x8   :  { %s6734_s23 = scalar_lea.hbm %s8589_s1, 64 }
   0x9   :  { %p6735_p0 = scmp.ne.s32.totalorder %s8589_s1, %s6734_s23  ;;  %p6738_p1 = scmp.lt.u32.totalorder %s6734_s23, %s8589_s1 }
   0xb   :  { %p6740_p2 = pnand %p6738_p1, %p6735_p0 }
   0xd   :  { %6743 = shalt.err (!%p6740_p2)
}
   0xe   :  { %s6744_s28 = scalar_lea.vmem %s42_s18, 64  ;;  %p6749_p4 = scmp.lt.s32.totalorder %s42_s18, %s42_s18 }
   0xf   :  { %p6745_p3 = scmp.ne.s32.totalorder %s42_s18, %s6744_s28  ;;  %p6750_p5 = scmp.lt.s32.totalorder %s6744_s28, %s6744_s28 }
  0x11   :  { %p6751_p6 = por %p6750_p5, %p6749_p4 }
  0x13   :  { %p6752_p7 = pnand %p6751_p6, %p6745_p3 }
  0x15   :  { %6755 = shalt.err (!%p6752_p7)
}
  0x16   :  { %44 = dma.hbm_to_vmem [thread:$0]  %s8589_s1, 64, %s42_s18, [#allocation7]  }
  0x17   :  { %s6756_s14 = scalar_lea.hbm %s8591_s3, 512 }
  0x18   :  { %p6757_p8 = scmp.ne.s32.totalorder %s8591_s3, %s6756_s14  ;;  %p6760_p9 = scmp.lt.u32.totalorder %s6756_s14, %s8591_s3 }
  0x1a   :  { %p6762_p10 = pnand %p6760_p9, %p6757_p8 }
  0x1c   :  { %6765 = shalt.err (!%p6762_p10)
}
  0x1d   :  { %s6766_s21 = scalar_lea.vmem %s7097_s20, 512  ;;  %p6771_p12 = scmp.lt.s32.totalorder %s7097_s20, %s7097_s20 }
  0x1e   :  { %p6767_p11 = scmp.ne.s32.totalorder %s7097_s20, %s6766_s21  ;;  %p6772_p13 = scmp.lt.s32.totalorder %s6766_s21, %s6766_s21 }
  0x20   :  { %p6773_p0 = por %p6772_p13, %p6771_p12 }
  0x22   :  { %p6774_p1 = pnand %p6773_p0, %p6767_p11 }
  0x24   :  { %6777 = shalt.err (!%p6774_p1)
}
  0x25   :  { %s7014_s1 = smov 64   ;;  %s7015_s18 = smov 4  }
  0x26   :  { %66 = dma.hbm_to_vmem [thread:$0]  %s8591_s3, 512, %s7097_s20, [#allocation10], %s7014_s1, %s7014_s1, %s7015_s18  }
  0x27   :  { %s7016_s24 = smov [#allocation12]   ;;  %s6778_s28 = scalar_lea.hbm %s8593_s5, 8192 }
  0x28   :  { %s82_s25 = sshll.u32 %s7016_s24, 4  ;;  %p6779_p2 = scmp.ne.s32.totalorder %s8593_s5, %s6778_s28  ;;  %s83_s25 = int_to_ptr.vmem [resolvable:$true] %s82_s25 }
  0x29   :  { %p6782_p3 = scmp.lt.u32.totalorder %s6778_s28, %s8593_s5 }
  0x2b   :  { %p6784_p4 = pnand %p6782_p3, %p6779_p2 }
  0x2d   :  { %6787 = shalt.err (!%p6784_p4)
}
  0x2e   :  { %s6788_s14 = scalar_lea.vmem %s83_s25, 8192  ;;  %p6793_p6 = scmp.lt.s32.totalorder %s83_s25, %s83_s25 }
  0x2f   :  { %p6789_p5 = scmp.ne.s32.totalorder %s83_s25, %s6788_s14  ;;  %p6794_p7 = scmp.lt.s32.totalorder %s6788_s14, %s6788_s14 }
  0x31   :  { %p6795_p8 = por %p6794_p7, %p6793_p6 }
  0x33   :  { %p6796_p9 = pnand %p6795_p8, %p6789_p5 }
  0x35   :  { %6799 = shalt.err (!%p6796_p9)
}
  0x36   :  { %s7017_s3 = smov 512   ;;  %s7018_s20 = smov 32  }
  0x37   :  { %88 = dma.hbm_to_vmem [thread:$0]  %s8593_s5, 8192, %s83_s25, [#allocation13], %s7017_s3, %s7017_s3, %s7018_s20  }
  0x38   :  { %s7019_s17 = smov [#allocation15]   ;;  %s7020_s21 = smov [#allocation18]  }
  0x39   :  { %s104_s19 = sshll.u32 %s7019_s17, 4  ;;  %s126_s22 = sshll.u32 %s7020_s21, 4  ;;  %s105_s19 = int_to_ptr.vmem [resolvable:$true] %s104_s19  ;;  %s127_s22 = int_to_ptr.vmem [resolvable:$true] %s126_s22 }
  0x3a   :  { %s6800_s26 = scalar_lea.hbm %s8595_s7, 16384 }
  0x3b   :  { %p6801_p10 = scmp.ne.s32.totalorder %s8595_s7, %s6800_s26  ;;  %p6804_p11 = scmp.lt.u32.totalorder %s6800_s26, %s8595_s7 }
  0x3d   :  { %p6806_p12 = pnand %p6804_p11, %p6801_p10 }
  0x3f   :  { %6809 = shalt.err (!%p6806_p12)
}
  0x40   :  { %s6810_s5 = scalar_lea.vmem %s105_s19, 16384  ;;  %p6815_p0 = scmp.lt.s32.totalorder %s105_s19, %s105_s19 }
  0x41   :  { %p6811_p13 = scmp.ne.s32.totalorder %s105_s19, %s6810_s5  ;;  %p6816_p1 = scmp.lt.s32.totalorder %s6810_s5, %s6810_s5 }
  0x43   :  { %p6817_p2 = por %p6816_p1, %p6815_p0 }
  0x45   :  { %p6818_p3 = pnand %p6817_p2, %p6811_p13 }
  0x47   :  { %6821 = shalt.err (!%p6818_p3)
}
  0x48   :  { %s7021_s25 = smov 128   ;;  %s7022_s12 = smov 8  }
  0x49   :  { %110 = dma.hbm_to_vmem [thread:$0]  %s8595_s7, 16384, %s105_s19, [#allocation16], %s7021_s25, %s7021_s25, %s7022_s12  }
  0x4a   :  { %s6822_s15 = scalar_lea.hbm %s8597_s9, 2048 }
  0x4b   :  { %p6823_p4 = scmp.ne.s32.totalorder %s8597_s9, %s6822_s15  ;;  %p6826_p5 = scmp.lt.u32.totalorder %s6822_s15, %s8597_s9 }
  0x4d   :  { %p6828_p6 = pnand %p6826_p5, %p6823_p4 }
  0x4f   :  { %6831 = shalt.err (!%p6828_p6)
}
  0x50   :  { %s6832_s24 = scalar_lea.vmem %s127_s22, 2048  ;;  %p6837_p8 = scmp.lt.s32.totalorder %s127_s22, %s127_s22 }
  0x51   :  { %p6833_p7 = scmp.ne.s32.totalorder %s127_s22, %s6832_s24  ;;  %p6838_p9 = scmp.lt.s32.totalorder %s6832_s24, %s6832_s24 }
  0x53   :  { %p6839_p10 = por %p6838_p9, %p6837_p8 }
  0x55   :  { %p6840_p11 = pnand %p6839_p10, %p6833_p7 }
  0x57   :  { %6843 = shalt.err (!%p6840_p11)
}
  0x58   :  { %132 = dma.hbm_to_vmem [thread:$0]  %s8597_s9, 2048, %s127_s22, [#allocation19], %s7014_s1, %s7014_s1, %s7015_s18  }
  0x59   :  { %s7023_s26 = smov [#allocation3]   ;;  %s7024_s28 = smov [#allocation8]  }
  0x5a   :  { %s28_s27 = sshll.u32 %s7023_s26, 4  ;;  %s51_s29 = sshll.u32 %s7024_s28, 4  ;;  %s29_s27 = int_to_ptr.vmem [resolvable:$true] %s28_s27  ;;  %s52_s29 = int_to_ptr.vmem [resolvable:$true] %s51_s29 }
  0x5b   :  { %s6844_s13 = scalar_lea.hbm %s8588_s0, 8192 }
  0x5c   :  { %p6845_p12 = scmp.ne.s32.totalorder %s8588_s0, %s6844_s13  ;;  %p6848_p13 = scmp.lt.u32.totalorder %s6844_s13, %s8588_s0 }
  0x5e   :  { %p6850_p0 = pnand %p6848_p13, %p6845_p12 }
  0x60   :  { %6853 = shalt.err (!%p6850_p0)
}
  0x61   :  { %s6854_s9 = scalar_lea.vmem %s29_s27, 8192  ;;  %p6859_p2 = scmp.lt.s32.totalorder %s29_s27, %s29_s27 }
  0x62   :  { %p6855_p1 = scmp.ne.s32.totalorder %s29_s27, %s6854_s9  ;;  %p6860_p3 = scmp.lt.s32.totalorder %s6854_s9, %s6854_s9 }
  0x64   :  { %p6861_p4 = por %p6860_p3, %p6859_p2 }
  0x66   :  { %p6862_p5 = pnand %p6861_p4, %p6855_p1 }
  0x68   :  { %6865 = shalt.err (!%p6862_p5)
}
  0x69   :  { %34 = dma.hbm_to_vmem [thread:$0]  %s8588_s0, 8192, %s29_s27, [#allocation4], %s7021_s25, %s7021_s25, %s7022_s12  }
  0x6a   :  { %s6866_s17 = scalar_lea.hbm %s8590_s2, 16 }
  0x6b   :  { %p6867_p6 = scmp.ne.s32.totalorder %s8590_s2, %s6866_s17  ;;  %p6870_p7 = scmp.lt.u32.totalorder %s6866_s17, %s8590_s2 }
  0x6d   :  { %p6872_p8 = pnand %p6870_p7, %p6867_p6 }
  0x6f   :  { %6875 = shalt.err (!%p6872_p8)
}
  0x70   :  { %s6876_s19 = scalar_lea.vmem %s52_s29, 16  ;;  %s6880_s26 = scalar_lea.vmem %s52_s29, 32 }
  0x71   :  { %p6877_p9 = scmp.ne.s32.totalorder %s52_s29, %s6876_s19  ;;  %p6881_p10 = scmp.lt.s32.totalorder %s52_s29, %s52_s29 }
  0x72   :  { %p6882_p11 = scmp.lt.s32.totalorder %s6880_s26, %s6876_s19 }
  0x74   :  { %p6883_p12 = por %p6882_p11, %p6881_p10 }
  0x76   :  { %p6884_p13 = pnand %p6883_p12, %p6877_p9 }
  0x78   :  { %6887 = shalt.err (!%p6884_p13)
}
  0x79   :  { %54 = dma.hbm_to_vmem [thread:$0]  %s8590_s2, 16, %s52_s29, [#allocation7]  }
  0x7a   :  { %s7025_s12 = smov [#allocation11]   ;;  %s7026_s28 = smov [#allocation14]  }
  0x7b   :  { %s73_s27 = sshll.u32 %s7025_s12, 4  ;;  %s95_s30 = sshll.u32 %s7026_s28, 4  ;;  %s74_s27 = int_to_ptr.vmem [resolvable:$true] %s73_s27  ;;  %s96_s30 = int_to_ptr.vmem [resolvable:$true] %s95_s30 }
  0x7c   :  { %s6888_s14 = scalar_lea.hbm %s8592_s4, 16 }
  0x7d   :  { %p6889_p0 = scmp.ne.s32.totalorder %s8592_s4, %s6888_s14  ;;  %p6892_p1 = scmp.lt.u32.totalorder %s6888_s14, %s8592_s4 }
  0x7f   :  { %p6894_p2 = pnand %p6892_p1, %p6889_p0 }
  0x81   :  { %6897 = shalt.err (!%p6894_p2)
}
  0x82   :  { %s6898_s2 = scalar_lea.vmem %s74_s27, 16  ;;  %s6902_s29 = scalar_lea.vmem %s74_s27, 32 }
  0x83   :  { %p6899_p3 = scmp.ne.s32.totalorder %s74_s27, %s6898_s2  ;;  %p6903_p4 = scmp.lt.s32.totalorder %s74_s27, %s74_s27 }
  0x84   :  { %p6904_p5 = scmp.lt.s32.totalorder %s6902_s29, %s6898_s2 }
  0x86   :  { %p6905_p6 = por %p6904_p5, %p6903_p4 }
  0x88   :  { %p6906_p7 = pnand %p6905_p6, %p6899_p3 }
  0x8a   :  { %6909 = shalt.err (!%p6906_p7)
}
  0x8b   :  { %76 = dma.hbm_to_vmem [thread:$0]  %s8592_s4, 16, %s74_s27, [#allocation10]  }
  0x8c   :  { %s6910_s17 = scalar_lea.hbm %s8594_s6, 128 }
  0x8d   :  { %p6911_p8 = scmp.ne.s32.totalorder %s8594_s6, %s6910_s17  ;;  %p6914_p9 = scmp.lt.u32.totalorder %s6910_s17, %s8594_s6 }
  0x8f   :  { %p6916_p10 = pnand %p6914_p9, %p6911_p8 }
  0x91   :  { %6919 = shalt.err (!%p6916_p10)
}
  0x92   :  { %s6920_s19 = scalar_lea.vmem %s96_s30, 128  ;;  %p6925_p12 = scmp.lt.s32.totalorder %s96_s30, %s96_s30 }
  0x93   :  { %p6921_p11 = scmp.ne.s32.totalorder %s96_s30, %s6920_s19  ;;  %p6926_p13 = scmp.lt.s32.totalorder %s6920_s19, %s6920_s19 }
  0x95   :  { %p6927_p0 = por %p6926_p13, %p6925_p12 }
  0x97   :  { %p6928_p1 = pnand %p6927_p0, %p6921_p11 }
  0x99   :  { %6931 = shalt.err (!%p6928_p1)
}
  0x9a   :  { %98 = dma.hbm_to_vmem [thread:$0]  %s8594_s6, 128, %s96_s30, [#allocation13]  }
  0x9b   :  { %s7027_s0 = smov [#allocation17]   ;;  %s7028_s12 = smov [#allocation20]  }
  0x9c   :  { %s117_s25 = sshll.u32 %s7027_s0, 4  ;;  %s139_s27 = sshll.u32 %s7028_s12, 4  ;;  %s118_s25 = int_to_ptr.vmem [resolvable:$true] %s117_s25  ;;  %s140_s27 = int_to_ptr.vmem [resolvable:$true] %s139_s27 }
  0x9d   :  { %s6932_s13 = scalar_lea.hbm %s8596_s8, 32 }
  0x9e   :  { %p6933_p2 = scmp.ne.s32.totalorder %s8596_s8, %s6932_s13  ;;  %p6936_p3 = scmp.lt.u32.totalorder %s6932_s13, %s8596_s8 }
  0xa0   :  { %p6938_p4 = pnand %p6936_p3, %p6933_p2 }
  0xa2   :  { %6941 = shalt.err (!%p6938_p4)
}
  0xa3   :  { %s6942_s6 = scalar_lea.vmem %s118_s25, 32  ;;  %p6947_p6 = scmp.lt.s32.totalorder %s118_s25, %s118_s25 }
  0xa4   :  { %p6943_p5 = scmp.ne.s32.totalorder %s118_s25, %s6942_s6  ;;  %p6948_p7 = scmp.lt.s32.totalorder %s6942_s6, %s6942_s6 }
  0xa6   :  { %p6949_p8 = por %p6948_p7, %p6947_p6 }
  0xa8   :  { %p6950_p9 = pnand %p6949_p8, %p6943_p5 }
  0xaa   :  { %6953 = shalt.err (!%p6950_p9)
}
  0xab   :  { %120 = dma.hbm_to_vmem [thread:$0]  %s8596_s8, 32, %s118_s25, [#allocation16]  }
  0xac   :  { %s6954_s1 = scalar_lea.hbm %s8598_s10, 16 }
  0xad   :  { %p6955_p10 = scmp.ne.s32.totalorder %s8598_s10, %s6954_s1  ;;  %p6958_p11 = scmp.lt.u32.totalorder %s6954_s1, %s8598_s10 }
  0xaf   :  { %p6960_p12 = pnand %p6958_p11, %p6955_p10 }
  0xb1   :  { %6963 = shalt.err (!%p6960_p12)
}
  0xb2   :  { %s6964_s21 = scalar_lea.vmem %s140_s27, 16  ;;  %s6968_s23 = scalar_lea.vmem %s140_s27, 32 }
  0xb3   :  { %p6965_p13 = scmp.ne.s32.totalorder %s140_s27, %s6964_s21  ;;  %p6969_p0 = scmp.lt.s32.totalorder %s140_s27, %s140_s27 }
  0xb4   :  { %p6970_p1 = scmp.lt.s32.totalorder %s6968_s23, %s6964_s21 }
  0xb6   :  { %p6971_p2 = por %p6970_p1, %p6969_p0 }
  0xb8   :  { %p6972_p3 = pnand %p6971_p2, %p6965_p13 }
  0xba   :  { %6975 = shalt.err (!%p6972_p3)
}
  0xbb   :  { %142 = dma.hbm_to_vmem [thread:$0]  %s8598_s10, 16, %s140_s27, [#allocation19]  }
  0xbc   :  { %6998 = dma.done.wait [#allocation4], 8192  }
  0xbd   :  { %6999 = vsyncadd [#allocation4], 4294959104 }
  0xbe   :  { %7000 = dma.done.wait [#allocation7], 80  }
  0xbf   :  { %7001 = vsyncadd [#allocation7], 4294967216 }
  0xc0   :  { %7002 = dma.done.wait [#allocation10], 528  }
  0xc1   :  { %7003 = vsyncadd [#allocation10], 4294966768 }
  0xc2   :  { %7004 = dma.done.wait [#allocation13], 8320  }
  0xc3   :  { %7005 = vsyncadd [#allocation13], 4294958976 }
  0xc4   :  { %7006 = dma.done.wait [#allocation16], 16416  }
  0xc5   :  { %7007 = vsyncadd [#allocation16], 4294950880 }
  0xc6   :  { %7008 = dma.done.wait [#allocation19], 2064  }
  0xc7   :  { %7009 = vsyncadd [#allocation19], 4294965232  ;;  %v8601_v0 = vmov 2   ;;  %v8611_v1 = vmov 1   ;;  %v8603_v2 = vmov 0   ;;  %v178_v3 = vld [vmem:[#allocation3 + $0x8] sm:$0xff]  ;;  %v636_v44 = vlaneseq }
  0xc8   :  { %6431 = vset.pattern.permute.xlu0 %v8601_v0  ;;  %6427 = vset.pattern.permute.xlu1 %v8611_v1  ;;  %v177_v4 = vld [vmem:[#allocation3] sm:$0xff]  ;;  %v184_v6 = vld [vmem:[#allocation3 + $0x38] sm:$0xff]  ;;  %v186_v8 = vld [vmem:[#allocation3 + $0x48] sm:$0xff]  ;;  %vm1676_vm0 = vcmask 523264   ;;  %vm4575_vm1 = vcmask 1041409   ;;  %vm4577_vm2 = vcmask 1043459  }
  0xc9   :  { %2510 = vmatprep.mubr.bf16.mxu1 %v8603_v2  ;;  %1097 = vperm.xlu0 %6431, %v178_v3   ;;  %v181_v5 = vld [vmem:[#allocation3 + $0x20] sm:$0xff]  ;;  %v180_v7 = vld [vmem:[#allocation3 + $0x18] sm:$0xff]  ;;  %v179_v11 = vld [vmem:[#allocation3 + $0x10] sm:$0xff]  ;;  %v7341_v48 = vshrl.u32 %v636_v44, 7  ;;  %vm4579_vm3 = vcmask 1045509   ;;  %vm4581_vm4 = vcmask 1047559  }
  0xca   :  { %705 = vperm.xlu1 %6427, %v177_v4   ;;  %v7252_v9 = vld [vmem:[#allocation3 + $0x60] sm:$0xff]  ;;  %v7256_v10 = vld [vmem:[#allocation3 + $0x78] sm:$0xff]  ;;  %v7260_v12 = vld [vmem:[#allocation3 + $0x88] sm:$0xff]  ;;  %s7034_s10 = smov [#allocation21]  }
  0xcb   :  { %v182_v13 = vld [vmem:[#allocation3 + $0x28] sm:$0xff]  ;;  %v183_v14 = vld [vmem:[#allocation3 + $0x30] sm:$0xff]  ;;  %v7273_v17 = vld [vmem:[#allocation3 + $0xa0] sm:$0xff]  ;;  %8621 = vst [vmem:[#allocation30_spill] sm:$0xff] %v7341_v48  ;;  %v7350_v53 = vsub.s32 1, %v7341_v48  ;;  %v8600_v56 = vsub.s32 2, %v7341_v48 }
  0xcc   :  { %v187_v15 = vld [vmem:[#allocation3 + $0x50] sm:$0xff]  ;;  %v185_v18 = vld [vmem:[#allocation3 + $0x40] sm:$0xff]  ;;  %v7277_v19 = vld [vmem:[#allocation3 + $0xc8] sm:$0xff]  ;;  %v7357_v57 = vsub.s32 0, %v7341_v48  ;;  %s5994_s7 = sshll.u32 %s7034_s10, 4  ;;  %s5995_s7 = int_to_ptr.vmem [resolvable:$true] %s5994_s7 }
  0xcd   :  { %1109 = vperm.xlu0 %6431, %v181_v5   ;;  %v7271_v16 = vld [vmem:[#allocation3 + $0x90] sm:$0xff]  ;;  %v7285_v21 = vld [vmem:[#allocation3 + $0xe0] sm:$0xff]  ;;  %v188_v22 = vld [vmem:[#allocation3 + $0x58] sm:$0xff]  ;;  %8622 = vst [vmem:[#allocation31_spill] sm:$0xff] %v7350_v53  ;;  %s6976_s19 = scalar_lea.vmem %s5995_s7, 32  ;;  %p6981_p5 = scmp.lt.s32.totalorder %s5995_s7, %s5995_s7 }
  0xce   :  { %709 = vperm.xlu1 %6427, %v178_v3   ;;  %v7282_v20 = vld [vmem:[#allocation3 + $0xd0] sm:$0xff]  ;;  %v7289_v23 = vld [vmem:[#allocation3 + $0x108] sm:$0xff]  ;;  %v6516_v28 = vld [vmem:[#allocation9 + $0x18] sm:$0xff]   ;;  %8623 = vst [vmem:[#allocation32_spill] sm:$0xff] %v7357_v57  ;;  %p6977_p4 = scmp.ne.s32.totalorder %s5995_s7, %s6976_s19  ;;  %p6982_p6 = scmp.lt.s32.totalorder %s6976_s19, %s6976_s19 }
  0xcf   :  { %v7292_v24 = vld [vmem:[#allocation3 + $0x110] sm:$0xff]  ;;  %v6513_v25 = vld [vmem:[#allocation9] sm:$0xff]   ;;  %v196_v50 = vld [vmem:[#allocation3 + $0x98] sm:$0xff] }
  0xd0   :  { %6318 = vmatprep.subr.bf16.mxu0 %v6513_v25  ;;  %v6514_v26 = vld [vmem:[#allocation9 + $0x8] sm:$0xff]   ;;  %v6515_v27 = vld [vmem:[#allocation9 + $0x10] sm:$0xff]   ;;  %v193_v39 = vld [vmem:[#allocation3 + $0x80] sm:$0xff]  ;;  %p6983_p7 = por %p6982_p6, %p6981_p5 }
  0xd1   :  { %1121 = vperm.xlu0 %6431, %v184_v6   ;;  %6319 = vmatpush3.bf16.msra.mxu0 %v6513_v25  ;;  %v190_v29 = vld [vmem:[#allocation3 + $0x68] sm:$0xff]  ;;  %v191_v30 = vld [vmem:[#allocation3 + $0x70] sm:$0xff]  ;;  %v241_v54 = vld [vmem:[#allocation6] sm:$0x7] }
  0xd2   :  { %6428 = vset.pattern.permute.xlu1 %v8603_v2  ;;  %6320 = vmatprep.subr.bf16.mxu0 %v6514_v26  ;;  %v7303_v31 = vld [vmem:[#allocation3 + $0xa8] sm:$0xff]  ;;  %v7307_v32 = vld [vmem:[#allocation3 + $0xb0] sm:$0xff]  ;;  %v7364_v60 = vrot.slane %v241_v54, %v7350_v53  ;;  %v7372_v62 = vrot.slane %v241_v54, %v8600_v56  ;;  %v7375_v63 = vrot.slane %v241_v54, %v7357_v57  ;;  %v7416_v54 = vld [vmem:[#allocation3 + $0xf8] sm:$0xff]  ;;  %p6984_p8 = pnand %p6983_p7, %p6977_p4 }
  0xd3   :  { %333 = vperm.xlu1 %6428, %v180_v7   ;;  %v7314_v35 = vld [vmem:[#allocation3 + $0xe8] sm:$0xff]  ;;  %v7319_v38 = vld [vmem:[#allocation3 + $0xf0] sm:$0xff]  ;;  %v232_v48 = vld [vmem:[#allocation3 + $0x1b8] sm:$0xff] }
  0xd4   :  { %v7331_v43 = vld [vmem:[#allocation3 + $0x128] sm:$0xff]  ;;  %v7338_v47 = vld [vmem:[#allocation3 + $0x130] sm:$0xff] }
  0xd5   :  { %1129 = vperm.xlu0 %6431, %v186_v8   ;;  %6321 = vmatpush3.bf16.msra.mxu0 %v6514_v26  ;;  %8620 = vst [vmem:[#allocation29_spill] sm:$0xff] %v7338_v47  ;;  %v7346_v52 = vld [vmem:[#allocation3 + $0x150] sm:$0xff]  ;;  %v7361_v59 = vld [vmem:[#allocation3 + $0x168] sm:$0xff] }
  0xd6   :  { %6322 = vmatprep.subr.bf16.mxu0 %v6515_v27  ;;  %8624 = vst [vmem:[#allocation33_spill] sm:$0xff] %v7361_v59 }
  0xd7   :  { %6429 = vset.pattern.permute.xlu1 %v8611_v1 }
  0xd8   :  { %717 = vperm.xlu1 %6429, %v180_v7  }
  0xd9   :  { %1141 = vperm.xlu0 %6431, %v7252_v9   ;;  %6323 = vmatpush3.bf16.msra.mxu0 %v6515_v27 }
  0xda   :  { %6324 = vmatprep.subr.bf16.mxu0 %v6516_v28 }
  0xdc   :  { %6430 = vset.pattern.permute.xlu1 %v8601_v0 }
  0xdd   :  { %1093 = vperm.xlu1 %6430, %v177_v4   ;;  %1153 = vperm.xlu0 %6431, %v7256_v10  }
  0xde   :  { %6325 = vmatpush3.bf16.msra.mxu0 %v6516_v28  ;;  %v200_v28 = vld [vmem:[#allocation3 + $0xb8] sm:$0xff] }
  0xe1   :  { %1101 = vperm.xlu1 %6430, %v179_v11   ;;  %1161 = vperm.xlu0 %6431, %v7260_v12  }
  0xe5   :  { %1105 = vperm.xlu1 %6430, %v180_v7   ;;  %6452 = vset.pattern.permute.xlu0 %v8603_v2 }
  0xe6   :  { %318 = vperm.xlu0 %6452, %v177_v4  }
  0xe9   :  { %6432 = vset.pattern.permute.xlu1 %v8603_v2 }
  0xea   :  { %343 = vperm.xlu1 %6432, %v182_v13   ;;  %323 = vperm.xlu0 %6452, %v178_v3   ;;  %v223_v3 = vld [vmem:[#allocation3 + $0x170] sm:$0xff] }
  0xee   :  { %6433 = vset.pattern.permute.xlu1 %v8611_v1  ;;  %328 = vperm.xlu0 %6452, %v179_v11  }
  0xef   :  { %721 = vperm.xlu1 %6433, %v181_v5  }
  0xf2   :  { %338 = vperm.xlu0 %6452, %v181_v5  }
  0xf3   :  { %6434 = vset.pattern.permute.xlu1 %v8603_v2 }
  0xf4   :  { %348 = vperm.xlu1 %6434, %v183_v14  }
  0xf6   :  { %363 = vperm.xlu0 %6452, %v186_v8  }
  0xf8   :  { %353 = vperm.xlu1 %6434, %v184_v6  }
  0xfa   :  { %368 = vperm.xlu0 %6452, %v187_v15  }
  0xfc   :  { %6435 = vset.pattern.permute.xlu1 %v8611_v1 }
  0xfd   :  { %733 = vperm.xlu1 %6435, %v184_v6  }
  0xfe   :  { %378 = vperm.xlu0 %6452, %v7252_v9  }
 0x101   :  { %6436 = vset.pattern.permute.xlu1 %v8601_v0 }
 0x102   :  { %1113 = vperm.xlu1 %6436, %v182_v13   ;;  %403 = vperm.xlu0 %6452, %v7260_v12  }
 0x106   :  { %1117 = vperm.xlu1 %6436, %v183_v14   ;;  %408 = vperm.xlu0 %6452, %v7271_v16  }
 0x10a   :  { %6437 = vset.pattern.permute.xlu1 %v8603_v2  ;;  %418 = vperm.xlu0 %6452, %v7273_v17  }
 0x10b   :  { %358 = vperm.xlu1 %6437, %v185_v18  }
 0x10e   :  { %443 = vperm.xlu0 %6452, %v7277_v19  }
 0x10f   :  { %6438 = vset.pattern.permute.xlu1 %v8611_v1 }
 0x110   :  { %737 = vperm.xlu1 %6438, %v185_v18  }
 0x112   :  { %448 = vperm.xlu0 %6452, %v7282_v20  }
 0x114   :  { %741 = vperm.xlu1 %6438, %v186_v8  }
 0x116   :  { %458 = vperm.xlu0 %6452, %v7285_v21  }
 0x118   :  { %6439 = vset.pattern.permute.xlu1 %v8603_v2 }
 0x119   :  { %373 = vperm.xlu1 %6439, %v188_v22  }
 0x11a   :  { %483 = vperm.xlu0 %6452, %v7289_v23  }
 0x11d   :  { %6440 = vset.pattern.permute.xlu1 %v8611_v1 }
 0x11e   :  { %749 = vperm.xlu1 %6440, %v188_v22   ;;  %488 = vperm.xlu0 %6452, %v7292_v24  }
 0x122   :  { %6441 = vset.pattern.permute.xlu1 %v8601_v0  ;;  %6470 = vset.pattern.permute.xlu0 %v8611_v1 }
 0x123   :  { %1125 = vperm.xlu1 %6441, %v185_v18   ;;  %713 = vperm.xlu0 %6470, %v179_v11   ;;  %v7389_v18 = vld [vmem:[#allocation8] ss:$0 sm:$0xff] }
 0x127   :  { %1133 = vperm.xlu1 %6441, %v187_v15   ;;  %725 = vperm.xlu0 %6470, %v182_v13  }
 0x12b   :  { %1137 = vperm.xlu1 %6441, %v188_v22   ;;  %729 = vperm.xlu0 %6470, %v183_v14  }
 0x12f   :  { %6442 = vset.pattern.permute.xlu1 %v8603_v2  ;;  %745 = vperm.xlu0 %6470, %v187_v15  }
 0x130   :  { %383 = vperm.xlu1 %6442, %v190_v29  }
 0x133   :  { %757 = vperm.xlu0 %6470, %v190_v29  }
 0x134   :  { %6443 = vset.pattern.permute.xlu1 %v8611_v1 }
 0x135   :  { %753 = vperm.xlu1 %6443, %v7252_v9  }
 0x137   :  { %761 = vperm.xlu0 %6470, %v191_v30  }
 0x139   :  { %6444 = vset.pattern.permute.xlu1 %v8603_v2 }
 0x13a   :  { %388 = vperm.xlu1 %6444, %v191_v30  }
 0x13b   :  { %777 = vperm.xlu0 %6470, %v7271_v16  }
 0x13e   :  { %393 = vperm.xlu1 %6444, %v7256_v10  }
 0x13f   :  { %789 = vperm.xlu0 %6470, %v7303_v31  }
 0x142   :  { %6445 = vset.pattern.permute.xlu1 %v8611_v1 }
 0x143   :  { %765 = vperm.xlu1 %6445, %v7256_v10   ;;  %793 = vperm.xlu0 %6470, %v7307_v32  }
 0x147   :  { %6446 = vset.pattern.permute.xlu1 %v8601_v0  ;;  %809 = vperm.xlu0 %6470, %v7282_v20  }
 0x148   :  { %1145 = vperm.xlu1 %6446, %v190_v29   ;;  %v1098_v34 = vpop.permute.xlu0 %1097 }
 0x149   :  { %v706_v33 = vpop.permute.xlu1 %705  ;;  %v1353_v11 = vmul.f32 %v7372_v62, %v1098_v34 }
 0x14a   :  { %v964_v5 = vmul.f32 %v7364_v60, %v706_v33 }
 0x14b   :  { %821 = vperm.xlu0 %6470, %v7314_v35  }
 0x14c   :  { %1149 = vperm.xlu1 %6446, %v191_v30   ;;  %v7317_v37 = vpop.permute.xlu0 %1109 }
 0x14d   :  { %v710_v36 = vpop.permute.xlu1 %709 }
 0x14f   :  { %825 = vperm.xlu0 %6470, %v7319_v38  }
 0x150   :  { %6447 = vset.pattern.permute.xlu1 %v8603_v2  ;;  %v7323_v40 = vpop.permute.xlu0 %1121 }
 0x151   :  { %398 = vperm.xlu1 %6447, %v193_v39  }
 0x152   :  { %v7325_v41 = vpop.permute.xlu1 %333 }
 0x153   :  { %841 = vperm.xlu0 %6470, %v7292_v24  }
 0x154   :  { %v7329_v42 = vpop.permute.xlu0 %1129 }
 0x155   :  { %6448 = vset.pattern.permute.xlu1 %v8611_v1 }
 0x156   :  { %769 = vperm.xlu1 %6448, %v193_v39  }
 0x157   :  { %v7333_v45 = vpop.permute.xlu1 %717  ;;  %853 = vperm.xlu0 %6470, %v7331_v43  }
 0x158   :  { %v7336_v46 = vpop.permute.xlu0 %1141  ;;  %v967_v56 = vmul.f32 %v7364_v60, %v7333_v45 }
 0x15a   :  { %773 = vperm.xlu1 %6448, %v7260_v12   ;;  %v965_v12 = vmul.f32 %v7364_v60, %v710_v36 }
 0x15b   :  { %857 = vperm.xlu0 %6470, %v7338_v47  }
 0x15c   :  { %v1094_v49 = vpop.permute.xlu1 %1093  ;;  %v7344_v51 = vpop.permute.xlu0 %1153 }
 0x15d   :  { %v1352_v7 = vmul.f32 %v7372_v62, %v1094_v49 }
 0x15e   :  { %6449 = vset.pattern.permute.xlu1 %v8603_v2 }
 0x15f   :  { %413 = vperm.xlu1 %6449, %v196_v50   ;;  %873 = vperm.xlu0 %6470, %v7346_v52  }
 0x160   :  { %v7352_v55 = vpop.permute.xlu1 %1101  ;;  %v7359_v58 = vpop.permute.xlu0 %1161 }
 0x163   :  { %6450 = vset.pattern.permute.xlu1 %v8611_v1  ;;  %885 = vperm.xlu0 %6470, %v7361_v59   ;;  %v7492_v59 = vld [vmem:[#allocation3 + $0xd8] sm:$0xff] }
 0x164   :  { %781 = vperm.xlu1 %6450, %v196_v50   ;;  %v7367_v61 = vpop.permute.xlu1 %1105 }
 0x165   :  { %v319_v4 = vpop.permute.xlu0 %318  ;;  %v1355_v53 = vmul.f32 %v7372_v62, %v7367_v61  ;;  %v7494_v61 = vld [vmem:[#allocation3 + $0x1c8] sm:$0xff] }
 0x166   :  { %v640_v6 = vmul.f32 %v7375_v63, %v319_v4 }
 0x167   :  { %889 = vperm.xlu0 %6470, %v223_v3  }
 0x168   :  { %6451 = vset.pattern.permute.xlu1 %v8601_v0  ;;  %v1028_v8 = vadd.f32 %v964_v5, %v640_v6  ;;  %v7428_v6 = vld [vmem:[#allocation3 + $0x120] sm:$0xff] }
 0x169   :  { %1157 = vperm.xlu1 %6451, %v193_v39   ;;  %v7381_v9 = vpop.permute.xlu1 %343  ;;  %v324_v10 = vpop.permute.xlu0 %323 }
 0x16a   :  { %v1416_v13 = vadd.f32 %v1352_v7, %v1028_v8  ;;  %v641_v14 = vmul.f32 %v7375_v63, %v324_v10  ;;  %v7435_v8 = vld [vmem:[#allocation3 + $0x138] sm:$0xff] }
 0x16b   :  { %6487 = vset.pattern.permute.xlu0 %v8601_v0  ;;  %8625 = vst [vmem:[#allocation34_spill] sm:$0xff] %v7435_v8 }
 0x16c   :  { %v1029_v15 = vadd.f32 %v965_v12, %v641_v14  ;;  %1173 = vperm.xlu0 %6487, %v7273_v17   ;;  %v1486_v27 = vadd.f32 %v7389_v18, %v1416_v13  ;;  %v7441_v12 = vld [vmem:[#allocation3 + $0x148] sm:$0xff]  ;;  %v7448_v14 = vld [vmem:[#allocation3 + $0x160] sm:$0xff] }
 0x16d   :  { %1165 = vperm.xlu1 %6451, %v7271_v16   ;;  %v7391_v22 = vpop.permute.xlu0 %328 }
 0x16e   :  { %v7393_v25 = vpop.permute.xlu1 %721  ;;  %v1417_v26 = vadd.f32 %v1353_v11, %v1029_v15  ;;  %v1550_v16 = vmax.f32 %v1486_v27, 0.0  ;;  %v7454_v27 = vld [vmem:[#allocation3 + $0x178] sm:$0xff] }
 0x16f   :  { %8628 = vst [vmem:[#allocation37_spill] sm:$0xff] %v7454_v27  ;;  %v968_v45 = vmul.f32 %v7364_v60, %v7393_v25 }
 0x170   :  { %v1487_v29 = vadd.f32 %v7389_v18, %v1417_v26  ;;  %1185 = vperm.xlu0 %6487, %v200_v28  }
 0x171   :  { %1169 = vperm.xlu1 %6451, %v196_v50   ;;  %v7397_v30 = vpop.permute.xlu0 %338 }
 0x172   :  { %v1551_v34 = vmax.f32 %v1487_v29, 0.0  ;;  %v7456_v29 = vld [vmem:[#allocation3 + $0xc0] sm:$0xff] }
 0x173   :  { %v7399_v33 = vpop.permute.xlu1 %348 }
 0x174   :  { %v1614_v36 = vpack.c.bf16 %v1551_v34, %v1550_v16  ;;  %1193 = vperm.xlu0 %6487, %v7277_v19   ;;  %v7462_v16 = vld [vmem:[#allocation3 + $0x188] sm:$0xff] }
 0x175   :  { %6453 = vset.pattern.permute.xlu1 %v8603_v2  ;;  %v7404_v39 = vpop.permute.xlu0 %363 }
 0x176   :  { %423 = vperm.xlu1 %6453, %v7303_v31   ;;  %6326 = vmatprep.mubr.msk.bf16.mxu0 %vm1676_vm0, %v1614_v36  ;;  %v7470_v36 = vld [vmem:[#allocation3 + $0x1a0] sm:$0xff] }
 0x177   :  { %v7407_v44 = vpop.permute.xlu1 %353 }
 0x178   :  { %1205 = vperm.xlu0 %6487, %v7285_v21  }
 0x179   :  { %v7411_v49 = vpop.permute.xlu0 %368 }
 0x17a   :  { %6454 = vset.pattern.permute.xlu1 %v8611_v1 }
 0x17b   :  { %785 = vperm.xlu1 %6454, %v7273_v17  }
 0x17c   :  { %v7414_v50 = vpop.permute.xlu1 %733  ;;  %1217 = vperm.xlu0 %6487, %v7416_v54  }
 0x17d   :  { %v7419_v3 = vpop.permute.xlu0 %378 }
 0x17f   :  { %6455 = vset.pattern.permute.xlu1 %v8603_v2 }
 0x180   :  { %428 = vperm.xlu1 %6455, %v7307_v32   ;;  %1225 = vperm.xlu0 %6487, %v7289_v23  }
 0x181   :  { %v7423_v4 = vpop.permute.xlu1 %1113  ;;  %v7426_v5 = vpop.permute.xlu0 %403 }
 0x184   :  { %433 = vperm.xlu1 %6455, %v200_v28   ;;  %1237 = vperm.xlu0 %6487, %v7428_v6  }
 0x185   :  { %v7430_v17 = vpop.permute.xlu1 %1117  ;;  %v7433_v7 = vpop.permute.xlu0 %408 }
 0x188   :  { %6456 = vset.pattern.permute.xlu1 %v8611_v1  ;;  %1249 = vperm.xlu0 %6487, %v7435_v8  }
 0x189   :  { %797 = vperm.xlu1 %6456, %v200_v28   ;;  %v7439_v11 = vpop.permute.xlu0 %418 }
 0x18a   :  { %v359_v10 = vpop.permute.xlu1 %358 }
 0x18c   :  { %1257 = vperm.xlu0 %6487, %v7441_v12  }
 0x18d   :  { %6457 = vset.pattern.permute.xlu1 %v8601_v0  ;;  %v7446_v13 = vpop.permute.xlu0 %443 }
 0x18e   :  { %1177 = vperm.xlu1 %6457, %v7303_v31   ;;  %8626 = vst [vmem:[#allocation35_spill] sm:$0xff] %v7446_v13  ;;  %v645_v13 = vmul.f32 %v7375_v63, %v7381_v9 }
 0x18f   :  { %v738_v15 = vpop.permute.xlu1 %737 }
 0x190   :  { %1269 = vperm.xlu0 %6487, %v7448_v14   ;;  %v972_v25 = vmul.f32 %v7364_v60, %v738_v15  ;;  %v648_v15 = vmul.f32 %v7375_v63, %v359_v10 }
 0x191   :  { %v7452_v26 = vpop.permute.xlu0 %448 }
 0x192   :  { %1181 = vperm.xlu1 %6457, %v7307_v32   ;;  %8627 = vst [vmem:[#allocation36_spill] sm:$0xff] %v7452_v26  ;;  %v1036_v47 = vadd.f32 %v972_v25, %v648_v15 }
 0x193   :  { %v742_v28 = vpop.permute.xlu1 %741 }
 0x194   :  { %1281 = vperm.xlu0 %6487, %v7454_v27  }
 0x195   :  { %v7460_v31 = vpop.permute.xlu0 %458 }
 0x196   :  { %6458 = vset.pattern.permute.xlu1 %v8603_v2  ;;  %8629 = vst [vmem:[#allocation38_spill] sm:$0xff] %v7460_v31  ;;  %v643_v2 = vmul.f32 %v7375_v63, %v7325_v41  ;;  %v642_v41 = vmul.f32 %v7375_v63, %v7391_v22  ;;  %v647_v22 = vmul.f32 %v7375_v63, %v7407_v44 }
 0x197   :  { %438 = vperm.xlu1 %6458, %v7456_v29  }
 0x198   :  { %v7465_v34 = vpop.permute.xlu1 %373  ;;  %1289 = vperm.xlu0 %6487, %v7462_v16  }
 0x199   :  { %v7468_v32 = vpop.permute.xlu0 %483 }
 0x19a   :  { %8630 = vst [vmem:[#allocation39_spill] sm:$0xff] %v7468_v32  ;;  %v1031_v32 = vadd.f32 %v967_v56, %v643_v2  ;;  %v971_v2 = vmul.f32 %v7364_v60, %v7414_v50  ;;  %v8632_v56 = vmov 0  }
 0x19b   :  { %6459 = vset.pattern.permute.xlu1 %v8611_v1  ;;  %v644_v1 = vmul.f32 %v7375_v63, %v7397_v30 }
 0x19c   :  { %801 = vperm.xlu1 %6459, %v7456_v29   ;;  %1301 = vperm.xlu0 %6487, %v7470_v36   ;;  %v1419_v27 = vadd.f32 %v1355_v53, %v1031_v32  ;;  %v973_v32 = vmul.f32 %v7364_v60, %v742_v28  ;;  %v1035_v44 = vadd.f32 %v971_v2, %v647_v22 }
 0x19d   :  { %v7476_v0 = vpop.permute.xlu1 %749  ;;  %v7483_v57 = vpop.permute.xlu0 %488  ;;  %v1032_v30 = vadd.f32 %v968_v45, %v644_v1  ;;  %v1359_v1 = vmul.f32 %v7372_v62, %v7323_v40 }
 0x19e   :  { %8631 = vst [vmem:[#allocation40_spill] sm:$0xff] %v7483_v57  ;;  %v1356_v57 = vmul.f32 %v7372_v62, %v7317_v37  ;;  %v1354_v37 = vmul.f32 %v7372_v62, %v7352_v55  ;;  %v1361_v55 = vmul.f32 %v7372_v62, %v7329_v42 }
 0x1a0   :  { %805 = vperm.xlu1 %6459, %v7277_v19   ;;  %1313 = vperm.xlu0 %6487, %v232_v48   ;;  %v649_v48 = vmul.f32 %v7375_v63, %v7404_v39  ;;  %v1489_v39 = vadd.f32 %v7389_v18, %v1419_v27 }
 0x1a2   :  { %v1126_v31 = vpop.permute.xlu1 %1125  ;;  %v714_v19 = vpop.permute.xlu0 %713  ;;  %v1037_v27 = vadd.f32 %v973_v32, %v649_v48 }
 0x1a3   :  { %v966_v53 = vmul.f32 %v7364_v60, %v714_v19  ;;  %v1420_v19 = vadd.f32 %v1356_v57, %v1032_v30  ;;  %v1360_v28 = vmul.f32 %v7372_v62, %v1126_v31  ;;  %v1357_v57 = vmul.f32 %v7372_v62, %v7423_v4 }
 0x1a4   :  { %6460 = vset.pattern.permute.xlu1 %v8632_v56  ;;  %1321 = vperm.xlu0 %6487, %v7494_v61   ;;  %v1423_v30 = vadd.f32 %v1359_v1, %v1035_v44  ;;  %v1425_v32 = vadd.f32 %v1361_v55, %v1037_v27 }
 0x1a5   :  { %453 = vperm.xlu1 %6460, %v7492_v59   ;;  %v1030_v50 = vadd.f32 %v966_v53, %v642_v41  ;;  %v8633_v41 = vmov 1   ;;  %v1490_v42 = vadd.f32 %v7389_v18, %v1420_v19  ;;  %v1424_v2 = vadd.f32 %v1360_v28, %v1036_v47 }
 0x1a6   :  { %v1134_v45 = vpop.permute.xlu1 %1133  ;;  %v726_v26 = vpop.permute.xlu0 %725  ;;  %v646_v53 = vmul.f32 %v7375_v63, %v7399_v33  ;;  %v1493_v19 = vadd.f32 %v7389_v18, %v1423_v30  ;;  %v1495_v27 = vadd.f32 %v7389_v18, %v1425_v32 }
 0x1a7   :  { %v1418_v8 = vadd.f32 %v1354_v37, %v1030_v50  ;;  %v969_v40 = vmul.f32 %v7364_v60, %v726_v26  ;;  %v1553_v26 = vmax.f32 %v1489_v39, 0.0  ;;  %v975_v37 = vmul.f32 %v7364_v60, %v7476_v0 }
 0x1a8   :  { %6505 = vset.pattern.permute.xlu0 %v8632_v56  ;;  %v8634_v39 = vmov 2   ;;  %v1554_v50 = vmax.f32 %v1490_v42, 0.0 }
 0x1a9   :  { %6461 = vset.pattern.permute.xlu1 %v8633_v41  ;;  %v1488_v10 = vadd.f32 %v7389_v18, %v1418_v8  ;;  %v1033_v31 = vadd.f32 %v969_v40, %v645_v13  ;;  %498 = vperm.xlu0 %6505, %v7428_v6   ;;  %v650_v8 = vmul.f32 %v7375_v63, %v7411_v49 }
 0x1aa   :  { %813 = vperm.xlu1 %6461, %v7492_v59   ;;  %v1138_v9 = vpop.permute.xlu1 %1137  ;;  %v730_v48 = vpop.permute.xlu0 %729  ;;  %v1358_v13 = vmul.f32 %v7372_v62, %v7430_v17  ;;  %v651_v49 = vmul.f32 %v7375_v63, %v7465_v34  ;;  %v1494_v17 = vadd.f32 %v7389_v18, %v1424_v2 }
 0x1ab   :  { %v1552_v22 = vmax.f32 %v1488_v10, 0.0  ;;  %v1421_v25 = vadd.f32 %v1357_v57, %v1033_v31  ;;  %v970_v4 = vmul.f32 %v7364_v60, %v730_v48  ;;  %v1363_v28 = vmul.f32 %v7372_v62, %v1138_v9 }
 0x1ac   :  { %v1039_v57 = vadd.f32 %v975_v37, %v651_v49  ;;  %v1362_v10 = vmul.f32 %v7372_v62, %v1134_v45  ;;  %v1557_v9 = vmax.f32 %v1493_v19, 0.0  ;;  %v1364_v19 = vmul.f32 %v7372_v62, %v7336_v46 }
 0x1ad   :  { %v1491_v47 = vadd.f32 %v7389_v18, %v1421_v25  ;;  %v1034_v1 = vadd.f32 %v970_v4, %v646_v53  ;;  %v1615_v33 = vpack.c.bf16 %v1553_v26, %v1552_v22  ;;  %523 = vperm.xlu0 %6505, %v7441_v12   ;;  %v1559_v53 = vmax.f32 %v1495_v27, 0.0 }
 0x1ae   :  { %6462 = vset.pattern.permute.xlu1 %v8634_v39  ;;  %v746_v44 = vpop.permute.xlu0 %745  ;;  %v1427_v42 = vadd.f32 %v1363_v28, %v1039_v57 }
 0x1af   :  { %1189 = vperm.xlu1 %6462, %v7456_v29   ;;  %v384_v0 = vpop.permute.xlu1 %383  ;;  %v1555_v15 = vmax.f32 %v1491_v47, 0.0  ;;  %v1422_v40 = vadd.f32 %v1358_v13, %v1034_v1  ;;  %v974_v55 = vmul.f32 %v7364_v60, %v746_v44  ;;  %6327 = vmatmul.mubr.msk.bf16.vlgmr.msra.gmra.mrb[0].mxu0 %vm1676_vm0, %v1615_v33  ;;  %v1558_v29 = vmax.f32 %v1494_v17, 0.0 }
 0x1b1   :  { %v1492_v34 = vadd.f32 %v7389_v18, %v1422_v40  ;;  %v1038_v31 = vadd.f32 %v974_v55, %v650_v8  ;;  %v1616_v26 = vpack.c.bf16 %v1555_v15, %v1554_v50  ;;  %528 = vperm.xlu0 %6505, %v7346_v52   ;;  %v1618_v4 = vpack.c.bf16 %v1559_v53, %v1558_v29 }
 0x1b2   :  { %v758_v22 = vpop.permute.xlu0 %757  ;;  %v1497_v8 = vadd.f32 %v7389_v18, %v1427_v42  ;;  %v1367_v40 = vmul.f32 %v7372_v62, %v7344_v51 }
 0x1b3   :  { %1197 = vperm.xlu1 %6462, %v7282_v20   ;;  %v1556_v30 = vmax.f32 %v1492_v34, 0.0  ;;  %v1426_v2 = vadd.f32 %v1362_v10, %v1038_v31  ;;  %6330 = vmatprep.mubr.msk.bf16.mxu0 %vm1676_vm0, %v1616_v26 }
 0x1b4   :  { %v754_v48 = vpop.permute.xlu1 %753  ;;  %v1561_v37 = vmax.f32 %v1497_v8, 0.0 }
 0x1b5   :  { %v1496_v45 = vadd.f32 %v7389_v18, %v1426_v2  ;;  %v1617_v25 = vpack.c.bf16 %v1557_v9, %v1556_v30  ;;  %538 = vperm.xlu0 %6505, %v7448_v14   ;;  %v976_v33 = vmul.f32 %v7364_v60, %v754_v48 }
 0x1b6   :  { %v762_v20 = vpop.permute.xlu0 %761 }
 0x1b7   :  { %1201 = vperm.xlu1 %6462, %v7492_v59   ;;  %6331 = vmatmul.mubr.msk.bf16.gmra.mrb[4].mxu0 %vm1676_vm0, %v1617_v25  ;;  %v1560_v32 = vmax.f32 %v1496_v45, 0.0  ;;  %v652_v59 = vmul.f32 %v7375_v63, %v7419_v3  ;;  %v977_v3 = vmul.f32 %v7364_v60, %v758_v22  ;;  %v978_v10 = vmul.f32 %v7364_v60, %v762_v20 }
 0x1b8   :  { %6334 = vmatprep.mubr.msk.bf16.mxu0 %vm1676_vm0, %v1618_v4 }
 0x1b9   :  { %v389_v13 = vpop.permute.xlu1 %388  ;;  %563 = vperm.xlu0 %6505, %v7462_v16   ;;  %v1619_v50 = vpack.c.bf16 %v1561_v37, %v1560_v32  ;;  %v1040_v49 = vadd.f32 %v976_v33, %v652_v59  ;;  %v7607_v33 = vld [vmem:[#allocation3 + $0x100] sm:$0xff] }
 0x1ba   :  { %v7565_v1 = vpop.permute.xlu0 %777  ;;  %v654_v34 = vmul.f32 %v7375_v63, %v389_v13 }
 0x1bb   :  { %6463 = vset.pattern.permute.xlu1 %v8632_v56  ;;  %v1428_v55 = vadd.f32 %v1364_v19, %v1040_v49 }
 0x1bc   :  { %463 = vperm.xlu1 %6463, %v7314_v35   ;;  %v1042_v42 = vadd.f32 %v978_v10, %v654_v34  ;;  %v256_v34 = vld [vmem:[#allocation12 + $0x20] sm:$0xff] }
 0x1bd   :  { %v394_v47 = vpop.permute.xlu1 %393  ;;  %v1498_v29 = vadd.f32 %v7389_v18, %v1428_v55 }
 0x1be   :  { %v7576_v15 = vpop.permute.xlu0 %789  ;;  %v655_v28 = vmul.f32 %v7375_v63, %v394_v47 }
 0x1bf   :  { %6335 = vmatmul.mubr.msk.bf16.gmra.mrb[8].mxu0 %vm1676_vm0, %v1619_v50  ;;  %v1562_v48 = vmax.f32 %v1498_v29, 0.0 }
 0x1c0   :  { %6464 = vset.pattern.permute.xlu1 %v8633_v41 }
 0x1c1   :  { %817 = vperm.xlu1 %6464, %v7285_v21   ;;  %v653_v21 = vmul.f32 %v7375_v63, %v384_v0 }
 0x1c2   :  { %v766_v17 = vpop.permute.xlu1 %765  ;;  %v7588_v26 = vpop.permute.xlu0 %793 }
 0x1c3   :  { %v979_v44 = vmul.f32 %v7364_v60, %v766_v17  ;;  %v1041_v57 = vadd.f32 %v977_v3, %v653_v21 }
 0x1c5   :  { %6465 = vset.pattern.permute.xlu1 %v8632_v56  ;;  %v1043_v27 = vadd.f32 %v979_v44, %v655_v28 }
 0x1c6   :  { %468 = vperm.xlu1 %6465, %v7319_v38   ;;  %v7597_v25 = vpop.permute.xlu0 %809 }
 0x1c7   :  { %v1146_v46 = vpop.permute.xlu1 %1145  ;;  %v1431_v9 = vadd.f32 %v1367_v40, %v1043_v27  ;;  %v982_v40 = vmul.f32 %v7364_v60, %v7565_v1 }
 0x1c8   :  { %v1365_v31 = vmul.f32 %v7372_v62, %v1146_v46 }
 0x1c9   :  { %v1501_v53 = vadd.f32 %v7389_v18, %v1431_v9 }
 0x1ca   :  { %v1429_v51 = vadd.f32 %v1365_v31, %v1041_v57  ;;  %473 = vperm.xlu1 %6465, %v7416_v54   ;;  %v7603_v59 = vpop.permute.xlu0 %821  ;;  %v7631_v57 = vld [vmem:[#allocation3 + $0x118] sm:$0xff] }
 0x1cb   :  { %v1150_v0 = vpop.permute.xlu1 %1149  ;;  %v1565_v13 = vmax.f32 %v1501_v53, 0.0 }
 0x1cc   :  { %v1499_v30 = vadd.f32 %v7389_v18, %v1429_v51  ;;  %v1366_v2 = vmul.f32 %v7372_v62, %v1150_v0 }
 0x1ce   :  { %v1563_v22 = vmax.f32 %v1499_v30, 0.0  ;;  %v1430_v45 = vadd.f32 %v1366_v2, %v1042_v42  ;;  %6466 = vset.pattern.permute.xlu1 %v8633_v41  ;;  %v7609_v50 = vpop.permute.xlu0 %825 }
 0x1cf   :  { %829 = vperm.xlu1 %6466, %v7416_v54  }
 0x1d0   :  { %v1500_v4 = vadd.f32 %v7389_v18, %v1430_v45  ;;  %v399_v8 = vpop.permute.xlu1 %398  ;;  %v1620_v20 = vpack.c.bf16 %v1563_v22, %v1562_v48  ;;  %v7642_v48 = vld [vmem:[#allocation3 + $0x190] sm:$0xff]  ;;  %v260_v22 = vld [vmem:[#allocation12 + $0x40] sm:$0xff] }
 0x1d1   :  { %v656_v21 = vmul.f32 %v7375_v63, %v399_v8  ;;  %568 = vperm.xlu0 %6505, %v7642_v48   ;;  %v264_v45 = vld [vmem:[#allocation12 + $0x60] sm:$0xff] }
 0x1d2   :  { %v1564_v32 = vmax.f32 %v1500_v4, 0.0  ;;  %6338 = vmatprep.mubr.msk.bf16.mxu0 %vm1676_vm0, %v1620_v20  ;;  %v7617_v17 = vpop.permute.xlu0 %841 }
 0x1d3   :  { %6467 = vset.pattern.permute.xlu1 %v8634_v39 }
 0x1d4   :  { %1209 = vperm.xlu1 %6467, %v7314_v35   ;;  %v1621_v37 = vpack.c.bf16 %v1565_v13, %v1564_v32  ;;  %v657_v35 = vmul.f32 %v7375_v63, %v7426_v5  ;;  %v658_v5 = vmul.f32 %v7375_v63, %v7433_v7  ;;  %v6058_v13 = vcombine.high %v260_v22, %v264_v45 }
 0x1d5   :  { %v770_v47 = vpop.permute.xlu1 %769  ;;  %578 = vperm.xlu0 %6505, %v7470_v36   ;;  %v276_v36 = vld [vmem:[#allocation12 + $0xc0] sm:$0xff] }
 0x1d6   :  { %6339 = vmatmul.mubr.msk.bf16.gmra.mrb[12].mxu0 %vm1676_vm0, %v1621_v37  ;;  %v980_v28 = vmul.f32 %v7364_v60, %v770_v47  ;;  %v7629_v27 = vpop.permute.xlu0 %853  ;;  %v1046_v31 = vadd.f32 %v982_v40, %v658_v5  ;;  %v6057_v37 = vcombine.low %v260_v22, %v264_v45  ;;  %v304_v45 = vld [vmem:[#allocation12 + $0x1a0] sm:$0xff] }
 0x1d8   :  { %1213 = vperm.xlu1 %6467, %v7319_v38   ;;  %v1369_v38 = vmul.f32 %v7372_v62, %v7359_v58  ;;  %v1044_v58 = vadd.f32 %v980_v28, %v656_v21 }
 0x1d9   :  { %v774_v54 = vpop.permute.xlu1 %773  ;;  %603 = vperm.xlu0 %6505, %v7494_v61   ;;  %v288_v61 = vld [vmem:[#allocation12 + $0x120] sm:$0xff] }
 0x1da   :  { %v981_v49 = vmul.f32 %v7364_v60, %v774_v54  ;;  %v7639_v30 = vpop.permute.xlu0 %857 }
 0x1dc   :  { %6468 = vset.pattern.permute.xlu1 %v8632_v56  ;;  %v1045_v44 = vadd.f32 %v981_v49, %v657_v35  ;;  %v272_v49 = vld [vmem:[#allocation12 + $0xa0] sm:$0xff] }
 0x1dd   :  { %478 = vperm.xlu1 %6468, %v7607_v33  }
 0x1de   :  { %v414_v19 = vpop.permute.xlu1 %413  ;;  %v1433_v55 = vadd.f32 %v1369_v38, %v1045_v44  ;;  %v7651_v44 = vpop.permute.xlu0 %873 }
 0x1df   :  { %v659_v53 = vmul.f32 %v7375_v63, %v414_v19  ;;  %v268_v19 = vld [vmem:[#allocation12 + $0x80] sm:$0xff] }
 0x1e0   :  { %v1503_v7 = vadd.f32 %v7389_v18, %v1433_v55  ;;  %v6066_v28 = vcombine.high %v268_v19, %v272_v49  ;;  %v6065_v5 = vcombine.low %v268_v19, %v272_v49  ;;  %v280_v55 = vld [vmem:[#allocation12 + $0xe0] sm:$0xff] }
 0x1e1   :  { %6469 = vset.pattern.permute.xlu1 %v8633_v41 }
 0x1e2   :  { %833 = vperm.xlu1 %6469, %v7607_v33   ;;  %v1567_v4 = vmax.f32 %v1503_v7, 0.0  ;;  %v7663_v7 = vld [vmem:[#allocation3 + $0x1d0] sm:$0xff] }
 0x1e3   :  { %v782_v3 = vpop.permute.xlu1 %781  ;;  %608 = vperm.xlu0 %6505, %v7663_v7  }
 0x1e4   :  { %v983_v0 = vmul.f32 %v7364_v60, %v782_v3 }
 0x1e6   :  { %837 = vperm.xlu1 %6469, %v7289_v23   ;;  %v252_v23 = vld [vmem:[#allocation12] sm:$0xff]  ;;  %v1047_v47 = vadd.f32 %v983_v0, %v659_v53 }
 0x1e7   :  { %v6050_v1 = vcombine.high %v252_v23, %v256_v34  ;;  %v6049_v51 = vcombine.low %v252_v23, %v256_v34  ;;  %v6073_v23 = vcombine.low %v276_v36, %v280_v55  ;;  %v7660_v34 = vpop.permute.xlu0 %885  ;;  %v296_v0 = vld [vmem:[#allocation12 + $0x160] sm:$0xff] }
 0x1e8   :  { %v1158_v46 = vpop.permute.xlu1 %1157 }
 0x1e9   :  { %v1368_v10 = vmul.f32 %v7372_v62, %v1158_v46  ;;  %2478 = vmatprep.subr.bf16.mxu1 %v6050_v1 }
 0x1ea   :  { %6471 = vset.pattern.permute.xlu1 %v8632_v56  ;;  %2479 = vmatpush1.bf16.msra.mxu1 %v6049_v51  ;;  %v7668_v51 = vld [vmem:[#allocation3 + $0x1e0] sm:$0xff] }
 0x1eb   :  { %v1432_v29 = vadd.f32 %v1368_v10, %v1044_v58  ;;  %493 = vperm.xlu1 %6471, %v7631_v57   ;;  %2480 = vmatprep.subr.bf16.mxu1 %v6058_v13  ;;  %v6074_v10 = vcombine.high %v276_v36, %v280_v55 }
 0x1ec   :  { %v1166_v9 = vpop.permute.xlu1 %1165  ;;  %618 = vperm.xlu0 %6505, %v7668_v51  }
 0x1ed   :  { %v1502_v42 = vadd.f32 %v7389_v18, %v1432_v29  ;;  %v1370_v2 = vmul.f32 %v7372_v62, %v1166_v9  ;;  %v284_v29 = vld [vmem:[#allocation12 + $0x100] sm:$0xff] }
 0x1ee   :  { %2481 = vmatpush1.bf16.msra.mxu1 %v6057_v37  ;;  %v6082_v1 = vcombine.high %v284_v29, %v288_v61  ;;  %v6081_v9 = vcombine.low %v284_v29, %v288_v61 }
 0x1ef   :  { %v1566_v8 = vmax.f32 %v1502_v42, 0.0  ;;  %v1434_v20 = vadd.f32 %v1370_v2, %v1046_v31  ;;  %6472 = vset.pattern.permute.xlu1 %v8633_v41  ;;  %2482 = vmatprep.subr.bf16.mxu1 %v6066_v28  ;;  %v7671_v42 = vpop.permute.xlu0 %889 }
 0x1f0   :  { %845 = vperm.xlu1 %6472, %v7631_v57   ;;  %v1170_v32 = vpop.permute.xlu1 %1169  ;;  %6506 = vset.pattern.permute.xlu0 %v8633_v41 }
 0x1f1   :  { %v1371_v54 = vmul.f32 %v7372_v62, %v1170_v32  ;;  %v1622_v35 = vpack.c.bf16 %v1567_v4, %v1566_v8  ;;  %v1504_v38 = vadd.f32 %v7389_v18, %v1434_v20  ;;  %v660_v20 = vmul.f32 %v7375_v63, %v7439_v11  ;;  %905 = vperm.xlu0 %6506, %v7642_v48  }
 0x1f2   :  { %2483 = vmatpush1.bf16.msra.mxu1 %v6065_v5  ;;  %v985_v5 = vmul.f32 %v7364_v60, %v7576_v15  ;;  %v986_v15 = vmul.f32 %v7364_v60, %v7588_v26 }
 0x1f3   :  { %v1435_v3 = vadd.f32 %v1371_v54, %v1047_v47  ;;  %6342 = vmatprep.mubr.msk.bf16.mxu0 %vm1676_vm0, %v1622_v35  ;;  %v1568_v46 = vmax.f32 %v1504_v38, 0.0  ;;  %2484 = vmatprep.subr.bf16.mxu1 %v6074_v10  ;;  %v1174_v37 = vpop.permute.xlu0 %1173  ;;  %v308_v47 = vld [vmem:[#allocation12 + $0x1c0] sm:$0xff] }
 0x1f4   :  { %6473 = vset.pattern.permute.xlu1 %v8634_v39  ;;  %v312_v54 = vld [vmem:[#allocation12 + $0x1e0] sm:$0xff]  ;;  %v1372_v49 = vmul.f32 %v7372_v62, %v1174_v37 }
 0x1f5   :  { %v1505_v40 = vadd.f32 %v7389_v18, %v1435_v3  ;;  %1221 = vperm.xlu1 %6473, %v7607_v33   ;;  %v7657_v21 = vpop.permute.xlu1 %423  ;;  %v6106_v35 = vcombine.high %v308_v47, %v312_v54  ;;  %v6105_v11 = vcombine.low %v308_v47, %v312_v54 }
 0x1f6   :  { %2485 = vmatpush1.bf16.msra.mxu1 %v6073_v23  ;;  %v7692_v23 = vld [vmem:[#allocation3 + $0x1a8] sm:$0xff] }
 0x1f7   :  { %v1569_v58 = vmax.f32 %v1505_v40, 0.0  ;;  %2486 = vmatprep.subr.bf16.mxu1 %v6082_v1  ;;  %v1186_v28 = vpop.permute.xlu0 %1185  ;;  %v661_v40 = vmul.f32 %v7375_v63, %v7657_v21  ;;  %917 = vperm.xlu0 %6506, %v7692_v23  }
 0x1f9   :  { %1229 = vperm.xlu1 %6473, %v7292_v24   ;;  %v1623_v31 = vpack.c.bf16 %v1569_v58, %v1568_v46  ;;  %v292_v24 = vld [vmem:[#allocation12 + $0x140] sm:$0xff]  ;;  %v1375_v46 = vmul.f32 %v7372_v62, %v1186_v28  ;;  %v8635_v58 = vld [vmem:[#allocation29_spill] sm:$0xff] }
 0x1fa   :  { %v786_v33 = vpop.permute.xlu1 %785  ;;  %2487 = vmatpush1.bf16.msra.mxu1 %v6081_v9  ;;  %v6090_v53 = vcombine.high %v292_v24, %v296_v0  ;;  %v6089_v22 = vcombine.low %v292_v24, %v296_v0  ;;  %v8636_v9 = vld [vmem:[#allocation34_spill] sm:$0xff] }
 0x1fb   :  { %6343 = vmatmul.mubr.msk.bf16.gmra.mrb[16].mxu0 %vm1676_vm0, %v1623_v31  ;;  %v984_v13 = vmul.f32 %v7364_v60, %v786_v33  ;;  %v1049_v31 = vadd.f32 %v985_v5, %v661_v40 }
 0x1fc   :  { %2488 = vmatprep.subr.bf16.mxu1 %v6090_v53 }
 0x1fd   :  { %1233 = vperm.xlu1 %6473, %v7631_v57   ;;  %v300_v57 = vld [vmem:[#allocation12 + $0x180] sm:$0xff]  ;;  %v1048_v19 = vadd.f32 %v984_v13, %v660_v20  ;;  %v7707_v13 = vld [vmem:[#allocation3 + $0x1b0] sm:$0xff] }
 0x1fe   :  { %2489 = vmatpush1.bf16.msra.mxu1 %v6089_v22  ;;  %v6098_v8 = vcombine.high %v300_v57, %v304_v45  ;;  %v6097_v32 = vcombine.low %v300_v57, %v304_v45  ;;  %921 = vperm.xlu0 %6506, %v7707_v13  }
 0x1ff   :  { %v429_v2 = vpop.permute.xlu1 %428 }
 0x200   :  { %2490 = vmatprep.subr.bf16.mxu1 %v6098_v8  ;;  %v662_v21 = vmul.f32 %v7375_v63, %v429_v2 }
 0x201   :  { %6474 = vset.pattern.permute.xlu1 %v8632_v56 }
 0x202   :  { %503 = vperm.xlu1 %6474, %v7331_v43   ;;  %2491 = vmatpush1.bf16.msra.mxu1 %v6097_v32  ;;  %v1050_v0 = vadd.f32 %v986_v15, %v662_v21 }
 0x203   :  { %v434_v4 = vpop.permute.xlu1 %433  ;;  %2492 = vmatprep.subr.bf16.mxu1 %v6106_v35  ;;  %937 = vperm.xlu0 %6506, %v7663_v7  }
 0x204   :  { %v663_v36 = vmul.f32 %v7375_v63, %v434_v4 }
 0x206   :  { %6475 = vset.pattern.permute.xlu1 %v8633_v41  ;;  %2493 = vmatpush1.bf16.msra.mxu1 %v6105_v11 }
 0x207   :  { %849 = vperm.xlu1 %6475, %v7428_v6   ;;  %v1436_v6 = vadd.f32 %v1372_v49, %v1048_v19  ;;  %v217_v19 = vld [vmem:[#allocation3 + $0x140] sm:$0xff] }
 0x208   :  { %v798_v38 = vpop.permute.xlu1 %797 }
 0x209   :  { %v987_v3 = vmul.f32 %v7364_v60, %v798_v38  ;;  %v1506_v29 = vadd.f32 %v7389_v18, %v1436_v6  ;;  %v8637_v38 = vld [vmem:[#allocation35_spill] sm:$0xff]  ;;  %v8638_v6 = vld [vmem:[#allocation36_spill] sm:$0xff] }
 0x20a   :  { %v665_v11 = vmul.f32 %v7375_v63, %v8637_v38 }
 0x20b   :  { %6476 = vset.pattern.permute.xlu1 %v8632_v56  ;;  %v1051_v55 = vadd.f32 %v987_v3, %v663_v36  ;;  %v1570_v26 = vmax.f32 %v1506_v29, 0.0 }
 0x20c   :  { %508 = vperm.xlu1 %6476, %v8635_v58  }
 0x20d   :  { %v1178_v10 = vpop.permute.xlu1 %1177  ;;  %v1439_v61 = vadd.f32 %v1375_v46, %v1051_v55  ;;  %v666_v55 = vmul.f32 %v7375_v63, %v8638_v6  ;;  %v990_v46 = vmul.f32 %v7364_v60, %v7597_v25 }
 0x20e   :  { %v1373_v33 = vmul.f32 %v7372_v62, %v1178_v10 }
 0x20f   :  { %v1509_v57 = vadd.f32 %v7389_v18, %v1439_v61  ;;  %v1054_v29 = vadd.f32 %v990_v46, %v666_v55  ;;  %v7752_v55 = vld [vmem:[#allocation3 + $0x1e8] sm:$0xff] }
 0x210   :  { %v1437_v1 = vadd.f32 %v1373_v33, %v1049_v31  ;;  %513 = vperm.xlu1 %6476, %v8636_v9   ;;  %v220_v31 = vld [vmem:[#allocation3 + $0x158] sm:$0xff]  ;;  %949 = vperm.xlu0 %6506, %v7752_v55  }
 0x211   :  { %v1182_v24 = vpop.permute.xlu1 %1181  ;;  %v1573_v32 = vmax.f32 %v1509_v57, 0.0 }
 0x212   :  { %v1507_v53 = vadd.f32 %v7389_v18, %v1437_v1  ;;  %v1374_v22 = vmul.f32 %v7372_v62, %v1182_v24 }
 0x214   :  { %v1571_v2 = vmax.f32 %v1507_v53, 0.0  ;;  %v1438_v45 = vadd.f32 %v1374_v22, %v1050_v0  ;;  %6477 = vset.pattern.permute.xlu1 %v8633_v41 }
 0x215   :  { %861 = vperm.xlu1 %6477, %v8636_v9  }
 0x216   :  { %v1508_v4 = vadd.f32 %v7389_v18, %v1438_v45  ;;  %v439_v8 = vpop.permute.xlu1 %438  ;;  %v1624_v20 = vpack.c.bf16 %v1571_v2, %v1570_v26 }
 0x218   :  { %v1572_v37 = vmax.f32 %v1508_v4, 0.0  ;;  %6346 = vmatprep.mubr.msk.bf16.mxu0 %vm1676_vm0, %v1624_v20 }
 0x219   :  { %6478 = vset.pattern.permute.xlu1 %v8634_v39 }
 0x21a   :  { %1241 = vperm.xlu1 %6478, %v7331_v43   ;;  %v1625_v47 = vpack.c.bf16 %v1573_v32, %v1572_v37  ;;  %v1194_v43 = vpop.permute.xlu0 %1193 }
 0x21b   :  { %v802_v54 = vpop.permute.xlu1 %801  ;;  %v1377_v5 = vmul.f32 %v7372_v62, %v1194_v43 }
 0x21c   :  { %6347 = vmatmul.mubr.msk.bf16.gmra.mrb[20].mxu0 %vm1676_vm0, %v1625_v47  ;;  %v988_v36 = vmul.f32 %v7364_v60, %v802_v54 }
 0x21e   :  { %1245 = vperm.xlu1 %6478, %v8635_v58   ;;  %v664_v58 = vmul.f32 %v7375_v63, %v439_v8 }
 0x21f   :  { %v806_v35 = vpop.permute.xlu1 %805 }
 0x220   :  { %v989_v3 = vmul.f32 %v7364_v60, %v806_v35  ;;  %v1052_v21 = vadd.f32 %v988_v36, %v664_v58  ;;  %v993_v58 = vmul.f32 %v7364_v60, %v7603_v59  ;;  %v994_v59 = vmul.f32 %v7364_v60, %v7609_v50 }
 0x222   :  { %6479 = vset.pattern.permute.xlu1 %v8632_v56  ;;  %v1053_v28 = vadd.f32 %v989_v3, %v665_v11  ;;  %v8639_v11 = vld [vmem:[#allocation33_spill] sm:$0xff]  ;;  %v1206_v3 = vpop.permute.xlu0 %1205 }
 0x223   :  { %518 = vperm.xlu1 %6479, %v217_v19   ;;  %v1380_v36 = vmul.f32 %v7372_v62, %v1206_v3 }
 0x224   :  { %v454_v49 = vpop.permute.xlu1 %453  ;;  %v1441_v10 = vadd.f32 %v1377_v5, %v1053_v28  ;;  %v8640_v28 = vld [vmem:[#allocation38_spill] sm:$0xff] }
 0x225   :  { %v667_v53 = vmul.f32 %v7375_v63, %v454_v49 }
 0x226   :  { %v1511_v61 = vadd.f32 %v7389_v18, %v1441_v10 }
 0x227   :  { %6480 = vset.pattern.permute.xlu1 %v8633_v41 }
 0x228   :  { %865 = vperm.xlu1 %6480, %v217_v19   ;;  %v1575_v0 = vmax.f32 %v1511_v61, 0.0  ;;  %v7762_v61 = vld [vmem:[#allocation3 + $0x1f0] sm:$0xff] }
 0x229   :  { %v814_v40 = vpop.permute.xlu1 %813  ;;  %953 = vperm.xlu0 %6506, %v7762_v61  }
 0x22a   :  { %v991_v9 = vmul.f32 %v7364_v60, %v814_v40 }
 0x22c   :  { %869 = vperm.xlu1 %6480, %v7441_v12   ;;  %v1055_v2 = vadd.f32 %v991_v9, %v667_v53 }
 0x22d   :  { %6511 = vset.pattern.permute.xlu0 %v8634_v39 }
 0x22e   :  { %v1190_v15 = vpop.permute.xlu1 %1189  ;;  %1333 = vperm.xlu0 %6511, %v7668_v51  }
 0x22f   :  { %v1376_v33 = vmul.f32 %v7372_v62, %v1190_v15 }
 0x230   :  { %6481 = vset.pattern.permute.xlu1 %v8632_v56 }
 0x231   :  { %v1440_v12 = vadd.f32 %v1376_v33, %v1052_v21  ;;  %533 = vperm.xlu1 %6481, %v220_v31  }
 0x232   :  { %v1198_v1 = vpop.permute.xlu1 %1197 }
 0x233   :  { %v1510_v25 = vadd.f32 %v7389_v18, %v1440_v12  ;;  %v1378_v24 = vmul.f32 %v7372_v62, %v1198_v1 }
 0x235   :  { %v1574_v22 = vmax.f32 %v1510_v25, 0.0  ;;  %v1442_v26 = vadd.f32 %v1378_v24, %v1054_v29  ;;  %6482 = vset.pattern.permute.xlu1 %v8633_v41  ;;  %v6725_v29 = vld [vmem:[#allocation3 + $0x170] sm:$0xff] }
 0x236   :  { %877 = vperm.xlu1 %6482, %v220_v31   ;;  %v1202_v57 = vpop.permute.xlu1 %1201 }
 0x237   :  { %v1379_v45 = vmul.f32 %v7372_v62, %v1202_v57  ;;  %v1626_v4 = vpack.c.bf16 %v1575_v0, %v1574_v22  ;;  %v1512_v8 = vadd.f32 %v7389_v18, %v1442_v26  ;;  %v8641_v22 = vld [vmem:[#allocation37_spill] sm:$0xff] }
 0x239   :  { %v1443_v20 = vadd.f32 %v1379_v45, %v1055_v2  ;;  %6350 = vmatprep.mubr.msk.bf16.mxu0 %vm1676_vm0, %v1626_v4  ;;  %v1576_v47 = vmax.f32 %v1512_v8, 0.0  ;;  %v7774_v45 = vld [vmem:[#allocation8] ss:$0 sm:$0xff] }
 0x23a   :  { %6483 = vset.pattern.permute.xlu1 %v8634_v39 }
 0x23b   :  { %v1513_v32 = vadd.f32 %v7389_v18, %v1443_v20  ;;  %1253 = vperm.xlu1 %6483, %v217_v19   ;;  %v464_v37 = vpop.permute.xlu1 %463  ;;  %v668_v19 = vmul.f32 %v7375_v63, %v8640_v28  ;;  %v7787_v28 = vld [vmem:[#allocation3 + $0x1f8] sm:$0xff] }
 0x23c   :  { %v669_v10 = vmul.f32 %v7375_v63, %v464_v37  ;;  %1345 = vperm.xlu0 %6511, %v7787_v28  }
 0x23d   :  { %v1577_v54 = vmax.f32 %v1513_v32, 0.0 }
 0x23e   :  { %v1057_v1 = vadd.f32 %v993_v58, %v669_v10 }
 0x23f   :  { %1261 = vperm.xlu1 %6483, %v7346_v52   ;;  %v1627_v35 = vpack.c.bf16 %v1577_v54, %v1576_v47  ;;  %v1218_v52 = vpop.permute.xlu0 %1217 }
 0x240   :  { %v818_v49 = vpop.permute.xlu1 %817  ;;  %v1383_v33 = vmul.f32 %v7372_v62, %v1218_v52  ;;  %v225_v52 = vld [vmem:[#allocation3 + $0x180] sm:$0xff] }
 0x241   :  { %6351 = vmatmul.mubr.msk.bf16.gmra.mrb[24].mxu0 %vm1676_vm0, %v1627_v35  ;;  %v992_v5 = vmul.f32 %v7364_v60, %v818_v49 }
 0x243   :  { %1265 = vperm.xlu1 %6483, %v220_v31   ;;  %v1056_v40 = vadd.f32 %v992_v5, %v668_v19 }
 0x245   :  { %v469_v38 = vpop.permute.xlu1 %468  ;;  %v1444_v31 = vadd.f32 %v1380_v36, %v1056_v40 }
 0x246   :  { %v670_v9 = vmul.f32 %v7375_v63, %v469_v38 }
 0x247   :  { %6484 = vset.pattern.permute.xlu1 %v8632_v56  ;;  %v1514_v24 = vadd.f32 %v7389_v18, %v1444_v31 }
 0x248   :  { %543 = vperm.xlu1 %6484, %v8639_v11   ;;  %v1058_v2 = vadd.f32 %v994_v59, %v670_v9  ;;  %v6727_v11 = vld [vmem:[#allocation3 + $0x168] sm:$0xff] }
 0x249   :  { %v474_v43 = vpop.permute.xlu1 %473  ;;  %v1578_v8 = vmax.f32 %v1514_v24, 0.0  ;;  %v8643_v9 = vld [vmem:[#allocation40_spill] sm:$0xff]  ;;  %v998_v24 = vmul.f32 %v7364_v60, %v7617_v17 }
 0x24a   :  { %v671_v15 = vmul.f32 %v7375_v63, %v474_v43 }
 0x24c   :  { %6485 = vset.pattern.permute.xlu1 %v8633_v41 }
 0x24d   :  { %881 = vperm.xlu1 %6485, %v7448_v14   ;;  %v1226_v14 = vpop.permute.xlu0 %1225 }
 0x24e   :  { %v830_v6 = vpop.permute.xlu1 %829  ;;  %v1385_v10 = vmul.f32 %v7372_v62, %v1226_v14 }
 0x24f   :  { %v995_v46 = vmul.f32 %v7364_v60, %v830_v6 }
 0x251   :  { %6486 = vset.pattern.permute.xlu1 %v8632_v56  ;;  %v1059_v21 = vadd.f32 %v995_v46, %v671_v15  ;;  %v7771_v57 = vpop.permute.xlu0 %1237  ;;  %v8642_v46 = vld [vmem:[#allocation39_spill] sm:$0xff] }
 0x252   :  { %548 = vperm.xlu1 %6486, %v6725_v29   ;;  %v673_v58 = vmul.f32 %v7375_v63, %v8642_v46 }
 0x253   :  { %v1210_v12 = vpop.permute.xlu1 %1209  ;;  %v1447_v0 = vadd.f32 %v1383_v33, %v1059_v21 }
 0x254   :  { %v1381_v25 = vmul.f32 %v7372_v62, %v1210_v12 }
 0x255   :  { %v1517_v18 = vadd.f32 %v7774_v45, %v1447_v0  ;;  %v7783_v35 = vpop.permute.xlu0 %1249 }
 0x256   :  { %v1445_v53 = vadd.f32 %v1381_v25, %v1057_v1  ;;  %553 = vperm.xlu1 %6486, %v8641_v22   ;;  %v228_v1 = vld [vmem:[#allocation3 + $0x198] sm:$0xff]  ;;  %v674_v25 = vmul.f32 %v7375_v63, %v8643_v9 }
 0x257   :  { %v1214_v26 = vpop.permute.xlu1 %1213  ;;  %v1581_v49 = vmax.f32 %v1517_v18, 0.0 }
 0x258   :  { %v1515_v50 = vadd.f32 %v7774_v45, %v1445_v53  ;;  %v1382_v4 = vmul.f32 %v7372_v62, %v1214_v26 }
 0x259   :  { %v7791_v19 = vpop.permute.xlu0 %1257 }
 0x25a   :  { %v1579_v20 = vmax.f32 %v1515_v50, 0.0  ;;  %v1446_v32 = vadd.f32 %v1382_v4, %v1058_v2  ;;  %6488 = vset.pattern.permute.xlu1 %v8633_v41  ;;  %v1062_v2 = vadd.f32 %v998_v24, %v674_v25 }
 0x25b   :  { %893 = vperm.xlu1 %6488, %v8641_v22  }
 0x25c   :  { %v1516_v37 = vadd.f32 %v7774_v45, %v1446_v32  ;;  %v479_v47 = vpop.permute.xlu1 %478  ;;  %v1628_v54 = vpack.c.bf16 %v1579_v20, %v1578_v8 }
 0x25d   :  { %v7794_v40 = vpop.permute.xlu0 %1269 }
 0x25e   :  { %v1580_v38 = vmax.f32 %v1516_v37, 0.0  ;;  %6354 = vmatprep.mubr.msk.bf16.mxu0 %vm1676_vm0, %v1628_v54 }
 0x25f   :  { %6489 = vset.pattern.permute.xlu1 %v8634_v39 }
 0x260   :  { %1273 = vperm.xlu1 %6489, %v6727_v11   ;;  %v1629_v3 = vpack.c.bf16 %v1581_v49, %v1580_v38 }
 0x261   :  { %v834_v43 = vpop.permute.xlu1 %833  ;;  %v7801_v21 = vpop.permute.xlu0 %1281 }
 0x262   :  { %6355 = vmatmul.mubr.msk.bf16.gmra.mrb[28].mxu0 %vm1676_vm0, %v1629_v3  ;;  %v996_v33 = vmul.f32 %v7364_v60, %v834_v43 }
 0x264   :  { %1277 = vperm.xlu1 %6489, %v6725_v29   ;;  %v672_v29 = vmul.f32 %v7375_v63, %v479_v47 }
 0x265   :  { %v838_v5 = vpop.permute.xlu1 %837  ;;  %v7811_v53 = vpop.permute.xlu0 %1289 }
 0x266   :  { %v997_v6 = vmul.f32 %v7364_v60, %v838_v5  ;;  %v1060_v14 = vadd.f32 %v996_v33, %v672_v29 }
 0x268   :  { %6490 = vset.pattern.permute.xlu1 %v8632_v56  ;;  %v1061_v15 = vadd.f32 %v997_v6, %v673_v58  ;;  %v7831_v6 = vld [vmem:[#allocation11] ss:$0 sm:$0xff] }
 0x269   :  { %558 = vperm.xlu1 %6490, %v225_v52   ;;  %v7819_v37 = vpop.permute.xlu0 %1301 }
 0x26a   :  { %v494_v36 = vpop.permute.xlu1 %493  ;;  %v1449_v12 = vadd.f32 %v1385_v10, %v1061_v15 }
 0x26b   :  { %v675_v18 = vmul.f32 %v7375_v63, %v494_v36 }
 0x26d   :  { %6491 = vset.pattern.permute.xlu1 %v8633_v41  ;;  %v7827_v5 = vpop.permute.xlu0 %1313 }
 0x26e   :  { %897 = vperm.xlu1 %6491, %v225_v52  }
 0x26f   :  { %v846_v31 = vpop.permute.xlu1 %845 }
 0x270   :  { %v999_v50 = vmul.f32 %v7364_v60, %v846_v31 }
 0x271   :  { %v7837_v25 = vpop.permute.xlu0 %1321 }
 0x272   :  { %901 = vperm.xlu1 %6491, %v7462_v16   ;;  %v1519_v16 = vadd.f32 %v7774_v45, %v1449_v12  ;;  %v1063_v54 = vadd.f32 %v999_v50, %v675_v18 }
 0x274   :  { %v1222_v59 = vpop.permute.xlu1 %1221  ;;  %v1583_v17 = vmax.f32 %v1519_v16, 0.0 }
 0x275   :  { %v1384_v0 = vmul.f32 %v7372_v62, %v1222_v59 }
 0x276   :  { %6492 = vset.pattern.permute.xlu1 %v8632_v56 }
 0x277   :  { %v1448_v22 = vadd.f32 %v1384_v0, %v1060_v14  ;;  %573 = vperm.xlu1 %6492, %v228_v1  }
 0x278   :  { %v1230_v26 = vpop.permute.xlu1 %1229 }
 0x279   :  { %v1518_v4 = vadd.f32 %v7774_v45, %v1448_v22  ;;  %v1386_v8 = vmul.f32 %v7372_v62, %v1230_v26  ;;  %v253_v26 = vld [vmem:[#allocation12 + $0x8] sm:$0xff] }
 0x27b   :  { %v1582_v20 = vmax.f32 %v1518_v4, 0.0  ;;  %v1450_v32 = vadd.f32 %v1386_v8, %v1062_v2  ;;  %6493 = vset.pattern.permute.xlu1 %v8633_v41  ;;  %v257_v2 = vld [vmem:[#allocation12 + $0x28] sm:$0xff] }
 0x27c   :  { %909 = vperm.xlu1 %6493, %v228_v1   ;;  %v1234_v47 = vpop.permute.xlu1 %1233  ;;  %v6051_v18 = vcombine.low %v253_v26, %v257_v2 }
 0x27d   :  { %v1387_v49 = vmul.f32 %v7372_v62, %v1234_v47  ;;  %v1630_v38 = vpack.c.bf16 %v1583_v17, %v1582_v20  ;;  %v1520_v11 = vadd.f32 %v7774_v45, %v1450_v32  ;;  %v499_v47 = vpop.permute.xlu0 %498 }
 0x27f   :  { %v1451_v3 = vadd.f32 %v1387_v49, %v1063_v54  ;;  %6358 = vmatprep.mubr.msk.bf16.mxu0 %vm1676_vm0, %v1630_v38  ;;  %v1584_v46 = vmax.f32 %v1520_v11, 0.0 }
 0x280   :  { %6494 = vset.pattern.permute.xlu1 %v8634_v39 }
 0x281   :  { %v1521_v43 = vadd.f32 %v7774_v45, %v1451_v3  ;;  %1285 = vperm.xlu1 %6494, %v225_v52   ;;  %v7829_v36 = vpop.permute.xlu1 %503 }
 0x282   :  { %v6328_v10 = vpop.f32.mrb[0].mxu0 }
 0x283   :  { %v1585_v58 = vmax.f32 %v1521_v43, 0.0  ;;  %v1816_v15 = vadd.f32 %v6328_v10, %v7831_v6  ;;  %v1807_v31 = vpop.f32.mrb[1].mxu0  ;;  %v676_v43 = vmul.f32 %v7375_v63, %v499_v47 }
 0x284   :  { %v1808_v33 = vadd.f32 %v7831_v6, %v1807_v31  ;;  %v6329_v29 = vpop.f32.mrb[2].mxu0 }
 0x285   :  { %1293 = vperm.xlu1 %6494, %v7642_v48   ;;  %v1631_v12 = vpack.c.bf16 %v1585_v58, %v1584_v46  ;;  %v1819_v59 = vadd.f32 %v6329_v29, %v7831_v6  ;;  %v1810_v9 = vpop.f32.mrb[3].mxu0  ;;  %v2064_v14 = vmax.f32 %v1816_v15, 0.0  ;;  %v6052_v48 = vcombine.high %v253_v26, %v257_v2  ;;  %v265_v29 = vld [vmem:[#allocation12 + $0x68] sm:$0xff] }
 0x286   :  { %v850_v52 = vpop.permute.xlu1 %849  ;;  %v1811_v24 = vadd.f32 %v7831_v6, %v1810_v9  ;;  %v2062_v16 = vmax.f32 %v1808_v33, 0.0  ;;  %v261_v33 = vld [vmem:[#allocation12 + $0x48] sm:$0xff] }
 0x287   :  { %6359 = vmatmul.mubr.msk.bf16.gmra.mrb[32].mxu0 %vm1676_vm0, %v1631_v12  ;;  %v2065_v0 = vmax.f32 %v1819_v59, 0.0  ;;  %2831 = vmatprep.subr.bf16.mxu0 %v6052_v48  ;;  %v1000_v46 = vmul.f32 %v7364_v60, %v850_v52  ;;  %v6059_v59 = vcombine.low %v261_v33, %v265_v29  ;;  %v6060_v9 = vcombine.high %v261_v33, %v265_v29 }
 0x288   :  { %v2063_v22 = vmax.f32 %v1811_v24, 0.0  ;;  %2832 = vmatpush1.bf16.msra.mxu0 %v6051_v18  ;;  %v1388_v52 = vmul.f32 %v7372_v62, %v7771_v57  ;;  %v677_v57 = vmul.f32 %v7375_v63, %v7829_v36  ;;  %v1002_v36 = vmul.f32 %v7364_v60, %v7639_v30 }
 0x289   :  { %1297 = vperm.xlu1 %6494, %v228_v1   ;;  %v7841_v50 = vpack.c.bf16 %v2065_v0, %v2064_v14  ;;  %v6728_v0 = vld [vmem:[#allocation3 + $0x1a0] sm:$0xff]  ;;  %2833 = vmatprep.subr.bf16.mxu0 %v6060_v9 }
 0x28a   :  { %v7843_v4 = vpack.c.bf16 %v2063_v22, %v2062_v16  ;;  %v6332_v8 = vpop.f32.mrb[4].mxu0  ;;  %v1064_v16 = vadd.f32 %v1000_v46, %v676_v43 }
 0x28b   :  { %v7845_v17 = vpop.permute.xlu1 %508  ;;  %v1832_v20 = vadd.f32 %v6332_v8, %v7831_v6  ;;  %v1823_v32 = vpop.f32.mrb[5].mxu0 }
 0x28c   :  { %v1824_v54 = vadd.f32 %v7831_v6, %v1823_v32  ;;  %v6333_v49 = vpop.f32.mrb[6].mxu0  ;;  %2511 = vmatmul.mubr.bf16.vlgmr.msra.gmra.mrb[0].mxu1 %v7843_v4  ;;  %2834 = vmatpush1.bf16.msra.mxu0 %v6059_v59 }
 0x28d   :  { %6495 = vset.pattern.permute.xlu1 %v8632_v56  ;;  %v1835_v1 = vadd.f32 %v6333_v49, %v7831_v6  ;;  %v1826_v38 = vpop.f32.mrb[7].mxu0  ;;  %2520 = vmatprep.mubr.bf16.mxu1 %v8632_v56  ;;  %v2068_v58 = vmax.f32 %v1832_v20, 0.0  ;;  %v1001_v20 = vmul.f32 %v7364_v60, %v7629_v27  ;;  %v1391_v49 = vmul.f32 %v7372_v62, %v7783_v35 }
 0x28e   :  { %583 = vperm.xlu1 %6495, %v7692_v23   ;;  %v1827_v11 = vadd.f32 %v7831_v6, %v1826_v38  ;;  %v2066_v15 = vmax.f32 %v1824_v54, 0.0  ;;  %v1452_v38 = vadd.f32 %v1388_v52, %v1064_v16  ;;  %v678_v35 = vmul.f32 %v7375_v63, %v7845_v17 }
 0x28f   :  { %v514_v3 = vpop.permute.xlu1 %513  ;;  %v2069_v10 = vmax.f32 %v1835_v1, 0.0 }
 0x290   :  { %v2067_v31 = vmax.f32 %v1827_v11, 0.0  ;;  %v679_v32 = vmul.f32 %v7375_v63, %v514_v3  ;;  %v1522_v29 = vadd.f32 %v7774_v45, %v1452_v38 }
 0x291   :  { %v7857_v12 = vpack.c.bf16 %v2069_v10, %v2068_v58  ;;  %v1065_v10 = vadd.f32 %v1001_v20, %v677_v57 }
 0x292   :  { %6496 = vset.pattern.permute.xlu1 %v8633_v41  ;;  %v7860_v24 = vpack.c.bf16 %v2067_v31, %v2066_v15  ;;  %v6336_v14 = vpop.f32.mrb[8].mxu0  ;;  %v1586_v16 = vmax.f32 %v1522_v29, 0.0 }
 0x293   :  { %913 = vperm.xlu1 %6496, %v6728_v0   ;;  %v1848_v22 = vadd.f32 %v6336_v14, %v7831_v6  ;;  %v1839_v26 = vpop.f32.mrb[9].mxu0  ;;  %v6729_v14 = vld [vmem:[#allocation3 + $0x1b8] sm:$0xff]  ;;  %v1066_v0 = vadd.f32 %v1002_v36, %v678_v35 }
 0x294   :  { %v862_v2 = vpop.permute.xlu1 %861  ;;  %v1840_v48 = vadd.f32 %v7831_v6, %v1839_v26  ;;  %v6337_v18 = vpop.f32.mrb[10].mxu0  ;;  %2521 = vmatmul.mubr.bf16.gmra.mrb[4].mxu1 %v7841_v50 }
 0x295   :  { %v1003_v8 = vmul.f32 %v7364_v60, %v862_v2  ;;  %v1851_v47 = vadd.f32 %v6337_v18, %v7831_v6  ;;  %v1842_v54 = vpop.f32.mrb[11].mxu0  ;;  %2530 = vmatprep.mubr.bf16.mxu1 %v8632_v56  ;;  %v2072_v11 = vmax.f32 %v1848_v22, 0.0 }
 0x296   :  { %v1843_v1 = vadd.f32 %v7831_v6, %v1842_v54  ;;  %v2070_v3 = vmax.f32 %v1840_v48, 0.0 }
 0x297   :  { %6497 = vset.pattern.permute.xlu1 %v8632_v56  ;;  %v1067_v27 = vadd.f32 %v1003_v8, %v679_v32  ;;  %v2073_v43 = vmax.f32 %v1851_v47, 0.0 }
 0x298   :  { %588 = vperm.xlu1 %6497, %v7707_v13   ;;  %v2071_v46 = vmax.f32 %v1843_v1, 0.0  ;;  %v273_v1 = vld [vmem:[#allocation12 + $0xa8] sm:$0xff] }
 0x299   :  { %v1242_v58 = vpop.permute.xlu1 %1241  ;;  %v7884_v15 = vpack.c.bf16 %v2073_v43, %v2072_v11  ;;  %v1455_v59 = vadd.f32 %v1391_v49, %v1067_v27  ;;  %v269_v49 = vld [vmem:[#allocation12 + $0x88] sm:$0xff] }
 0x29a   :  { %v1389_v31 = vmul.f32 %v7372_v62, %v1242_v58  ;;  %v7887_v33 = vpack.c.bf16 %v2071_v46, %v2070_v3  ;;  %v6067_v27 = vcombine.low %v269_v49, %v273_v1  ;;  %v6068_v43 = vcombine.high %v269_v49, %v273_v1  ;;  %v6730_v49 = vld [vmem:[#allocation3 + $0x1c8] sm:$0xff] }
 0x29b   :  { %v1525_v22 = vadd.f32 %v7774_v45, %v1455_v59 }
 0x29c   :  { %v1453_v9 = vadd.f32 %v1389_v31, %v1065_v10  ;;  %593 = vperm.xlu1 %6497, %v6729_v14   ;;  %2531 = vmatmul.mubr.bf16.gmra.mrb[8].mxu1 %v7860_v24  ;;  %v7907_v10 = vld [vmem:[#allocation3 + $0x1c0] sm:$0xff] }
 0x29d   :  { %v1246_v30 = vpop.permute.xlu1 %1245  ;;  %2540 = vmatprep.mubr.bf16.mxu1 %v8632_v56  ;;  %v1589_v20 = vmax.f32 %v1525_v22, 0.0  ;;  %2835 = vmatprep.subr.bf16.mxu0 %v6068_v43  ;;  %v281_v22 = vld [vmem:[#allocation12 + $0xe8] sm:$0xff] }
 0x29e   :  { %v1523_v52 = vadd.f32 %v7774_v45, %v1453_v9  ;;  %v1390_v17 = vmul.f32 %v7372_v62, %v1246_v30  ;;  %2836 = vmatpush1.bf16.msra.mxu0 %v6067_v27 }
 0x2a0   :  { %v1587_v26 = vmax.f32 %v1523_v52, 0.0  ;;  %v1454_v2 = vadd.f32 %v1390_v17, %v1066_v0  ;;  %6498 = vset.pattern.permute.xlu1 %v8633_v41 }
 0x2a1   :  { %925 = vperm.xlu1 %6498, %v6729_v14  }
 0x2a2   :  { %v1632_v48 = vpack.c.bf16 %v1587_v26, %v1586_v16  ;;  %v1524_v8 = vadd.f32 %v7774_v45, %v1454_v2  ;;  %v519_v18 = vpop.permute.xlu1 %518  ;;  %v277_v16 = vld [vmem:[#allocation12 + $0xc8] sm:$0xff] }
 0x2a3   :  { %v6075_v26 = vcombine.low %v277_v16, %v281_v22  ;;  %v6076_v2 = vcombine.high %v277_v16, %v281_v22  ;;  %v680_v1 = vmul.f32 %v7375_v63, %v519_v18 }
 0x2a4   :  { %v1588_v57 = vmax.f32 %v1524_v8, 0.0  ;;  %6362 = vmatprep.mubr.msk.bf16.mxu0 %vm1676_vm0, %v1632_v48  ;;  %2541 = vmatmul.mubr.bf16.gmra.mrb[12].mxu1 %v7857_v12  ;;  %v1393_v48 = vmul.f32 %v7372_v62, %v7791_v19  ;;  %v236_v19 = vld [vmem:[#allocation3 + $0x1d8] sm:$0xff] }
 0x2a5   :  { %6499 = vset.pattern.permute.xlu1 %v8634_v39  ;;  %2550 = vmatprep.mubr.bf16.mxu1 %v8632_v56 }
 0x2a6   :  { %v1633_v32 = vpack.c.bf16 %v1589_v20, %v1588_v57  ;;  %1305 = vperm.xlu1 %6499, %v7692_v23   ;;  %2837 = vmatprep.subr.bf16.mxu0 %v6076_v2 }
 0x2a7   :  { %v866_v47 = vpop.permute.xlu1 %865  ;;  %2838 = vmatpush1.bf16.msra.mxu0 %v6075_v26 }
 0x2a8   :  { %6363 = vmatmul.mubr.msk.bf16.gmra.mrb[36].mxu0 %vm1676_vm0, %v1633_v32  ;;  %v1004_v57 = vmul.f32 %v7364_v60, %v866_v47 }
 0x2a9   :  { %v6340_v54 = vpop.f32.mrb[12].mxu0 }
 0x2aa   :  { %v1864_v38 = vadd.f32 %v6340_v54, %v7831_v6  ;;  %v1855_v11 = vpop.f32.mrb[13].mxu0  ;;  %1309 = vperm.xlu1 %6499, %v7707_v13   ;;  %v524_v13 = vpop.permute.xlu0 %523  ;;  %v1068_v43 = vadd.f32 %v1004_v57, %v680_v1 }
 0x2ab   :  { %v1856_v36 = vadd.f32 %v7831_v6, %v1855_v11  ;;  %v6341_v3 = vpop.f32.mrb[14].mxu0  ;;  %v870_v46 = vpop.permute.xlu1 %869  ;;  %v681_v14 = vmul.f32 %v7375_v63, %v524_v13  ;;  %v1006_v11 = vmul.f32 %v7364_v60, %v7651_v44  ;;  %v289_v13 = vld [vmem:[#allocation12 + $0x128] sm:$0xff] }
 0x2ac   :  { %v1867_v23 = vadd.f32 %v6341_v3, %v7831_v6  ;;  %v1858_v58 = vpop.f32.mrb[15].mxu0  ;;  %2551 = vmatmul.mubr.bf16.gmra.mrb[16].mxu1 %v7887_v33  ;;  %v2076_v31 = vmax.f32 %v1864_v38, 0.0  ;;  %v1005_v0 = vmul.f32 %v7364_v60, %v870_v46 }
 0x2ad   :  { %v1859_v35 = vadd.f32 %v7831_v6, %v1858_v58  ;;  %2560 = vmatprep.mubr.bf16.mxu1 %v8632_v56  ;;  %v2074_v59 = vmax.f32 %v1856_v36, 0.0 }
 0x2ae   :  { %v2077_v29 = vmax.f32 %v1867_v23, 0.0  ;;  %6500 = vset.pattern.permute.xlu1 %v8632_v56  ;;  %v1069_v8 = vadd.f32 %v1005_v0, %v681_v14  ;;  %v529_v32 = vpop.permute.xlu0 %528 }
 0x2af   :  { %v2075_v9 = vmax.f32 %v1859_v35, 0.0  ;;  %598 = vperm.xlu1 %6500, %v7907_v10   ;;  %v682_v27 = vmul.f32 %v7375_v63, %v529_v32 }
 0x2b0   :  { %v7915_v30 = vpack.c.bf16 %v2077_v29, %v2076_v31  ;;  %v534_v52 = vpop.permute.xlu1 %533  ;;  %v1457_v54 = vadd.f32 %v1393_v48, %v1069_v8  ;;  %v285_v29 = vld [vmem:[#allocation12 + $0x108] sm:$0xff] }
 0x2b1   :  { %v7918_v17 = vpack.c.bf16 %v2075_v9, %v2074_v59  ;;  %v1070_v18 = vadd.f32 %v1006_v11, %v682_v27  ;;  %v683_v31 = vmul.f32 %v7375_v63, %v534_v52  ;;  %v6083_v14 = vcombine.low %v285_v29, %v289_v13 }
 0x2b2   :  { %v1527_v3 = vadd.f32 %v7774_v45, %v1457_v54  ;;  %v6084_v0 = vcombine.high %v285_v29, %v289_v13  ;;  %v293_v13 = vld [vmem:[#allocation12 + $0x148] sm:$0xff] }
 0x2b3   :  { %6501 = vset.pattern.permute.xlu1 %v8633_v41 }
 0x2b4   :  { %929 = vperm.xlu1 %6501, %v7907_v10   ;;  %2561 = vmatmul.mubr.bf16.gmra.mrb[20].mxu1 %v7884_v15  ;;  %v1591_v35 = vmax.f32 %v1527_v3, 0.0 }
 0x2b5   :  { %v878_v20 = vpop.permute.xlu1 %877  ;;  %2570 = vmatprep.mubr.bf16.mxu1 %v8632_v56  ;;  %2839 = vmatprep.subr.bf16.mxu0 %v6084_v0 }
 0x2b6   :  { %v1007_v23 = vmul.f32 %v7364_v60, %v878_v20  ;;  %2840 = vmatpush1.bf16.msra.mxu0 %v6083_v14 }
 0x2b8   :  { %933 = vperm.xlu1 %6501, %v6730_v49   ;;  %v1071_v22 = vadd.f32 %v1007_v23, %v683_v31 }
 0x2ba   :  { %v1254_v38 = vpop.permute.xlu1 %1253 }
 0x2bb   :  { %v1392_v36 = vmul.f32 %v7372_v62, %v1254_v38 }
 0x2bc   :  { %6502 = vset.pattern.permute.xlu1 %v8632_v56  ;;  %2571 = vmatmul.mubr.bf16.gmra.mrb[24].mxu1 %v7918_v17 }
 0x2bd   :  { %v1456_v47 = vadd.f32 %v1392_v36, %v1068_v43  ;;  %613 = vperm.xlu1 %6502, %v236_v19   ;;  %2580 = vmatprep.mubr.bf16.mxu1 %v8632_v56 }
 0x2be   :  { %v1262_v46 = vpop.permute.xlu1 %1261 }
 0x2bf   :  { %v1526_v44 = vadd.f32 %v7774_v45, %v1456_v47  ;;  %v1394_v58 = vmul.f32 %v7372_v62, %v1262_v46  ;;  %v539_v46 = vpop.permute.xlu0 %538 }
 0x2c1   :  { %v1590_v59 = vmax.f32 %v1526_v44, 0.0  ;;  %v1458_v9 = vadd.f32 %v1394_v58, %v1070_v18  ;;  %6503 = vset.pattern.permute.xlu1 %v8633_v41 }
 0x2c2   :  { %941 = vperm.xlu1 %6503, %v236_v19   ;;  %v1266_v16 = vpop.permute.xlu1 %1265 }
 0x2c3   :  { %v1634_v26 = vpack.c.bf16 %v1591_v35, %v1590_v59  ;;  %v1395_v2 = vmul.f32 %v7372_v62, %v1266_v16  ;;  %v1528_v48 = vadd.f32 %v7774_v45, %v1458_v9  ;;  %v684_v35 = vmul.f32 %v7375_v63, %v539_v46  ;;  %v297_v59 = vld [vmem:[#allocation12 + $0x168] sm:$0xff]  ;;  %v7965_v9 = vpop.permute.xlu0 %563 }
 0x2c4   :  { %2581 = vmatmul.mubr.bf16.gmra.mrb[28].mxu1 %v7915_v30  ;;  %v6091_v14 = vcombine.low %v293_v13, %v297_v59  ;;  %v6092_v0 = vcombine.high %v293_v13, %v297_v59  ;;  %v1396_v16 = vmul.f32 %v7372_v62, %v7794_v40 }
 0x2c5   :  { %v1459_v8 = vadd.f32 %v1395_v2, %v1071_v22  ;;  %6366 = vmatprep.mubr.msk.bf16.mxu0 %vm1676_vm0, %v1634_v26  ;;  %2590 = vmatprep.mubr.bf16.mxu1 %v8632_v56  ;;  %v1592_v57 = vmax.f32 %v1528_v48, 0.0 }
 0x2c6   :  { %6504 = vset.pattern.permute.xlu1 %v8634_v39  ;;  %2841 = vmatprep.subr.bf16.mxu0 %v6092_v0 }
 0x2c7   :  { %v1529_v52 = vadd.f32 %v7774_v45, %v1459_v8  ;;  %1317 = vperm.xlu1 %6504, %v7907_v10   ;;  %v544_v20 = vpop.permute.xlu1 %543  ;;  %2842 = vmatpush1.bf16.msra.mxu0 %v6091_v14 }
 0x2c8   :  { %v685_v48 = vmul.f32 %v7375_v63, %v544_v20 }
 0x2c9   :  { %v1593_v32 = vmax.f32 %v1529_v52, 0.0  ;;  %v1399_v52 = vmul.f32 %v7372_v62, %v7801_v21 }
 0x2cb   :  { %v1635_v54 = vpack.c.bf16 %v1593_v32, %v1592_v57  ;;  %1325 = vperm.xlu1 %6504, %v7663_v7   ;;  %v7980_v32 = vpop.permute.xlu0 %568 }
 0x2cc   :  { %v882_v49 = vpop.permute.xlu1 %881 }
 0x2cd   :  { %6367 = vmatmul.mubr.msk.bf16.gmra.mrb[40].mxu0 %vm1676_vm0, %v1635_v54  ;;  %v1008_v31 = vmul.f32 %v7364_v60, %v882_v49 }
 0x2ce   :  { %v6344_v1 = vpop.f32.mrb[16].mxu0 }
 0x2cf   :  { %v1880_v38 = vadd.f32 %v6344_v1, %v7831_v6  ;;  %v1871_v11 = vpop.f32.mrb[17].mxu0  ;;  %1329 = vperm.xlu1 %6504, %v236_v19   ;;  %v1072_v22 = vadd.f32 %v1008_v31, %v684_v35 }
 0x2d0   :  { %v1872_v27 = vadd.f32 %v7831_v6, %v1871_v11  ;;  %v6345_v43 = vpop.f32.mrb[18].mxu0 }
 0x2d1   :  { %v1883_v36 = vadd.f32 %v6345_v43, %v7831_v6  ;;  %v1874_v10 = vpop.f32.mrb[19].mxu0  ;;  %v549_v3 = vpop.permute.xlu1 %548  ;;  %v2080_v18 = vmax.f32 %v1880_v38, 0.0  ;;  %v1460_v57 = vadd.f32 %v1396_v16, %v1072_v22  ;;  %v305_v43 = vld [vmem:[#allocation12 + $0x1a8] sm:$0xff] }
 0x2d2   :  { %v1875_v47 = vadd.f32 %v7831_v6, %v1874_v10  ;;  %v2078_v23 = vmax.f32 %v1872_v27, 0.0  ;;  %v686_v20 = vmul.f32 %v7375_v63, %v549_v3  ;;  %v301_v27 = vld [vmem:[#allocation12 + $0x188] sm:$0xff] }
 0x2d3   :  { %v2081_v7 = vmax.f32 %v1883_v36, 0.0  ;;  %6507 = vset.pattern.permute.xlu1 %v8632_v56  ;;  %v1530_v21 = vadd.f32 %v7774_v45, %v1460_v57  ;;  %v6099_v10 = vcombine.low %v301_v27, %v305_v43  ;;  %v6100_v3 = vcombine.high %v301_v27, %v305_v43  ;;  %v313_v27 = vld [vmem:[#allocation12 + $0x1e8] sm:$0xff] }
 0x2d4   :  { %v2079_v44 = vmax.f32 %v1875_v47, 0.0  ;;  %623 = vperm.xlu1 %6507, %v7752_v55  }
 0x2d5   :  { %v7957_v58 = vpack.c.bf16 %v2081_v7, %v2080_v18  ;;  %v554_v19 = vpop.permute.xlu1 %553  ;;  %v7992_v7 = vpop.permute.xlu0 %578  ;;  %2843 = vmatprep.subr.bf16.mxu0 %v6100_v3 }
 0x2d6   :  { %v7961_v29 = vpack.c.bf16 %v2079_v44, %v2078_v23  ;;  %v687_v8 = vmul.f32 %v7375_v63, %v554_v19  ;;  %2844 = vmatpush1.bf16.msra.mxu0 %v6099_v10 }
 0x2d8   :  { %2591 = vmatmul.mubr.bf16.gmra.mrb[32].mxu1 %v7961_v29  ;;  %6508 = vset.pattern.permute.xlu1 %v8633_v41 }
 0x2d9   :  { %945 = vperm.xlu1 %6508, %v7668_v51   ;;  %2600 = vmatprep.mubr.bf16.mxu1 %v8632_v56  ;;  %v1009_v51 = vmul.f32 %v7364_v60, %v7660_v34  ;;  %v1010_v34 = vmul.f32 %v7364_v60, %v7671_v42  ;;  %v1594_v42 = vmax.f32 %v1530_v21, 0.0  ;;  %v7999_v0 = vpop.permute.xlu0 %603 }
 0x2da   :  { %v894_v26 = vpop.permute.xlu1 %893 }
 0x2db   :  { %v1011_v2 = vmul.f32 %v7364_v60, %v894_v26  ;;  %v1073_v49 = vadd.f32 %v1009_v51, %v685_v48  ;;  %v1074_v47 = vadd.f32 %v1010_v34, %v686_v20 }
 0x2dd   :  { %6509 = vset.pattern.permute.xlu1 %v8632_v56  ;;  %v1075_v40 = vadd.f32 %v1011_v2, %v687_v8  ;;  %v8006_v2 = vpop.permute.xlu0 %608 }
 0x2de   :  { %628 = vperm.xlu1 %6509, %v7762_v61  }
 0x2df   :  { %v1274_v54 = vpop.permute.xlu1 %1273  ;;  %v1463_v38 = vadd.f32 %v1399_v52, %v1075_v40 }
 0x2e0   :  { %v1397_v1 = vmul.f32 %v7372_v62, %v1274_v54  ;;  %2601 = vmatmul.mubr.bf16.gmra.mrb[36].mxu1 %v7957_v58 }
 0x2e1   :  { %2610 = vmatprep.mubr.bf16.mxu1 %v8632_v56  ;;  %v1533_v23 = vadd.f32 %v7774_v45, %v1463_v38  ;;  %v8013_v34 = vpop.permute.xlu0 %618 }
 0x2e2   :  { %v1461_v11 = vadd.f32 %v1397_v1, %v1073_v49  ;;  %633 = vperm.xlu1 %6509, %v7787_v28  }
 0x2e3   :  { %v1278_v36 = vpop.permute.xlu1 %1277  ;;  %v1597_v59 = vmax.f32 %v1533_v23, 0.0 }
 0x2e4   :  { %v1531_v46 = vadd.f32 %v7774_v45, %v1461_v11  ;;  %v1398_v18 = vmul.f32 %v7372_v62, %v1278_v36  ;;  %v309_v11 = vld [vmem:[#allocation12 + $0x1c8] sm:$0xff] }
 0x2e5   :  { %v6107_v43 = vcombine.low %v309_v11, %v313_v27  ;;  %v6108_v36 = vcombine.high %v309_v11, %v313_v27 }
 0x2e6   :  { %v1595_v44 = vmax.f32 %v1531_v46, 0.0  ;;  %v1462_v19 = vadd.f32 %v1398_v18, %v1074_v47  ;;  %6510 = vset.pattern.permute.xlu1 %v8633_v41  ;;  %v906_v47 = vpop.permute.xlu0 %905 }
 0x2e7   :  { %957 = vperm.xlu1 %6510, %v7787_v28   ;;  %2845 = vmatprep.subr.bf16.mxu0 %v6108_v36 }
 0x2e8   :  { %v1636_v35 = vpack.c.bf16 %v1595_v44, %v1594_v42  ;;  %v1532_v31 = vadd.f32 %v7774_v45, %v1462_v19  ;;  %v559_v13 = vpop.permute.xlu1 %558  ;;  %2846 = vmatpush1.bf16.msra.mxu0 %v6107_v43  ;;  %v690_v42 = vmul.f32 %v7375_v63, %v7980_v32  ;;  %v1014_v44 = vmul.f32 %v7364_v60, %v906_v47 }
 0x2e9   :  { %v688_v18 = vmul.f32 %v7375_v63, %v559_v13  ;;  %v258_v13 = vld [vmem:[#allocation12 + $0x30] sm:$0xff] }
 0x2ea   :  { %v1596_v14 = vmax.f32 %v1532_v31, 0.0  ;;  %6370 = vmatprep.mubr.msk.bf16.mxu0 %vm1676_vm0, %v1636_v35 }
 0x2eb   :  { %6512 = vset.pattern.permute.xlu1 %v8634_v39 }
 0x2ec   :  { %v1637_v16 = vpack.c.bf16 %v1597_v59, %v1596_v14  ;;  %1337 = vperm.xlu1 %6512, %v7752_v55   ;;  %v1078_v14 = vadd.f32 %v1014_v44, %v690_v42 }
 0x2ed   :  { %v898_v22 = vpop.permute.xlu1 %897 }
 0x2ee   :  { %6371 = vmatmul.mubr.msk.bf16.gmra.mrb[44].mxu0 %vm1676_vm0, %v1637_v16  ;;  %v1012_v46 = vmul.f32 %v7364_v60, %v898_v22  ;;  %v254_v16 = vld [vmem:[#allocation12 + $0x10] sm:$0xff]  ;;  %v8033_v22 = vld [vmem:[#allocation12 + $0x18] sm:$0xff] }
 0x2ef   :  { %v6348_v41 = vpop.f32.mrb[20].mxu0 }
 0x2f0   :  { %v1896_v28 = vadd.f32 %v6348_v41, %v7831_v6  ;;  %v1887_v26 = vpop.f32.mrb[21].mxu0  ;;  %1341 = vperm.xlu1 %6512, %v7762_v61   ;;  %v689_v61 = vmul.f32 %v7375_v63, %v7965_v9  ;;  %v1401_v9 = vmul.f32 %v7372_v62, %v7811_v53  ;;  %v1076_v35 = vadd.f32 %v1012_v46, %v688_v18 }
 0x2f1   :  { %v1888_v48 = vadd.f32 %v7831_v6, %v1887_v26  ;;  %v6349_v8 = vpop.f32.mrb[22].mxu0  ;;  %v902_v51 = vpop.permute.xlu1 %901  ;;  %v6054_v26 = vcombine.high %v254_v16, %v258_v13 }
 0x2f2   :  { %v1899_v39 = vadd.f32 %v6349_v8, %v7831_v6  ;;  %v1890_v52 = vpop.f32.mrb[23].mxu0  ;;  %v2084_v57 = vmax.f32 %v1896_v28, 0.0  ;;  %v1013_v21 = vmul.f32 %v7364_v60, %v902_v51  ;;  %v6053_v28 = vcombine.low %v254_v16, %v258_v13 }
 0x2f3   :  { %v1891_v55 = vadd.f32 %v7831_v6, %v1890_v52  ;;  %v2082_v54 = vmax.f32 %v1888_v48, 0.0  ;;  %v8036_v48 = vld [vmem:[#allocation12 + $0x38] sm:$0xff]  ;;  %3184 = vmatprep.subr.bf16.mxu1 %v6054_v26 }
 0x2f4   :  { %v2085_v40 = vmax.f32 %v1899_v39, 0.0  ;;  %v1077_v10 = vadd.f32 %v1013_v21, %v689_v61  ;;  %v6055_v39 = vcombine.low %v8033_v22, %v8036_v48  ;;  %v6056_v52 = vcombine.high %v8033_v22, %v8036_v48  ;;  %3185 = vmatpush1.bf16.msra.mxu1 %v6053_v28 }
 0x2f5   :  { %v2083_v49 = vmax.f32 %v1891_v55, 0.0  ;;  %v692_v28 = vmul.f32 %v7375_v63, %v7992_v7 }
 0x2f6   :  { %v8011_v20 = vpack.c.bf16 %v2085_v40, %v2084_v57  ;;  %v574_v1 = vpop.permute.xlu1 %573  ;;  %v1465_v23 = vadd.f32 %v1401_v9, %v1077_v10  ;;  %3537 = vmatprep.subr.bf16.mxu0 %v6056_v52 }
 0x2f7   :  { %v8018_v38 = vpack.c.bf16 %v2083_v49, %v2082_v54  ;;  %v691_v57 = vmul.f32 %v7375_v63, %v574_v1 }
 0x2f8   :  { %v1535_v53 = vadd.f32 %v7774_v45, %v1465_v23 }
 0x2f9   :  { %2611 = vmatmul.mubr.bf16.gmra.mrb[40].mxu1 %v8018_v38 }
 0x2fa   :  { %2620 = vmatprep.mubr.bf16.mxu1 %v8632_v56  ;;  %v1599_v55 = vmax.f32 %v1535_v53, 0.0 }
 0x2fb   :  { %v910_v3 = vpop.permute.xlu1 %909 }
 0x2fc   :  { %v1015_v32 = vmul.f32 %v7364_v60, %v910_v3 }
 0x2fe   :  { %v1079_v61 = vadd.f32 %v1015_v32, %v691_v57 }
 0x300   :  { %v1286_v19 = vpop.permute.xlu1 %1285 }
 0x301   :  { %v1400_v31 = vmul.f32 %v7372_v62, %v1286_v19  ;;  %2621 = vmatmul.mubr.bf16.gmra.mrb[44].mxu1 %v8011_v20 }
 0x302   :  { %2630 = vmatprep.mubr.bf16.mxu1 %v8632_v56 }
 0x303   :  { %v1464_v59 = vadd.f32 %v1400_v31, %v1076_v35 }
 0x304   :  { %v1294_v41 = vpop.permute.xlu1 %1293 }
 0x305   :  { %v1534_v8 = vadd.f32 %v7774_v45, %v1464_v59  ;;  %v1402_v51 = vmul.f32 %v7372_v62, %v1294_v41 }
 0x307   :  { %v1598_v40 = vmax.f32 %v1534_v8, 0.0  ;;  %v1466_v54 = vadd.f32 %v1402_v51, %v1078_v14  ;;  %v918_v51 = vpop.permute.xlu0 %917 }
 0x308   :  { %v1298_v49 = vpop.permute.xlu1 %1297 }
 0x309   :  { %v1638_v21 = vpack.c.bf16 %v1599_v55, %v1598_v40  ;;  %v1403_v11 = vmul.f32 %v7372_v62, %v1298_v49  ;;  %v1536_v27 = vadd.f32 %v7774_v45, %v1466_v54  ;;  %v1404_v40 = vmul.f32 %v7372_v62, %v7819_v37 }
 0x30a   :  { %v1017_v54 = vmul.f32 %v7364_v60, %v918_v51 }
 0x30b   :  { %v1467_v43 = vadd.f32 %v1403_v11, %v1079_v61  ;;  %6374 = vmatprep.mubr.msk.bf16.mxu0 %vm1676_vm0, %v1638_v21  ;;  %v1600_v3 = vmax.f32 %v1536_v27, 0.0  ;;  %v922_v61 = vpop.permute.xlu0 %921  ;;  %v262_v27 = vld [vmem:[#allocation12 + $0x50] sm:$0xff] }
 0x30c   :  { %v1018_v37 = vmul.f32 %v7364_v60, %v922_v61  ;;  %v697_v61 = vmul.f32 %v7375_v63, %v7999_v0 }
 0x30d   :  { %v1537_v36 = vadd.f32 %v7774_v45, %v1467_v43  ;;  %v584_v10 = vpop.permute.xlu1 %583  ;;  %v266_v43 = vld [vmem:[#allocation12 + $0x70] sm:$0xff] }
 0x30e   :  { %v693_v7 = vmul.f32 %v7375_v63, %v584_v10 }
 0x30f   :  { %v1601_v47 = vmax.f32 %v1537_v36, 0.0  ;;  %v1407_v36 = vmul.f32 %v7372_v62, %v7827_v5 }
 0x311   :  { %v1639_v1 = vpack.c.bf16 %v1601_v47, %v1600_v3  ;;  %v6061_v47 = vcombine.low %v262_v27, %v266_v43 }
 0x312   :  { %v914_v9 = vpop.permute.xlu1 %913 }
 0x313   :  { %6375 = vmatmul.mubr.msk.bf16.gmra.mrb[48].mxu0 %vm1676_vm0, %v1639_v1  ;;  %v1016_v26 = vmul.f32 %v7364_v60, %v914_v9  ;;  %v6062_v1 = vcombine.high %v262_v27, %v266_v43  ;;  %v1081_v9 = vadd.f32 %v1017_v54, %v693_v7 }
 0x314   :  { %v6352_v46 = vpop.f32.mrb[24].mxu0 }
 0x315   :  { %v1912_v18 = vadd.f32 %v6352_v46, %v7831_v6  ;;  %v1903_v42 = vpop.f32.mrb[25].mxu0  ;;  %v1080_v52 = vadd.f32 %v1016_v26, %v692_v28  ;;  %3186 = vmatprep.subr.bf16.mxu1 %v6062_v1 }
 0x316   :  { %v1904_v23 = vadd.f32 %v7831_v6, %v1903_v42  ;;  %v6353_v44 = vpop.f32.mrb[26].mxu0  ;;  %3187 = vmatpush1.bf16.msra.mxu1 %v6061_v47 }
 0x317   :  { %v1915_v19 = vadd.f32 %v6353_v44, %v7831_v6  ;;  %v1906_v35 = vpop.f32.mrb[27].mxu0  ;;  %v589_v31 = vpop.permute.xlu1 %588  ;;  %v2088_v59 = vmax.f32 %v1912_v18, 0.0  ;;  %v1468_v21 = vadd.f32 %v1404_v40, %v1080_v52 }
 0x318   :  { %v1907_v53 = vadd.f32 %v7831_v6, %v1906_v35  ;;  %v2086_v16 = vmax.f32 %v1904_v23, 0.0  ;;  %v694_v46 = vmul.f32 %v7375_v63, %v589_v31 }
 0x319   :  { %v2089_v14 = vmax.f32 %v1915_v19, 0.0  ;;  %v1538_v18 = vadd.f32 %v7774_v45, %v1468_v21  ;;  %v8077_v19 = vld [vmem:[#allocation8] ss:$0 sm:$0xff] }
 0x31a   :  { %v2087_v13 = vmax.f32 %v1907_v53, 0.0  ;;  %v1082_v44 = vadd.f32 %v1018_v37, %v694_v46 }
 0x31b   :  { %v8054_v32 = vpack.c.bf16 %v2089_v14, %v2088_v59  ;;  %v594_v41 = vpop.permute.xlu1 %593  ;;  %v1602_v53 = vmax.f32 %v1538_v18, 0.0 }
 0x31c   :  { %v8059_v8 = vpack.c.bf16 %v2087_v13, %v2086_v16  ;;  %v695_v49 = vmul.f32 %v7375_v63, %v594_v41 }
 0x31e   :  { %2631 = vmatmul.mubr.bf16.gmra.mrb[48].mxu1 %v8059_v8 }
 0x31f   :  { %2640 = vmatprep.mubr.bf16.mxu1 %v8632_v56 }
 0x320   :  { %v926_v55 = vpop.permute.xlu1 %925 }
 0x321   :  { %v1019_v57 = vmul.f32 %v7364_v60, %v926_v55 }
 0x323   :  { %v1083_v11 = vadd.f32 %v1019_v57, %v695_v49 }
 0x325   :  { %v1306_v3 = vpop.permute.xlu1 %1305  ;;  %v1471_v42 = vadd.f32 %v1407_v36, %v1083_v11  ;;  %v1409_v36 = vmul.f32 %v7372_v62, %v7837_v25  ;;  %v270_v25 = vld [vmem:[#allocation12 + $0x90] sm:$0xff] }
 0x326   :  { %v1405_v10 = vmul.f32 %v7372_v62, %v1306_v3  ;;  %2641 = vmatmul.mubr.bf16.gmra.mrb[52].mxu1 %v8054_v32 }
 0x327   :  { %2650 = vmatprep.mubr.bf16.mxu1 %v8632_v56  ;;  %v1541_v59 = vadd.f32 %v8077_v19, %v1471_v42 }
 0x328   :  { %v1469_v23 = vadd.f32 %v1405_v10, %v1081_v9 }
 0x329   :  { %v1310_v5 = vpop.permute.xlu1 %1309  ;;  %v1605_v28 = vmax.f32 %v1541_v59, 0.0 }
 0x32a   :  { %v1539_v35 = vadd.f32 %v8077_v19, %v1469_v23  ;;  %v1406_v31 = vmul.f32 %v7372_v62, %v1310_v5  ;;  %v938_v23 = vpop.permute.xlu0 %937  ;;  %v274_v5 = vld [vmem:[#allocation12 + $0xb0] sm:$0xff] }
 0x32c   :  { %v1603_v14 = vmax.f32 %v1539_v35, 0.0  ;;  %v1470_v16 = vadd.f32 %v1406_v31, %v1082_v44  ;;  %v6069_v35 = vcombine.low %v270_v25, %v274_v5  ;;  %v6070_v31 = vcombine.high %v270_v25, %v274_v5  ;;  %v282_v25 = vld [vmem:[#allocation12 + $0xf0] sm:$0xff] }
 0x32e   :  { %v1640_v13 = vpack.c.bf16 %v1603_v14, %v1602_v53  ;;  %v1540_v41 = vadd.f32 %v8077_v19, %v1470_v16  ;;  %v599_v45 = vpop.permute.xlu1 %598  ;;  %v698_v53 = vmul.f32 %v7375_v63, %v8006_v2  ;;  %v1022_v14 = vmul.f32 %v7364_v60, %v938_v23  ;;  %3188 = vmatprep.subr.bf16.mxu1 %v6070_v31  ;;  %v278_v23 = vld [vmem:[#allocation12 + $0xd0] sm:$0xff] }
 0x32f   :  { %v696_v44 = vmul.f32 %v7375_v63, %v599_v45  ;;  %3189 = vmatpush1.bf16.msra.mxu1 %v6069_v35  ;;  %v6077_v35 = vcombine.low %v278_v23, %v282_v25  ;;  %v6078_v31 = vcombine.high %v278_v23, %v282_v25 }
 0x330   :  { %v1604_v26 = vmax.f32 %v1540_v41, 0.0  ;;  %6378 = vmatprep.mubr.msk.bf16.mxu0 %vm1676_vm0, %v1640_v13 }
 0x331   :  { %3190 = vmatprep.subr.bf16.mxu1 %v6078_v31 }
 0x332   :  { %v1641_v51 = vpack.c.bf16 %v1605_v28, %v1604_v26  ;;  %v1086_v26 = vadd.f32 %v1022_v14, %v698_v53 }
 0x333   :  { %v930_v52 = vpop.permute.xlu1 %929  ;;  %3191 = vmatpush1.bf16.msra.mxu1 %v6077_v35 }
 0x334   :  { %6379 = vmatmul.mubr.msk.bf16.gmra.mrb[52].mxu0 %vm1676_vm0, %v1641_v51 }
 0x335   :  { %v6356_v55 = vpop.f32.mrb[28].mxu0 }
 0x336   :  { %v1928_v57 = vadd.f32 %v6356_v55, %v7831_v6  ;;  %v1919_v40 = vpop.f32.mrb[29].mxu0 }
 0x337   :  { %v1920_v54 = vadd.f32 %v7831_v6, %v1919_v40  ;;  %v6357_v7 = vpop.f32.mrb[30].mxu0  ;;  %v934_v49 = vpop.permute.xlu1 %933 }
 0x338   :  { %v1931_v21 = vadd.f32 %v6357_v7, %v7831_v6  ;;  %v1021_v11 = vmul.f32 %v7364_v60, %v934_v49  ;;  %v1922_v27 = vpop.f32.mrb[31].mxu0  ;;  %v2092_v3 = vmax.f32 %v1928_v57, 0.0 }
 0x339   :  { %v1923_v43 = vadd.f32 %v7831_v6, %v1922_v27  ;;  %v2090_v9 = vmax.f32 %v1920_v54, 0.0  ;;  %v1020_v6 = vmul.f32 %v7364_v60, %v930_v52 }
 0x33a   :  { %v2093_v47 = vmax.f32 %v1931_v21, 0.0  ;;  %v1085_v1 = vadd.f32 %v1021_v11, %v697_v61 }
 0x33b   :  { %v2091_v37 = vmax.f32 %v1923_v43, 0.0  ;;  %v1084_v16 = vadd.f32 %v1020_v6, %v696_v44 }
 0x33c   :  { %v8094_v46 = vpack.c.bf16 %v2093_v47, %v2092_v3  ;;  %v1473_v10 = vadd.f32 %v1409_v36, %v1085_v1  ;;  %v614_v18 = vpop.permute.xlu1 %613 }
 0x33d   :  { %v8096_v0 = vpack.c.bf16 %v2091_v37, %v2090_v9  ;;  %v699_v57 = vmul.f32 %v7375_v63, %v614_v18  ;;  %v950_v9 = vpop.permute.xlu0 %949  ;;  %v8118_v18 = vld [vmem:[#allocation11] ss:$0 sm:$0xff] }
 0x33e   :  { %v1543_v41 = vadd.f32 %v8077_v19, %v1473_v10 }
 0x33f   :  { %2651 = vmatmul.mubr.bf16.gmra.mrb[56].mxu1 %v8096_v0 }
 0x340   :  { %2660 = vmatprep.mubr.bf16.mxu1 %v8632_v56  ;;  %v1607_v55 = vmax.f32 %v1543_v41, 0.0 }
 0x341   :  { %v942_v42 = vpop.permute.xlu1 %941 }
 0x342   :  { %v1023_v51 = vmul.f32 %v7364_v60, %v942_v42 }
 0x344   :  { %v1087_v49 = vadd.f32 %v1023_v51, %v699_v57 }
 0x346   :  { %v1318_v59 = vpop.permute.xlu1 %1317 }
 0x347   :  { %v1408_v13 = vmul.f32 %v7372_v62, %v1318_v59  ;;  %2661 = vmatmul.mubr.bf16.gmra.mrb[60].mxu1 %v8094_v46 }
 0x348   :  { %2670 = vmatprep.mubr.bf16.mxu1 %v8632_v56 }
 0x349   :  { %v1472_v45 = vadd.f32 %v1408_v13, %v1084_v16  ;;  %v954_v16 = vpop.permute.xlu0 %953 }
 0x34a   :  { %v1326_v28 = vpop.permute.xlu1 %1325 }
 0x34b   :  { %v1542_v2 = vadd.f32 %v8077_v19, %v1472_v45  ;;  %v1410_v52 = vmul.f32 %v7372_v62, %v1326_v28 }
 0x34d   :  { %v1606_v40 = vmax.f32 %v1542_v2, 0.0  ;;  %v1474_v54 = vadd.f32 %v1410_v52, %v1086_v26 }
 0x34e   :  { %v1330_v7 = vpop.permute.xlu1 %1329 }
 0x34f   :  { %v1642_v61 = vpack.c.bf16 %v1607_v55, %v1606_v40  ;;  %v1411_v21 = vmul.f32 %v7372_v62, %v1330_v7  ;;  %v1544_v11 = vadd.f32 %v8077_v19, %v1474_v54  ;;  %v1334_v40 = vpop.permute.xlu0 %1333 }
 0x351   :  { %v1475_v27 = vadd.f32 %v1411_v21, %v1087_v49  ;;  %6382 = vmatprep.mubr.msk.bf16.mxu0 %vm1676_vm0, %v1642_v61  ;;  %v1608_v3 = vmax.f32 %v1544_v11, 0.0  ;;  %v700_v49 = vmul.f32 %v7375_v63, %v8013_v34 }
 0x353   :  { %v1545_v43 = vadd.f32 %v8077_v19, %v1475_v27  ;;  %v624_v36 = vpop.permute.xlu1 %623 }
 0x355   :  { %v1609_v47 = vmax.f32 %v1545_v43, 0.0  ;;  %v1412_v43 = vmul.f32 %v7372_v62, %v1334_v40 }
 0x357   :  { %v1643_v1 = vpack.c.bf16 %v1609_v47, %v1608_v3 }
 0x358   :  { %v946_v37 = vpop.permute.xlu1 %945 }
 0x359   :  { %6383 = vmatmul.mubr.msk.bf16.gmra.mrb[56].mxu0 %vm1676_vm0, %v1643_v1  ;;  %v1024_v2 = vmul.f32 %v7364_v60, %v946_v37  ;;  %v1346_v1 = vpop.permute.xlu0 %1345  ;;  %v1025_v37 = vmul.f32 %v7364_v60, %v950_v9 }
 0x35a   :  { %v6360_v10 = vpop.f32.mrb[32].mxu0 }
 0x35b   :  { %v1944_v42 = vadd.f32 %v8118_v18, %v6360_v10  ;;  %v1935_v6 = vpop.f32.mrb[33].mxu0  ;;  %v1088_v27 = vadd.f32 %v1024_v2, %v700_v49  ;;  %v701_v10 = vmul.f32 %v7375_v63, %v624_v36 }
 0x35c   :  { %v1936_v5 = vadd.f32 %v8118_v18, %v1935_v6  ;;  %v6361_v44 = vpop.f32.mrb[34].mxu0 }
 0x35d   :  { %v1947_v53 = vadd.f32 %v8118_v18, %v6361_v44  ;;  %v1938_v59 = vpop.f32.mrb[35].mxu0  ;;  %v629_v14 = vpop.permute.xlu1 %628  ;;  %v2096_v41 = vmax.f32 %v1944_v42, 0.0  ;;  %v1476_v6 = vadd.f32 %v1412_v43, %v1088_v27  ;;  %v1415_v44 = vmul.f32 %v7372_v62, %v1346_v1 }
 0x35e   :  { %v1939_v13 = vadd.f32 %v8118_v18, %v1938_v59  ;;  %v2094_v28 = vmax.f32 %v1936_v5, 0.0 }
 0x35f   :  { %v2097_v45 = vmax.f32 %v1947_v53, 0.0  ;;  %v2512_v51 = vpop.f32.mrb[0].mxu1 }
 0x360   :  { %v2095_v26 = vmax.f32 %v1939_v13, 0.0  ;;  %v2514_v55 = vpop.f32.mrb[1].mxu1 }
 0x361   :  { %v8125_v52 = vpack.c.bf16 %v2097_v45, %v2096_v41  ;;  %v634_v57 = vpop.permute.xlu1 %633  ;;  %v2516_v7 = vpop.f32.mrb[2].mxu1  ;;  %v1089_v41 = vadd.f32 %v1025_v37, %v701_v10  ;;  %v702_v45 = vmul.f32 %v7375_v63, %v629_v14 }
 0x362   :  { %v8127_v54 = vpack.c.bf16 %v2095_v26, %v2094_v28  ;;  %v2518_v61 = vpop.f32.mrb[3].mxu1  ;;  %v3890_v21 = vmax.f32 %v2512_v51, %v2516_v7  ;;  %v703_v34 = vmul.f32 %v7375_v63, %v634_v57  ;;  %v1546_v28 = vadd.f32 %v8077_v19, %v1476_v6 }
 0x363   :  { %v3927_v11 = vmax.f32 %v2514_v55, %v2518_v61  ;;  %v1026_v26 = vmul.f32 %v7364_v60, %v954_v16 }
 0x364   :  { %2671 = vmatmul.mubr.bf16.gmra.mrb[64].mxu1 %v8127_v54  ;;  %v1610_v14 = vmax.f32 %v1546_v28, 0.0  ;;  %v290_v28 = vld [vmem:[#allocation12 + $0x130] sm:$0xff] }
 0x365   :  { %2680 = vmatprep.mubr.bf16.mxu1 %v8632_v56  ;;  %v1090_v57 = vadd.f32 %v1026_v26, %v702_v45 }
 0x366   :  { %v958_v3 = vpop.permute.xlu1 %957 }
 0x367   :  { %v1027_v47 = vmul.f32 %v7364_v60, %v958_v3  ;;  %v2522_v42 = vpop.f32.mrb[4].mxu1 }
 0x368   :  { %v3891_v23 = vmax.f32 %v3890_v21, %v2522_v42  ;;  %v2524_v25 = vpop.f32.mrb[5].mxu1 }
 0x369   :  { %v1091_v5 = vadd.f32 %v1027_v47, %v703_v34  ;;  %v3928_v35 = vmax.f32 %v3927_v11, %v2524_v25  ;;  %v2526_v31 = vpop.f32.mrb[6].mxu1 }
 0x36a   :  { %v3892_v53 = vmax.f32 %v3891_v23, %v2526_v31  ;;  %v2528_v59 = vpop.f32.mrb[7].mxu1 }
 0x36b   :  { %v1338_v13 = vpop.permute.xlu1 %1337  ;;  %v3929_v9 = vmax.f32 %v3928_v35, %v2528_v59  ;;  %v1479_v51 = vadd.f32 %v1415_v44, %v1091_v5 }
 0x36c   :  { %v1413_v36 = vmul.f32 %v7372_v62, %v1338_v13  ;;  %2681 = vmatmul.mubr.bf16.gmra.mrb[68].mxu1 %v8125_v52  ;;  %v263_v13 = vld [vmem:[#allocation12 + $0x58] sm:$0xff] }
 0x36d   :  { %2690 = vmatprep.mubr.bf16.mxu1 %v8632_v56  ;;  %v1549_v21 = vadd.f32 %v8077_v19, %v1479_v51 }
 0x36e   :  { %v1477_v2 = vadd.f32 %v1413_v36, %v1089_v41  ;;  %v286_v36 = vld [vmem:[#allocation12 + $0x110] sm:$0xff] }
 0x36f   :  { %v1342_v55 = vpop.permute.xlu1 %1341  ;;  %v2532_v63 = vpop.f32.mrb[8].mxu1  ;;  %v1613_v10 = vmax.f32 %v1549_v21, 0.0 }
 0x370   :  { %v1547_v40 = vadd.f32 %v8077_v19, %v1477_v2  ;;  %v1414_v7 = vmul.f32 %v7372_v62, %v1342_v55  ;;  %v3893_v49 = vmax.f32 %v3892_v53, %v2532_v63  ;;  %v2534_v61 = vpop.f32.mrb[9].mxu1  ;;  %v6085_v2 = vcombine.low %v286_v36, %v290_v28 }
 0x371   :  { %v3930_v43 = vmax.f32 %v3929_v9, %v2534_v61  ;;  %v2536_v3 = vpop.f32.mrb[10].mxu1  ;;  %v267_v9 = vld [vmem:[#allocation12 + $0x78] sm:$0xff]  ;;  %v6086_v55 = vcombine.high %v286_v36, %v290_v28 }
 0x372   :  { %v1611_v11 = vmax.f32 %v1547_v40, 0.0  ;;  %v1478_v27 = vadd.f32 %v1414_v7, %v1090_v57  ;;  %v3894_v47 = vmax.f32 %v3893_v49, %v2536_v3  ;;  %v2538_v60 = vpop.f32.mrb[11].mxu1 }
 0x373   :  { %v3931_v37 = vmax.f32 %v3930_v43, %v2538_v60  ;;  %3192 = vmatprep.subr.bf16.mxu1 %v6086_v55  ;;  %v275_v43 = vld [vmem:[#allocation12 + $0xb8] sm:$0xff] }
 0x374   :  { %v1644_v16 = vpack.c.bf16 %v1611_v11, %v1610_v14  ;;  %v1548_v1 = vadd.f32 %v8077_v19, %v1478_v27  ;;  %v6064_v14 = vcombine.high %v263_v13, %v267_v9  ;;  %v271_v27 = vld [vmem:[#allocation12 + $0x98] sm:$0xff]  ;;  %3193 = vmatpush1.bf16.msra.mxu1 %v6085_v2 }
 0x376   :  { %v1612_v34 = vmax.f32 %v1548_v1, 0.0  ;;  %6386 = vmatprep.mubr.msk.bf16.mxu0 %vm1676_vm0, %v1644_v16 }
 0x377   :  { %v2542_v42 = vpop.f32.mrb[12].mxu1 }
 0x378   :  { %v1645_v62 = vpack.c.bf16 %v1613_v10, %v1612_v34  ;;  %v3895_v6 = vmax.f32 %v3894_v47, %v2542_v42  ;;  %v2544_v23 = vpop.f32.mrb[13].mxu1  ;;  %v6063_v10 = vcombine.low %v263_v13, %v267_v9  ;;  %v279_v42 = vld [vmem:[#allocation12 + $0xd8] sm:$0xff] }
 0x379   :  { %v3932_v25 = vmax.f32 %v3931_v37, %v2544_v23  ;;  %v2546_v5 = vpop.f32.mrb[14].mxu1  ;;  %v6071_v23 = vcombine.low %v271_v27, %v275_v43 }
 0x37a   :  { %6387 = vmatmul.mubr.msk.bf16.gmra.mrb[60].mxu0 %vm1676_vm0, %v1645_v62  ;;  %v3896_v44 = vmax.f32 %v3895_v6, %v2546_v5  ;;  %v2548_v31 = vpop.f32.mrb[15].mxu1  ;;  %v6072_v62 = vcombine.high %v271_v27, %v275_v43  ;;  %v283_v6 = vld [vmem:[#allocation12 + $0xf8] sm:$0xff] }
 0x37b   :  { %v6364_v35 = vpop.f32.mrb[36].mxu0  ;;  %2863 = vmatprep.mubr.bf16.mxu0 %v8632_v56  ;;  %v3933_v53 = vmax.f32 %v3932_v25, %v2548_v31  ;;  %v6080_v5 = vcombine.high %v279_v42, %v283_v6 }
 0x37c   :  { %v1960_v19 = vadd.f32 %v8118_v18, %v6364_v35  ;;  %v1951_v59 = vpop.f32.mrb[37].mxu0 }
 0x37d   :  { %v1952_v41 = vadd.f32 %v8118_v18, %v1951_v59  ;;  %v6365_v45 = vpop.f32.mrb[38].mxu0  ;;  %v6079_v59 = vcombine.low %v279_v42, %v283_v6 }
 0x37e   :  { %v1963_v26 = vadd.f32 %v8118_v18, %v6365_v45  ;;  %v1954_v51 = vpop.f32.mrb[39].mxu0  ;;  %v2100_v40 = vmax.f32 %v1960_v19, 0.0 }
 0x37f   :  { %v1955_v57 = vadd.f32 %v8118_v18, %v1954_v51  ;;  %v2552_v63 = vpop.f32.mrb[16].mxu1  ;;  %v2098_v49 = vmax.f32 %v1952_v41, 0.0 }
 0x380   :  { %v2101_v7 = vmax.f32 %v1963_v26, 0.0  ;;  %v3897_v21 = vmax.f32 %v3896_v44, %v2552_v63  ;;  %v2554_v11 = vpop.f32.mrb[17].mxu1  ;;  %v291_v44 = vld [vmem:[#allocation12 + $0x138] sm:$0xff] }
 0x381   :  { %v2099_v61 = vmax.f32 %v1955_v57, 0.0  ;;  %v3934_v47 = vmax.f32 %v3933_v53, %v2554_v11  ;;  %v2556_v60 = vpop.f32.mrb[18].mxu1 }
 0x382   :  { %v8156_v3 = vpack.c.bf16 %v2101_v7, %v2100_v40  ;;  %2864 = vmatmul.mubr.bf16.vlgmr.msra.gmra.mrb[64].mxu0 %v7843_v4  ;;  %v3898_v1 = vmax.f32 %v3897_v21, %v2556_v60  ;;  %v2558_v37 = vpop.f32.mrb[19].mxu1 }
 0x383   :  { %v8159_v16 = vpack.c.bf16 %v2099_v61, %v2098_v49  ;;  %3538 = vmatpush1.bf16.msra.mxu0 %v6055_v39  ;;  %2873 = vmatprep.mubr.bf16.mxu0 %v8632_v56  ;;  %v3935_v34 = vmax.f32 %v3934_v47, %v2558_v37  ;;  %v287_v39 = vld [vmem:[#allocation12 + $0x118] sm:$0xff] }
 0x384   :  { %3539 = vmatprep.subr.bf16.mxu0 %v6064_v14  ;;  %v6088_v41 = vcombine.high %v287_v39, %v291_v44  ;;  %v6087_v45 = vcombine.low %v287_v39, %v291_v44 }
 0x385   :  { %2691 = vmatmul.mubr.bf16.gmra.mrb[72].mxu1 %v8159_v16 }
 0x386   :  { %2700 = vmatprep.mubr.bf16.mxu1 %v8632_v56 }
 0x387   :  { %3540 = vmatpush1.bf16.msra.mxu0 %v6063_v10  ;;  %v2562_v25 = vpop.f32.mrb[20].mxu1 }
 0x388   :  { %3541 = vmatprep.subr.bf16.mxu0 %v6072_v62  ;;  %v3899_v22 = vmax.f32 %v3898_v1, %v2562_v25  ;;  %v2564_v48 = vpop.f32.mrb[21].mxu1 }
 0x389   :  { %v3936_v35 = vmax.f32 %v3935_v34, %v2564_v48  ;;  %v2566_v31 = vpop.f32.mrb[22].mxu1 }
 0x38a   :  { %2874 = vmatmul.mubr.bf16.gmra.mrb[68].mxu0 %v7841_v50  ;;  %v3900_v19 = vmax.f32 %v3899_v22, %v2566_v31  ;;  %v2568_v53 = vpop.f32.mrb[23].mxu1 }
 0x38b   :  { %2883 = vmatprep.mubr.bf16.mxu0 %v8632_v56  ;;  %3542 = vmatpush1.bf16.msra.mxu0 %v6071_v23  ;;  %v3937_v13 = vmax.f32 %v3936_v35, %v2568_v53  ;;  %v294_v53 = vld [vmem:[#allocation12 + $0x150] sm:$0xff] }
 0x38c   :  { %3543 = vmatprep.subr.bf16.mxu0 %v6080_v5 }
 0x38d   :  { %2701 = vmatmul.mubr.bf16.gmra.mrb[76].mxu1 %v8156_v3 }
 0x38e   :  { %2710 = vmatprep.mubr.bf16.mxu1 %v8632_v56 }
 0x38f   :  { %3544 = vmatpush1.bf16.msra.mxu0 %v6079_v59  ;;  %v2572_v9 = vpop.f32.mrb[24].mxu1  ;;  %v298_v59 = vld [vmem:[#allocation12 + $0x170] sm:$0xff] }
 0x390   :  { %3545 = vmatprep.subr.bf16.mxu0 %v6088_v41  ;;  %v3901_v36 = vmax.f32 %v3900_v19, %v2572_v9  ;;  %v2574_v28 = vpop.f32.mrb[25].mxu1  ;;  %v299_v9 = vld [vmem:[#allocation12 + $0x178] sm:$0xff] }
 0x391   :  { %v3938_v26 = vmax.f32 %v3937_v13, %v2574_v28  ;;  %v2576_v51 = vpop.f32.mrb[26].mxu1  ;;  %v295_v13 = vld [vmem:[#allocation12 + $0x158] sm:$0xff] }
 0x392   :  { %2884 = vmatmul.mubr.bf16.gmra.mrb[72].mxu0 %v7860_v24  ;;  %v3902_v2 = vmax.f32 %v3901_v36, %v2576_v51  ;;  %v2578_v55 = vpop.f32.mrb[27].mxu1  ;;  %v6093_v36 = vcombine.low %v294_v53, %v298_v59  ;;  %v6096_v28 = vcombine.high %v295_v13, %v299_v9 }
 0x393   :  { %2893 = vmatprep.mubr.bf16.mxu0 %v8632_v56  ;;  %3546 = vmatpush1.bf16.msra.mxu0 %v6087_v45  ;;  %v3939_v57 = vmax.f32 %v3938_v26, %v2578_v55  ;;  %v6094_v45 = vcombine.high %v294_v53, %v298_v59  ;;  %v6095_v26 = vcombine.low %v295_v13, %v299_v9 }
 0x394   :  { %3547 = vmatprep.subr.bf16.mxu0 %v6096_v28 }
 0x395   :  { %3194 = vmatprep.subr.bf16.mxu1 %v6094_v45 }
 0x396   :  { %3195 = vmatpush1.bf16.msra.mxu1 %v6093_v36 }
 0x397   :  { %v2582_v40 = vpop.f32.mrb[28].mxu1  ;;  %3548 = vmatpush1.bf16.msra.mxu0 %v6095_v26 }
 0x398   :  { %v3903_v7 = vmax.f32 %v3902_v2, %v2582_v40  ;;  %v2584_v63 = vpop.f32.mrb[29].mxu1 }
 0x399   :  { %v3940_v14 = vmax.f32 %v3939_v57, %v2584_v63  ;;  %v2586_v49 = vpop.f32.mrb[30].mxu1 }
 0x39a   :  { %2894 = vmatmul.mubr.bf16.gmra.mrb[76].mxu0 %v7857_v12  ;;  %v3904_v61 = vmax.f32 %v3903_v7, %v2586_v49  ;;  %v2588_v21 = vpop.f32.mrb[31].mxu1 }
 0x39b   :  { %2903 = vmatprep.mubr.bf16.mxu0 %v8632_v56  ;;  %v3941_v11 = vmax.f32 %v3940_v14, %v2588_v21 }
 0x3a0   :  { %v6368_v27 = vpop.f32.mrb[40].mxu0 }
 0x3a1   :  { %v1976_v43 = vadd.f32 %v8118_v18, %v6368_v27  ;;  %v1967_v47 = vpop.f32.mrb[41].mxu0  ;;  %v306_v27 = vld [vmem:[#allocation12 + $0x1b0] sm:$0xff] }
 0x3a2   :  { %v1968_v60 = vadd.f32 %v8118_v18, %v1967_v47  ;;  %v6369_v1 = vpop.f32.mrb[42].mxu0  ;;  %2904 = vmatmul.mubr.bf16.gmra.mrb[80].mxu0 %v7887_v33 }
 0x3a3   :  { %v1979_v37 = vadd.f32 %v8118_v18, %v6369_v1  ;;  %v1970_v10 = vpop.f32.mrb[43].mxu0  ;;  %2913 = vmatprep.mubr.bf16.mxu0 %v8632_v56  ;;  %v2104_v62 = vmax.f32 %v1976_v43, 0.0  ;;  %v303_v43 = vld [vmem:[#allocation12 + $0x198] sm:$0xff] }
 0x3a4   :  { %v1971_v34 = vadd.f32 %v8118_v18, %v1970_v10  ;;  %v2102_v6 = vmax.f32 %v1968_v60, 0.0  ;;  %v307_v10 = vld [vmem:[#allocation12 + $0x1b8] sm:$0xff] }
 0x3a5   :  { %v2105_v42 = vmax.f32 %v1979_v37, 0.0 }
 0x3a6   :  { %v2103_v23 = vmax.f32 %v1971_v34, 0.0 }
 0x3a7   :  { %v8181_v25 = vpack.c.bf16 %v2105_v42, %v2104_v62  ;;  %v6103_v42 = vcombine.low %v303_v43, %v307_v10 }
 0x3a8   :  { %v8183_v5 = vpack.c.bf16 %v2103_v23, %v2102_v6  ;;  %v6104_v6 = vcombine.high %v303_v43, %v307_v10 }
 0x3aa   :  { %2711 = vmatmul.mubr.bf16.gmra.mrb[80].mxu1 %v8183_v5  ;;  %2914 = vmatmul.mubr.bf16.gmra.mrb[84].mxu0 %v7884_v15 }
 0x3ab   :  { %v2592_v22 = vpop.f32.mrb[32].mxu1  ;;  %2720 = vmatprep.mubr.bf16.mxu1 %v8632_v56  ;;  %2923 = vmatprep.mubr.bf16.mxu0 %v8632_v56 }
 0x3ac   :  { %v3905_v48 = vmax.f32 %v3904_v61, %v2592_v22  ;;  %v2594_v39 = vpop.f32.mrb[33].mxu1  ;;  %3549 = vmatprep.subr.bf16.mxu0 %v6104_v6 }
 0x3ad   :  { %v3942_v44 = vmax.f32 %v3941_v11, %v2594_v39  ;;  %v2596_v35 = vpop.f32.mrb[34].mxu1  ;;  %v302_v11 = vld [vmem:[#allocation12 + $0x190] sm:$0xff]  ;;  %3550 = vmatpush1.bf16.msra.mxu0 %v6103_v42 }
 0x3ae   :  { %v3906_v31 = vmax.f32 %v3905_v48, %v2596_v35  ;;  %v2598_v19 = vpop.f32.mrb[35].mxu1  ;;  %v6101_v1 = vcombine.low %v302_v11, %v306_v27  ;;  %v6102_v37 = vcombine.high %v302_v11, %v306_v27  ;;  %v315_v11 = vld [vmem:[#allocation12 + $0x1f8] sm:$0xff] }
 0x3af   :  { %v3943_v41 = vmax.f32 %v3942_v44, %v2598_v19 }
 0x3b0   :  { %3196 = vmatprep.subr.bf16.mxu1 %v6102_v37 }
 0x3b1   :  { %3197 = vmatpush1.bf16.msra.mxu1 %v6101_v1 }
 0x3b2   :  { %2721 = vmatmul.mubr.bf16.gmra.mrb[84].mxu1 %v8181_v25  ;;  %2924 = vmatmul.mubr.bf16.gmra.mrb[88].mxu0 %v7918_v17 }
 0x3b3   :  { %v2602_v51 = vpop.f32.mrb[36].mxu1  ;;  %2933 = vmatprep.mubr.bf16.mxu0 %v8632_v56  ;;  %2730 = vmatprep.mubr.bf16.mxu1 %v8632_v56 }
 0x3b4   :  { %v3907_v2 = vmax.f32 %v3906_v31, %v2602_v51  ;;  %v2604_v55 = vpop.f32.mrb[37].mxu1 }
 0x3b5   :  { %v3944_v57 = vmax.f32 %v3943_v41, %v2604_v55  ;;  %v2606_v40 = vpop.f32.mrb[38].mxu1 }
 0x3b6   :  { %v3908_v7 = vmax.f32 %v3907_v2, %v2606_v40  ;;  %v2608_v63 = vpop.f32.mrb[39].mxu1 }
 0x3b7   :  { %v3945_v14 = vmax.f32 %v3944_v57, %v2608_v63  ;;  %v310_v63 = vld [vmem:[#allocation12 + $0x1d0] sm:$0xff] }
 0x3ba   :  { %2934 = vmatmul.mubr.bf16.gmra.mrb[92].mxu0 %v7915_v30 }
 0x3bb   :  { %2943 = vmatprep.mubr.bf16.mxu0 %v8632_v56 }
 0x3c1   :  { %v6372_v49 = vpop.f32.mrb[44].mxu0 }
 0x3c2   :  { %v1992_v61 = vadd.f32 %v8118_v18, %v6372_v49  ;;  %v1983_v21 = vpop.f32.mrb[45].mxu0  ;;  %2944 = vmatmul.mubr.bf16.gmra.mrb[96].mxu0 %v7961_v29 }
 0x3c3   :  { %v1984_v47 = vadd.f32 %v8118_v18, %v1983_v21  ;;  %v6373_v60 = vpop.f32.mrb[46].mxu0  ;;  %2953 = vmatprep.mubr.bf16.mxu0 %v8632_v56  ;;  %v311_v21 = vld [vmem:[#allocation12 + $0x1d8] sm:$0xff] }
 0x3c4   :  { %v1995_v34 = vadd.f32 %v8118_v18, %v6373_v60  ;;  %v1986_v62 = vpop.f32.mrb[47].mxu0  ;;  %v2108_v22 = vmax.f32 %v1992_v61, 0.0  ;;  %v6111_v27 = vcombine.low %v311_v21, %v315_v11  ;;  %v6112_v43 = vcombine.high %v311_v21, %v315_v11 }
 0x3c5   :  { %v1987_v23 = vadd.f32 %v8118_v18, %v1986_v62  ;;  %v2106_v39 = vmax.f32 %v1984_v47, 0.0 }
 0x3c6   :  { %v2109_v48 = vmax.f32 %v1995_v34, 0.0  ;;  %3551 = vmatprep.subr.bf16.mxu0 %v6112_v43 }
 0x3c7   :  { %v2107_v44 = vmax.f32 %v1987_v23, 0.0  ;;  %3552 = vmatpush1.bf16.msra.mxu0 %v6111_v27 }
 0x3c8   :  { %v8201_v35 = vpack.c.bf16 %v2109_v48, %v2108_v22 }
 0x3c9   :  { %v8203_v31 = vpack.c.bf16 %v2107_v44, %v2106_v39 }
 0x3ca   :  { %2954 = vmatmul.mubr.bf16.gmra.mrb[100].mxu0 %v7957_v58 }
 0x3cb   :  { %2731 = vmatmul.mubr.bf16.gmra.mrb[88].mxu1 %v8203_v31  ;;  %2963 = vmatprep.mubr.bf16.mxu0 %v8632_v56 }
 0x3cc   :  { %v2612_v19 = vpop.f32.mrb[40].mxu1  ;;  %2740 = vmatprep.mubr.bf16.mxu1 %v8632_v56 }
 0x3cd   :  { %v3909_v53 = vmax.f32 %v3908_v7, %v2612_v19  ;;  %v2614_v59 = vpop.f32.mrb[41].mxu1 }
 0x3ce   :  { %v3946_v13 = vmax.f32 %v3945_v14, %v2614_v59  ;;  %v2616_v41 = vpop.f32.mrb[42].mxu1  ;;  %v314_v14 = vld [vmem:[#allocation12 + $0x1f0] sm:$0xff] }
 0x3cf   :  { %v3910_v45 = vmax.f32 %v3909_v53, %v2616_v41  ;;  %v2618_v9 = vpop.f32.mrb[43].mxu1  ;;  %v6110_v49 = vcombine.high %v310_v63, %v314_v14  ;;  %v6109_v61 = vcombine.low %v310_v63, %v314_v14 }
 0x3d0   :  { %v3947_v36 = vmax.f32 %v3946_v13, %v2618_v9 }
 0x3d1   :  { %3198 = vmatprep.subr.bf16.mxu1 %v6110_v49 }
 0x3d2   :  { %2964 = vmatmul.mubr.bf16.gmra.mrb[104].mxu0 %v8018_v38  ;;  %3199 = vmatpush1.bf16.msra.mxu1 %v6109_v61 }
 0x3d3   :  { %2741 = vmatmul.mubr.bf16.gmra.mrb[92].mxu1 %v8201_v35  ;;  %2973 = vmatprep.mubr.bf16.mxu0 %v8632_v56 }
 0x3d4   :  { %v2622_v28 = vpop.f32.mrb[44].mxu1  ;;  %2750 = vmatprep.mubr.bf16.mxu1 %v8632_v56 }
 0x3d5   :  { %v3911_v26 = vmax.f32 %v3910_v45, %v2622_v28  ;;  %v2624_v51 = vpop.f32.mrb[45].mxu1 }
 0x3d6   :  { %v3948_v2 = vmax.f32 %v3947_v36, %v2624_v51  ;;  %v2626_v55 = vpop.f32.mrb[46].mxu1 }
 0x3d7   :  { %v3912_v57 = vmax.f32 %v3911_v26, %v2626_v55  ;;  %v2628_v40 = vpop.f32.mrb[47].mxu1 }
 0x3d8   :  { %v3949_v7 = vmax.f32 %v3948_v2, %v2628_v40 }
 0x3da   :  { %2974 = vmatmul.mubr.bf16.gmra.mrb[108].mxu0 %v8011_v20 }
 0x3db   :  { %2983 = vmatprep.mubr.bf16.mxu0 %v8632_v56 }
 0x3e2   :  { %2984 = vmatmul.mubr.bf16.gmra.mrb[112].mxu0 %v8059_v8 }
 0x3e3   :  { %2993 = vmatprep.mubr.bf16.mxu0 %v8632_v56 }
 0x3e6   :  { %v6376_v47 = vpop.f32.mrb[48].mxu0 }
 0x3e7   :  { %v2008_v60 = vadd.f32 %v8118_v18, %v6376_v47  ;;  %v1999_v1 = vpop.f32.mrb[49].mxu0 }
 0x3e8   :  { %v2000_v37 = vadd.f32 %v8118_v18, %v1999_v1  ;;  %v6377_v10 = vpop.f32.mrb[50].mxu0 }
 0x3e9   :  { %v2011_v34 = vadd.f32 %v8118_v18, %v6377_v10  ;;  %v2002_v62 = vpop.f32.mrb[51].mxu0  ;;  %v2112_v6 = vmax.f32 %v2008_v60, 0.0 }
 0x3ea   :  { %v2003_v42 = vadd.f32 %v8118_v18, %v2002_v62  ;;  %2994 = vmatmul.mubr.bf16.gmra.mrb[116].mxu0 %v8054_v32  ;;  %v2110_v22 = vmax.f32 %v2000_v37, 0.0 }
 0x3eb   :  { %v2113_v23 = vmax.f32 %v2011_v34, 0.0  ;;  %3003 = vmatprep.mubr.bf16.mxu0 %v8632_v56 }
 0x3ec   :  { %v2111_v48 = vmax.f32 %v2003_v42, 0.0 }
 0x3ed   :  { %v8223_v39 = vpack.c.bf16 %v2113_v23, %v2112_v6 }
 0x3ee   :  { %v8225_v44 = vpack.c.bf16 %v2111_v48, %v2110_v22 }
 0x3f0   :  { %2751 = vmatmul.mubr.bf16.gmra.mrb[96].mxu1 %v8225_v44 }
 0x3f1   :  { %v2632_v19 = vpop.f32.mrb[48].mxu1  ;;  %2760 = vmatprep.mubr.bf16.mxu1 %v8632_v56 }
 0x3f2   :  { %v3913_v53 = vmax.f32 %v3912_v57, %v2632_v19  ;;  %v2634_v59 = vpop.f32.mrb[49].mxu1  ;;  %3004 = vmatmul.mubr.bf16.gmra.mrb[120].mxu0 %v8096_v0 }
 0x3f3   :  { %v3950_v13 = vmax.f32 %v3949_v7, %v2634_v59  ;;  %v2636_v41 = vpop.f32.mrb[50].mxu1  ;;  %3013 = vmatprep.mubr.bf16.mxu0 %v8632_v56 }
 0x3f4   :  { %v3914_v45 = vmax.f32 %v3913_v53, %v2636_v41  ;;  %v2638_v9 = vpop.f32.mrb[51].mxu1 }
 0x3f5   :  { %v3951_v36 = vmax.f32 %v3950_v13, %v2638_v9 }
 0x3f8   :  { %2761 = vmatmul.mubr.bf16.gmra.mrb[100].mxu1 %v8223_v39 }
 0x3f9   :  { %v2642_v28 = vpop.f32.mrb[52].mxu1  ;;  %2770 = vmatprep.mubr.bf16.mxu1 %v8632_v56 }
 0x3fa   :  { %v3915_v26 = vmax.f32 %v3914_v45, %v2642_v28  ;;  %v2644_v51 = vpop.f32.mrb[53].mxu1  ;;  %3014 = vmatmul.mubr.bf16.gmra.mrb[124].mxu0 %v8094_v46 }
 0x3fb   :  { %v3952_v2 = vmax.f32 %v3951_v36, %v2644_v51  ;;  %v2646_v55 = vpop.f32.mrb[54].mxu1  ;;  %3023 = vmatprep.mubr.bf16.mxu0 %v8632_v56 }
 0x3fc   :  { %v3916_v57 = vmax.f32 %v3915_v26, %v2646_v55  ;;  %v2648_v40 = vpop.f32.mrb[55].mxu1 }
 0x3fd   :  { %v3953_v7 = vmax.f32 %v3952_v2, %v2648_v40 }
 0x402   :  { %3024 = vmatmul.mubr.bf16.gmra.mrb[128].mxu0 %v8127_v54 }
 0x403   :  { %3033 = vmatprep.mubr.bf16.mxu0 %v8632_v56 }
 0x407   :  { %v6380_v63 = vpop.f32.mrb[52].mxu0 }
 0x408   :  { %v2024_v14 = vadd.f32 %v8118_v18, %v6380_v63  ;;  %v2015_v49 = vpop.f32.mrb[53].mxu0 }
 0x409   :  { %v2016_v61 = vadd.f32 %v8118_v18, %v2015_v49  ;;  %v6381_v21 = vpop.f32.mrb[54].mxu0 }
 0x40a   :  { %v2027_v11 = vadd.f32 %v8118_v18, %v6381_v21  ;;  %v2018_v27 = vpop.f32.mrb[55].mxu0  ;;  %3034 = vmatmul.mubr.bf16.gmra.mrb[132].mxu0 %v8125_v52  ;;  %v2116_v47 = vmax.f32 %v2024_v14, 0.0 }
 0x40b   :  { %v2019_v43 = vadd.f32 %v8118_v18, %v2018_v27  ;;  %3043 = vmatprep.mubr.bf16.mxu0 %v8632_v56  ;;  %v2114_v1 = vmax.f32 %v2016_v61, 0.0 }
 0x40c   :  { %v2117_v60 = vmax.f32 %v2027_v11, 0.0 }
 0x40d   :  { %v2115_v37 = vmax.f32 %v2019_v43, 0.0 }
 0x40e   :  { %v8243_v10 = vpack.c.bf16 %v2117_v60, %v2116_v47 }
 0x40f   :  { %v8245_v34 = vpack.c.bf16 %v2115_v37, %v2114_v1 }
 0x411   :  { %2771 = vmatmul.mubr.bf16.gmra.mrb[104].mxu1 %v8245_v34 }
 0x412   :  { %v2652_v62 = vpop.f32.mrb[56].mxu1  ;;  %3044 = vmatmul.mubr.bf16.gmra.mrb[136].mxu0 %v8159_v16  ;;  %2780 = vmatprep.mubr.bf16.mxu1 %v8632_v56 }
 0x413   :  { %v3917_v42 = vmax.f32 %v3916_v57, %v2652_v62  ;;  %v2654_v6 = vpop.f32.mrb[57].mxu1  ;;  %3053 = vmatprep.mubr.bf16.mxu0 %v8632_v56 }
 0x414   :  { %v3954_v23 = vmax.f32 %v3953_v7, %v2654_v6  ;;  %v2656_v22 = vpop.f32.mrb[58].mxu1 }
 0x415   :  { %v3918_v48 = vmax.f32 %v3917_v42, %v2656_v22  ;;  %v2658_v19 = vpop.f32.mrb[59].mxu1 }
 0x416   :  { %v3955_v53 = vmax.f32 %v3954_v23, %v2658_v19 }
 0x419   :  { %2781 = vmatmul.mubr.bf16.gmra.mrb[108].mxu1 %v8243_v10 }
 0x41a   :  { %v2662_v59 = vpop.f32.mrb[60].mxu1  ;;  %3054 = vmatmul.mubr.bf16.gmra.mrb[140].mxu0 %v8156_v3  ;;  %2790 = vmatprep.mubr.bf16.mxu1 %v8632_v56 }
 0x41b   :  { %v3919_v13 = vmax.f32 %v3918_v48, %v2662_v59  ;;  %v2664_v41 = vpop.f32.mrb[61].mxu1  ;;  %3063 = vmatprep.mubr.bf16.mxu0 %v8632_v56 }
 0x41c   :  { %v3956_v45 = vmax.f32 %v3955_v53, %v2664_v41  ;;  %v2666_v9 = vpop.f32.mrb[62].mxu1 }
 0x41d   :  { %v3920_v36 = vmax.f32 %v3919_v13, %v2666_v9  ;;  %v2668_v28 = vpop.f32.mrb[63].mxu1 }
 0x41e   :  { %v3957_v26 = vmax.f32 %v3956_v45, %v2668_v28 }
 0x41f   :  { %v3921_v51 = vrot.slane %v3920_v36, 4 }
 0x420   :  { %v3958_v2 = vrot.slane %v3957_v26, 4 }
 0x421   :  { %v3922_v55 = vmax.f32 %v3920_v36, %v3921_v51 }
 0x422   :  { %v3959_v57 = vmax.f32 %v3957_v26, %v3958_v2  ;;  %3064 = vmatmul.mubr.bf16.gmra.mrb[144].mxu0 %v8183_v5 }
 0x423   :  { %v3923_v40 = vrot.slane %v3922_v55, 2  ;;  %3073 = vmatprep.mubr.bf16.mxu0 %v8632_v56 }
 0x424   :  { %v3960_v7 = vrot.slane %v3959_v57, 2 }
 0x425   :  { %v3924_v63 = vmax.f32 %v3922_v55, %v3923_v40 }
 0x426   :  { %v3961_v14 = vmax.f32 %v3959_v57, %v3960_v7 }
 0x427   :  { %v3925_v49 = vrot.slane %v3924_v63, 1 }
 0x428   :  { %v3962_v61 = vrot.slane %v3961_v14, 1 }
 0x429   :  { %v8257_v21 = vmax.f32 %v3924_v63, %v3925_v49 }
 0x42a   :  { %v8259_v11 = vmax.f32 %v3961_v14, %v3962_v61  ;;  %3074 = vmatmul.mubr.bf16.gmra.mrb[148].mxu0 %v8181_v25 }
 0x42b   :  { %3083 = vmatprep.mubr.bf16.mxu0 %v8632_v56 }
 0x42c   :  { %v4502_v27 = vcombine.low %v8257_v21, %v8259_v11  ;;  %v6384_v43 = vpop.f32.mrb[56].mxu0  ;;  %v6582_v21 = vld [vmem:[#allocation15 + $0x94] ss:$8 sps:$4 sm:$0xff]   ;;  %v6585_v11 = vld [vmem:[#allocation15 + $0x1c4] ss:$8 sps:$4 sm:$0xff]  }
 0x42d   :  { %v2040_v47 = vadd.f32 %v8118_v18, %v6384_v43  ;;  %v2031_v60 = vpop.f32.mrb[57].mxu0 }
 0x42e   :  { %v2032_v1 = vadd.f32 %v8118_v18, %v2031_v60  ;;  %v6385_v37 = vpop.f32.mrb[58].mxu0 }
 0x42f   :  { %v2043_v62 = vadd.f32 %v8118_v18, %v6385_v37  ;;  %v2034_v42 = vpop.f32.mrb[59].mxu0  ;;  %v2120_v23 = vmax.f32 %v2040_v47, 0.0 }
 0x430   :  { %v2035_v6 = vadd.f32 %v8118_v18, %v2034_v42  ;;  %v2118_v48 = vmax.f32 %v2032_v1, 0.0 }
 0x431   :  { %v2121_v22 = vmax.f32 %v2043_v62, 0.0 }
 0x432   :  { %v2119_v19 = vmax.f32 %v2035_v6, 0.0  ;;  %3084 = vmatmul.mubr.bf16.gmra.mrb[152].mxu0 %v8203_v31 }
 0x433   :  { %v8270_v53 = vpack.c.bf16 %v2121_v22, %v2120_v23  ;;  %3093 = vmatprep.mubr.bf16.mxu0 %v8632_v56 }
 0x434   :  { %v8273_v59 = vpack.c.bf16 %v2119_v19, %v2118_v48 }
 0x436   :  { %2791 = vmatmul.mubr.bf16.gmra.mrb[112].mxu1 %v8273_v59 }
 0x437   :  { %v2672_v13 = vpop.f32.mrb[64].mxu1  ;;  %2800 = vmatprep.mubr.bf16.mxu1 %v8632_v56 }
 0x438   :  { %v2674_v41 = vpop.f32.mrb[65].mxu1 }
 0x439   :  { %v2676_v45 = vpop.f32.mrb[66].mxu1 }
 0x43a   :  { %v4186_v9 = vmax.f32 %v2672_v13, %v2676_v45  ;;  %v2678_v36 = vpop.f32.mrb[67].mxu1  ;;  %3094 = vmatmul.mubr.bf16.gmra.mrb[156].mxu0 %v8201_v35 }
 0x43b   :  { %v4223_v28 = vmax.f32 %v2674_v41, %v2678_v36  ;;  %3103 = vmatprep.mubr.bf16.mxu0 %v8632_v56 }
 0x43e   :  { %2801 = vmatmul.mubr.bf16.gmra.mrb[116].mxu1 %v8270_v53 }
 0x43f   :  { %v2682_v26 = vpop.f32.mrb[68].mxu1  ;;  %2810 = vmatprep.mubr.bf16.mxu1 %v8632_v56 }
 0x440   :  { %v4187_v51 = vmax.f32 %v4186_v9, %v2682_v26  ;;  %v2684_v2 = vpop.f32.mrb[69].mxu1 }
 0x441   :  { %v4224_v55 = vmax.f32 %v4223_v28, %v2684_v2  ;;  %v2686_v57 = vpop.f32.mrb[70].mxu1 }
 0x442   :  { %v4188_v40 = vmax.f32 %v4187_v51, %v2686_v57  ;;  %v2688_v7 = vpop.f32.mrb[71].mxu1  ;;  %3104 = vmatmul.mubr.bf16.gmra.mrb[160].mxu0 %v8225_v44 }
 0x443   :  { %v4225_v63 = vmax.f32 %v4224_v55, %v2688_v7  ;;  %3113 = vmatprep.mubr.bf16.mxu0 %v8632_v56 }
 0x44a   :  { %3114 = vmatmul.mubr.bf16.gmra.mrb[164].mxu0 %v8223_v39 }
 0x44b   :  { %3123 = vmatprep.mubr.bf16.mxu0 %v8632_v56 }
 0x44d   :  { %v6388_v14 = vpop.f32.mrb[60].mxu0 }
 0x44e   :  { %v2056_v49 = vadd.f32 %v8118_v18, %v6388_v14  ;;  %v2047_v61 = vpop.f32.mrb[61].mxu0 }
 0x44f   :  { %v2048_v43 = vadd.f32 %v8118_v18, %v2047_v61  ;;  %v6389_v47 = vpop.f32.mrb[62].mxu0 }
 0x450   :  { %v2059_v60 = vadd.f32 %v8118_v18, %v6389_v47  ;;  %v2050_v1 = vpop.f32.mrb[63].mxu0  ;;  %v2124_v62 = vmax.f32 %v2056_v49, 0.0 }
 0x451   :  { %v2051_v37 = vadd.f32 %v8118_v18, %v2050_v1  ;;  %v2122_v6 = vmax.f32 %v2048_v43, 0.0 }
 0x452   :  { %v2125_v42 = vmax.f32 %v2059_v60, 0.0  ;;  %3124 = vmatmul.mubr.bf16.gmra.mrb[168].mxu0 %v8245_v34 }
 0x453   :  { %v2123_v23 = vmax.f32 %v2051_v37, 0.0  ;;  %3133 = vmatprep.mubr.bf16.mxu0 %v8632_v56 }
 0x454   :  { %v8291_v22 = vpack.c.bf16 %v2125_v42, %v2124_v62 }
 0x455   :  { %v8293_v48 = vpack.c.bf16 %v2123_v23, %v2122_v6  ;;  %v2865_v19 = vpop.f32.mrb[64].mxu0 }
 0x456   :  { %v2867_v13 = vpop.f32.mrb[65].mxu0 }
 0x457   :  { %2811 = vmatmul.mubr.bf16.gmra.mrb[120].mxu1 %v8293_v48  ;;  %v2869_v41 = vpop.f32.mrb[66].mxu0 }
 0x458   :  { %v3964_v45 = vmax.f32 %v2865_v19, %v2869_v41  ;;  %v2692_v9 = vpop.f32.mrb[72].mxu1  ;;  %v2871_v18 = vpop.f32.mrb[67].mxu0  ;;  %2820 = vmatprep.mubr.bf16.mxu1 %v8632_v56 }
 0x459   :  { %v4189_v36 = vmax.f32 %v4188_v40, %v2692_v9  ;;  %v4001_v28 = vmax.f32 %v2867_v13, %v2871_v18  ;;  %v2694_v26 = vpop.f32.mrb[73].mxu1 }
 0x45a   :  { %v4226_v51 = vmax.f32 %v4225_v63, %v2694_v26  ;;  %v2696_v2 = vpop.f32.mrb[74].mxu1  ;;  %3134 = vmatmul.mubr.bf16.gmra.mrb[172].mxu0 %v8243_v10 }
 0x45b   :  { %v4190_v55 = vmax.f32 %v4189_v36, %v2696_v2  ;;  %v2698_v57 = vpop.f32.mrb[75].mxu1  ;;  %3143 = vmatprep.mubr.bf16.mxu0 %v8632_v56 }
 0x45c   :  { %v4227_v7 = vmax.f32 %v4226_v51, %v2698_v57 }
 0x45d   :  { %v2875_v14 = vpop.f32.mrb[68].mxu0 }
 0x45e   :  { %v3965_v49 = vmax.f32 %v3964_v45, %v2875_v14  ;;  %v2877_v61 = vpop.f32.mrb[69].mxu0 }
 0x45f   :  { %v4002_v43 = vmax.f32 %v4001_v28, %v2877_v61  ;;  %2821 = vmatmul.mubr.bf16.gmra.mrb[124].mxu1 %v8291_v22  ;;  %v2879_v47 = vpop.f32.mrb[70].mxu0 }
 0x460   :  { %v2702_v60 = vpop.f32.mrb[76].mxu1  ;;  %v2881_v40 = vpop.f32.mrb[71].mxu0  ;;  %v3966_v1 = vmax.f32 %v3965_v49, %v2879_v47  ;;  %3216 = vmatprep.mubr.bf16.mxu1 %v8632_v56 }
 0x461   :  { %v4191_v63 = vmax.f32 %v4190_v55, %v2702_v60  ;;  %v2704_v37 = vpop.f32.mrb[77].mxu1  ;;  %v4003_v62 = vmax.f32 %v4002_v43, %v2881_v40 }
 0x462   :  { %v4228_v42 = vmax.f32 %v4227_v7, %v2704_v37  ;;  %v2706_v6 = vpop.f32.mrb[78].mxu1  ;;  %3144 = vmatmul.mubr.bf16.gmra.mrb[176].mxu0 %v8273_v59 }
 0x463   :  { %v4192_v23 = vmax.f32 %v4191_v63, %v2706_v6  ;;  %v2708_v19 = vpop.f32.mrb[79].mxu1  ;;  %3153 = vmatprep.mubr.bf16.mxu0 %v8632_v56 }
 0x464   :  { %v4229_v13 = vmax.f32 %v4228_v42, %v2708_v19 }
 0x465   :  { %v2885_v41 = vpop.f32.mrb[72].mxu0 }
 0x466   :  { %v3967_v45 = vmax.f32 %v3966_v1, %v2885_v41  ;;  %v2887_v9 = vpop.f32.mrb[73].mxu0 }
 0x467   :  { %v4004_v18 = vmax.f32 %v4003_v62, %v2887_v9  ;;  %v2889_v36 = vpop.f32.mrb[74].mxu0  ;;  %3217 = vmatmul.mubr.bf16.vlgmr.msra.gmra.mrb[128].mxu1 %v7843_v4 }
 0x468   :  { %v3968_v28 = vmax.f32 %v3967_v45, %v2889_v36  ;;  %v2891_v26 = vpop.f32.mrb[75].mxu0  ;;  %3226 = vmatprep.mubr.bf16.mxu1 %v8632_v56 }
 0x469   :  { %v4005_v51 = vmax.f32 %v4004_v18, %v2891_v26 }
 0x46a   :  { %3154 = vmatmul.mubr.bf16.gmra.mrb[180].mxu0 %v8270_v53 }
 0x46b   :  { %3163 = vmatprep.mubr.bf16.mxu0 %v8632_v56 }
 0x46d   :  { %v2895_v2 = vpop.f32.mrb[76].mxu0 }
 0x46e   :  { %v3969_v55 = vmax.f32 %v3968_v28, %v2895_v2  ;;  %v2897_v57 = vpop.f32.mrb[77].mxu0 }
 0x46f   :  { %v4006_v7 = vmax.f32 %v4005_v51, %v2897_v57  ;;  %v2899_v14 = vpop.f32.mrb[78].mxu0  ;;  %3227 = vmatmul.mubr.bf16.gmra.mrb[132].mxu1 %v7841_v50 }
 0x470   :  { %v3970_v49 = vmax.f32 %v3969_v55, %v2899_v14  ;;  %v2901_v61 = vpop.f32.mrb[79].mxu0  ;;  %3236 = vmatprep.mubr.bf16.mxu1 %v8632_v56 }
 0x471   :  { %v4007_v43 = vmax.f32 %v4006_v7, %v2901_v61 }
 0x472   :  { %3164 = vmatmul.mubr.bf16.gmra.mrb[184].mxu0 %v8293_v48 }
 0x473   :  { %3173 = vmatprep.mubr.bf16.mxu0 %v8632_v56 }
 0x475   :  { %v2905_v47 = vpop.f32.mrb[80].mxu0 }
 0x476   :  { %v3971_v60 = vmax.f32 %v3970_v49, %v2905_v47  ;;  %v2907_v40 = vpop.f32.mrb[81].mxu0 }
 0x477   :  { %v4008_v1 = vmax.f32 %v4007_v43, %v2907_v40  ;;  %v2909_v63 = vpop.f32.mrb[82].mxu0  ;;  %3237 = vmatmul.mubr.bf16.gmra.mrb[136].mxu1 %v7860_v24 }
 0x478   :  { %v3972_v37 = vmax.f32 %v3971_v60, %v2909_v63  ;;  %v2911_v62 = vpop.f32.mrb[83].mxu0  ;;  %3246 = vmatprep.mubr.bf16.mxu1 %v8632_v56 }
 0x479   :  { %v4009_v42 = vmax.f32 %v4008_v1, %v2911_v62 }
 0x47a   :  { %3174 = vmatmul.mubr.bf16.gmra.mrb[188].mxu0 %v8291_v22 }
 0x47b   :  { %3569 = vmatprep.mubr.bf16.mxu0 %v8632_v56 }
 0x47d   :  { %v2712_v6 = vpop.f32.mrb[80].mxu1  ;;  %v2915_v19 = vpop.f32.mrb[84].mxu0 }
 0x47e   :  { %v4193_v41 = vmax.f32 %v4192_v23, %v2712_v6  ;;  %v3973_v45 = vmax.f32 %v3972_v37, %v2915_v19  ;;  %v2714_v9 = vpop.f32.mrb[81].mxu1  ;;  %v2917_v18 = vpop.f32.mrb[85].mxu0 }
 0x47f   :  { %v4230_v36 = vmax.f32 %v4229_v13, %v2714_v9  ;;  %v4010_v28 = vmax.f32 %v4009_v42, %v2917_v18  ;;  %v2716_v26 = vpop.f32.mrb[82].mxu1  ;;  %v2919_v51 = vpop.f32.mrb[86].mxu0  ;;  %3247 = vmatmul.mubr.bf16.gmra.mrb[140].mxu1 %v7857_v12 }
 0x480   :  { %v4194_v2 = vmax.f32 %v4193_v41, %v2716_v26  ;;  %v3974_v55 = vmax.f32 %v3973_v45, %v2919_v51  ;;  %v2718_v57 = vpop.f32.mrb[83].mxu1  ;;  %v2921_v7 = vpop.f32.mrb[87].mxu0  ;;  %3256 = vmatprep.mubr.bf16.mxu1 %v8632_v56 }
 0x481   :  { %v4231_v14 = vmax.f32 %v4230_v36, %v2718_v57  ;;  %v4011_v49 = vmax.f32 %v4010_v28, %v2921_v7 }
 0x482   :  { %3570 = vmatmul.mubr.bf16.vlgmr.msra.gmra.mrb[192].mxu0 %v7843_v4 }
 0x483   :  { %3579 = vmatprep.mubr.bf16.mxu0 %v8632_v56 }
 0x485   :  { %v2722_v23 = vpop.f32.mrb[84].mxu1  ;;  %v2925_v61 = vpop.f32.mrb[88].mxu0 }
 0x486   :  { %v4195_v13 = vmax.f32 %v4194_v2, %v2722_v23  ;;  %v3975_v43 = vmax.f32 %v3974_v55, %v2925_v61  ;;  %v2724_v47 = vpop.f32.mrb[85].mxu1  ;;  %v2927_v60 = vpop.f32.mrb[89].mxu0 }
 0x487   :  { %v4232_v40 = vmax.f32 %v4231_v14, %v2724_v47  ;;  %v4012_v1 = vmax.f32 %v4011_v49, %v2927_v60  ;;  %v2726_v63 = vpop.f32.mrb[86].mxu1  ;;  %v2929_v37 = vpop.f32.mrb[90].mxu0  ;;  %3257 = vmatmul.mubr.bf16.gmra.mrb[144].mxu1 %v7887_v33 }
 0x488   :  { %v4196_v62 = vmax.f32 %v4195_v13, %v2726_v63  ;;  %v3976_v42 = vmax.f32 %v3975_v43, %v2929_v37  ;;  %v2728_v6 = vpop.f32.mrb[87].mxu1  ;;  %v2931_v19 = vpop.f32.mrb[91].mxu0  ;;  %3266 = vmatprep.mubr.bf16.mxu1 %v8632_v56 }
 0x489   :  { %v4233_v4 = vmax.f32 %v4232_v40, %v2728_v6  ;;  %v4013_v41 = vmax.f32 %v4012_v1, %v2931_v19 }
 0x48a   :  { %3580 = vmatmul.mubr.bf16.gmra.mrb[196].mxu0 %v7841_v50 }
 0x48b   :  { %3589 = vmatprep.mubr.bf16.mxu0 %v8632_v56 }
 0x48d   :  { %v2935_v45 = vpop.f32.mrb[92].mxu0 }
 0x48e   :  { %v3977_v9 = vmax.f32 %v3976_v42, %v2935_v45  ;;  %v2937_v18 = vpop.f32.mrb[93].mxu0 }
 0x48f   :  { %v4014_v36 = vmax.f32 %v4013_v41, %v2937_v18  ;;  %v2939_v28 = vpop.f32.mrb[94].mxu0  ;;  %3267 = vmatmul.mubr.bf16.gmra.mrb[148].mxu1 %v7884_v15 }
 0x490   :  { %v3978_v26 = vmax.f32 %v3977_v9, %v2939_v28  ;;  %v2941_v51 = vpop.f32.mrb[95].mxu0  ;;  %3276 = vmatprep.mubr.bf16.mxu1 %v8632_v56 }
 0x491   :  { %v4015_v2 = vmax.f32 %v4014_v36, %v2941_v51 }
 0x492   :  { %3590 = vmatmul.mubr.bf16.gmra.mrb[200].mxu0 %v7860_v24 }
 0x493   :  { %3599 = vmatprep.mubr.bf16.mxu0 %v8632_v56 }
 0x495   :  { %v2945_v55 = vpop.f32.mrb[96].mxu0 }
 0x496   :  { %v3979_v50 = vmax.f32 %v3978_v26, %v2945_v55  ;;  %v2947_v57 = vpop.f32.mrb[97].mxu0 }
 0x497   :  { %v4016_v7 = vmax.f32 %v4015_v2, %v2947_v57  ;;  %v2949_v14 = vpop.f32.mrb[98].mxu0  ;;  %3277 = vmatmul.mubr.bf16.gmra.mrb[152].mxu1 %v7918_v17 }
 0x498   :  { %v3980_v49 = vmax.f32 %v3979_v50, %v2949_v14  ;;  %v2951_v23 = vpop.f32.mrb[99].mxu0  ;;  %3286 = vmatprep.mubr.bf16.mxu1 %v8632_v56 }
 0x499   :  { %v4017_v61 = vmax.f32 %v4016_v7, %v2951_v23 }
 0x49a   :  { %3600 = vmatmul.mubr.bf16.gmra.mrb[204].mxu0 %v7857_v12 }
 0x49b   :  { %3609 = vmatprep.mubr.bf16.mxu0 %v8632_v56 }
 0x49d   :  { %v2955_v13 = vpop.f32.mrb[100].mxu0 }
 0x49e   :  { %v3981_v24 = vmax.f32 %v3980_v49, %v2955_v13  ;;  %v2732_v43 = vpop.f32.mrb[88].mxu1  ;;  %v2957_v47 = vpop.f32.mrb[101].mxu0 }
 0x49f   :  { %v4197_v60 = vmax.f32 %v4196_v62, %v2732_v43  ;;  %v4018_v40 = vmax.f32 %v4017_v61, %v2957_v47  ;;  %v2734_v1 = vpop.f32.mrb[89].mxu1  ;;  %v2959_v63 = vpop.f32.mrb[102].mxu0  ;;  %3287 = vmatmul.mubr.bf16.gmra.mrb[156].mxu1 %v7915_v30 }
 0x4a0   :  { %v4234_v37 = vmax.f32 %v4233_v4, %v2734_v1  ;;  %v3982_v42 = vmax.f32 %v3981_v24, %v2959_v63  ;;  %v2736_v6 = vpop.f32.mrb[90].mxu1  ;;  %v2961_v19 = vpop.f32.mrb[103].mxu0  ;;  %3296 = vmatprep.mubr.bf16.mxu1 %v8632_v56  ;;  %v6517_v63 = vld [vmem:[#allocation15 + $0x100] ss:$8 sps:$4 sm:$0xff]  }
 0x4a1   :  { %v4198_v41 = vmax.f32 %v4197_v60, %v2736_v6  ;;  %v4019_v12 = vmax.f32 %v4018_v40, %v2961_v19  ;;  %v2738_v45 = vpop.f32.mrb[91].mxu1 }
 0x4a2   :  { %v4235_v9 = vmax.f32 %v4234_v37, %v2738_v45  ;;  %3610 = vmatmul.mubr.bf16.gmra.mrb[208].mxu0 %v7887_v33 }
 0x4a3   :  { %3619 = vmatprep.mubr.bf16.mxu0 %v8632_v56 }
 0x4a5   :  { %v2965_v62 = vpop.f32.mrb[104].mxu0 }
 0x4a6   :  { %v3983_v18 = vmax.f32 %v3982_v42, %v2965_v62  ;;  %v2742_v36 = vpop.f32.mrb[92].mxu1  ;;  %v2967_v28 = vpop.f32.mrb[105].mxu0 }
 0x4a7   :  { %v8335_v26 = vmax.f32 %v4198_v41, %v2742_v36  ;;  %v4020_v4 = vmax.f32 %v4019_v12, %v2967_v28  ;;  %v2744_v51 = vpop.f32.mrb[93].mxu1  ;;  %v2969_v2 = vpop.f32.mrb[106].mxu0  ;;  %3297 = vmatmul.mubr.bf16.gmra.mrb[160].mxu1 %v7961_v29  ;;  %v6523_v28 = vld [vmem:[#allocation15 + $0x120] ss:$8 sps:$4 sm:$0xff]  }
 0x4a8   :  { %v8338_v55 = vmax.f32 %v4235_v9, %v2744_v51  ;;  %v3984_v50 = vmax.f32 %v3983_v18, %v2969_v2  ;;  %v8340_v57 = vpop.f32.mrb[94].mxu1  ;;  %v2971_v7 = vpop.f32.mrb[107].mxu0  ;;  %3306 = vmatprep.mubr.bf16.mxu1 %v8632_v56  ;;  %v6522_v9 = vld [vmem:[#allocation15 + $0x114] ss:$8 sps:$4 sm:$0xff]   ;;  %v6525_v18 = vld [vmem:[#allocation15 + $0x124] ss:$8 sps:$4 sm:$0xff]  }
 0x4a9   :  { %v4200_v33 = vmax.f32 %v8335_v26, %v8340_v57  ;;  %v4021_v14 = vmax.f32 %v4020_v4, %v2971_v7  ;;  %v8345_v49 = vpop.f32.mrb[95].mxu1  ;;  %v6531_v7 = vld [vmem:[#allocation15 + $0x134] ss:$8 sps:$4 sm:$0xff]  }
 0x4aa   :  { %v4237_v23 = vmax.f32 %v8338_v55, %v8345_v49  ;;  %3620 = vmatmul.mubr.bf16.gmra.mrb[212].mxu0 %v7884_v15  ;;  %v6519_v15 = vld [vmem:[#allocation15 + $0x104] ss:$8 sps:$4 sm:$0xff]   ;;  %v6543_v49 = vld [vmem:[#allocation15 + $0x154] ss:$8 sps:$4 sm:$0xff]  }
 0x4ab   :  { %3629 = vmatprep.mubr.bf16.mxu0 %v8632_v56  ;;  %5693 = vmatprep.subr.bf16.mxu1 %v6519_v15  ;;  %v6540_v55 = vld [vmem:[#allocation15 + $0x24] ss:$8 sps:$4 sm:$0xff]  }
 0x4ac   :  { %5694 = vmatpush1.bf16.msra.mxu1 %v6517_v63 }
 0x4ad   :  { %v2975_v61 = vpop.f32.mrb[108].mxu0  ;;  %5695 = vmatprep.subr.bf16.mxu1 %v6522_v9 }
 0x4ae   :  { %v3985_v13 = vmax.f32 %v3984_v50, %v2975_v61  ;;  %v2977_v24 = vpop.f32.mrb[109].mxu0  ;;  %v6526_v61 = vld [vmem:[#allocation15] ss:$8 sps:$4 sm:$0xff]  }
 0x4af   :  { %v4022_v43 = vmax.f32 %v4021_v14, %v2977_v24  ;;  %v2979_v47 = vpop.f32.mrb[110].mxu0  ;;  %3307 = vmatmul.mubr.bf16.gmra.mrb[164].mxu1 %v7957_v58 }
 0x4b0   :  { %v3986_v60 = vmax.f32 %v3985_v13, %v2979_v47  ;;  %v2981_v40 = vpop.f32.mrb[111].mxu0  ;;  %3316 = vmatprep.mubr.bf16.mxu1 %v8632_v56  ;;  %v6529_v13 = vld [vmem:[#allocation15 + $0x130] ss:$8 sps:$4 sm:$0xff]  }
 0x4b1   :  { %v4023_v1 = vmax.f32 %v4022_v43, %v2981_v40  ;;  %v6537_v40 = vld [vmem:[#allocation15 + $0x144] ss:$8 sps:$4 sm:$0xff]  }
 0x4b2   :  { %3630 = vmatmul.mubr.bf16.gmra.mrb[216].mxu0 %v7918_v17  ;;  %v6520_v17 = vld [vmem:[#allocation15 + $0x110] ss:$8 sps:$4 sm:$0xff]  }
 0x4b3   :  { %3639 = vmatprep.mubr.bf16.mxu0 %v8632_v56  ;;  %5696 = vmatpush1.bf16.msra.mxu1 %v6520_v17  ;;  %v6538_v17 = vld [vmem:[#allocation15 + $0x20] ss:$8 sps:$4 sm:$0xff]  }
 0x4b4   :  { %5697 = vmatprep.subr.bf16.mxu1 %v6525_v18  ;;  %v6541_v18 = vld [vmem:[#allocation15 + $0x150] ss:$8 sps:$4 sm:$0xff]  }
 0x4b5   :  { %v2985_v37 = vpop.f32.mrb[112].mxu0 }
 0x4b6   :  { %v3987_v42 = vmax.f32 %v3986_v60, %v2985_v37  ;;  %v2987_v6 = vpop.f32.mrb[113].mxu0  ;;  %v6534_v60 = vld [vmem:[#allocation15 + $0x14] ss:$8 sps:$4 sm:$0xff]   ;;  %v6532_v37 = vld [vmem:[#allocation15 + $0x10] ss:$8 sps:$4 sm:$0xff]  }
 0x4b7   :  { %v4024_v19 = vmax.f32 %v4023_v1, %v2987_v6  ;;  %v2989_v41 = vpop.f32.mrb[114].mxu0  ;;  %3317 = vmatmul.mubr.bf16.gmra.mrb[168].mxu1 %v8018_v38 }
 0x4b8   :  { %v3988_v12 = vmax.f32 %v3987_v42, %v2989_v41  ;;  %v2991_v45 = vpop.f32.mrb[115].mxu0  ;;  %3326 = vmatprep.mubr.bf16.mxu1 %v8632_v56  ;;  %5698 = vmatpush1.bf16.msra.mxu1 %v6523_v28  ;;  %v6535_v42 = vld [vmem:[#allocation15 + $0x140] ss:$8 sps:$4 sm:$0xff]  }
 0x4b9   :  { %v4025_v62 = vmax.f32 %v4024_v19, %v2991_v45  ;;  %5699 = vmatprep.subr.bf16.mxu1 %v6531_v7  ;;  %v6547_v7 = vld [vmem:[#allocation15 + $0x160] ss:$8 sps:$4 sm:$0xff]  }
 0x4ba   :  { %3640 = vmatmul.mubr.bf16.gmra.mrb[220].mxu0 %v7915_v30  ;;  %v6528_v30 = vld [vmem:[#allocation15 + $0x4] ss:$8 sps:$4 sm:$0xff]  }
 0x4bb   :  { %3649 = vmatprep.mubr.bf16.mxu0 %v8632_v56  ;;  %5652 = vmatprep.subr.bf16.mxu0 %v6528_v30  ;;  %v6544_v30 = vld [vmem:[#allocation15 + $0x30] ss:$8 sps:$4 sm:$0xff]  }
 0x4bc   :  { %5653 = vmatpush1.bf16.msra.mxu0 %v6526_v61  ;;  %5700 = vmatpush1.bf16.msra.mxu1 %v6529_v13 }
 0x4bd   :  { %v2995_v36 = vpop.f32.mrb[116].mxu0  ;;  %5654 = vmatprep.subr.bf16.mxu0 %v6534_v60  ;;  %5701 = vmatprep.subr.bf16.mxu1 %v6537_v40 }
 0x4be   :  { %v3989_v26 = vmax.f32 %v3988_v12, %v2995_v36  ;;  %v2997_v4 = vpop.f32.mrb[117].mxu0 }
 0x4bf   :  { %v4026_v51 = vmax.f32 %v4025_v62, %v2997_v4  ;;  %v2999_v2 = vpop.f32.mrb[118].mxu0  ;;  %3327 = vmatmul.mubr.bf16.gmra.mrb[172].mxu1 %v8011_v20  ;;  %v6546_v4 = vld [vmem:[#allocation15 + $0x34] ss:$8 sps:$4 sm:$0xff]  }
 0x4c0   :  { %v3990_v50 = vmax.f32 %v3989_v26, %v2999_v2  ;;  %v3001_v57 = vpop.f32.mrb[119].mxu0  ;;  %3336 = vmatprep.mubr.bf16.mxu1 %v8632_v56  ;;  %5655 = vmatpush1.bf16.msra.mxu0 %v6532_v37  ;;  %v6550_v37 = vld [vmem:[#allocation15 + $0x40] ss:$8 sps:$4 sm:$0xff]  }
 0x4c1   :  { %v4027_v14 = vmax.f32 %v4026_v51, %v3001_v57  ;;  %5702 = vmatpush1.bf16.msra.mxu1 %v6535_v42  ;;  %5656 = vmatprep.subr.bf16.mxu0 %v6540_v55  ;;  %v6549_v51 = vld [vmem:[#allocation15 + $0x164] ss:$8 sps:$4 sm:$0xff]   ;;  %v6553_v42 = vld [vmem:[#allocation15 + $0x170] ss:$8 sps:$4 sm:$0xff]  }
 0x4c2   :  { %3650 = vmatmul.mubr.bf16.gmra.mrb[224].mxu0 %v7961_v29  ;;  %5703 = vmatprep.subr.bf16.mxu1 %v6543_v49  ;;  %v6556_v55 = vld [vmem:[#allocation15 + $0x50] ss:$8 sps:$4 sm:$0xff]   ;;  %v6559_v49 = vld [vmem:[#allocation15 + $0x180] ss:$8 sps:$4 sm:$0xff]  }
 0x4c3   :  { %v2752_v24 = vpop.f32.mrb[96].mxu1  ;;  %3659 = vmatprep.mubr.bf16.mxu0 %v8632_v56 }
 0x4c4   :  { %v4201_v43 = vmax.f32 %v4200_v33, %v2752_v24  ;;  %v2754_v47 = vpop.f32.mrb[97].mxu1  ;;  %5657 = vmatpush1.bf16.msra.mxu0 %v6538_v17 }
 0x4c5   :  { %v4238_v1 = vmax.f32 %v4237_v23, %v2754_v47  ;;  %v2756_v63 = vpop.f32.mrb[98].mxu1  ;;  %v3005_v15 = vpop.f32.mrb[120].mxu0  ;;  %5704 = vmatpush1.bf16.msra.mxu1 %v6541_v18  ;;  %5658 = vmatprep.subr.bf16.mxu0 %v6546_v4 }
 0x4c6   :  { %v4202_v29 = vmax.f32 %v4201_v43, %v2756_v63  ;;  %v3991_v6 = vmax.f32 %v3990_v50, %v3005_v15  ;;  %v2758_v19 = vpop.f32.mrb[99].mxu1  ;;  %v3007_v41 = vpop.f32.mrb[121].mxu0  ;;  %5705 = vmatprep.subr.bf16.mxu1 %v6549_v51  ;;  %v6555_v63 = vld [vmem:[#allocation15 + $0x174] ss:$8 sps:$4 sm:$0xff]   ;;  %v6564_v51 = vld [vmem:[#allocation15 + $0x64] ss:$8 sps:$4 sm:$0xff]  }
 0x4c7   :  { %v4239_v33 = vmax.f32 %v4238_v1, %v2758_v19  ;;  %v4028_v12 = vmax.f32 %v4027_v14, %v3007_v41  ;;  %v3009_v45 = vpop.f32.mrb[122].mxu0  ;;  %3337 = vmatmul.mubr.bf16.gmra.mrb[176].mxu1 %v8059_v8  ;;  %v6552_v1 = vld [vmem:[#allocation15 + $0x44] ss:$8 sps:$4 sm:$0xff]   ;;  %v6558_v41 = vld [vmem:[#allocation15 + $0x54] ss:$8 sps:$4 sm:$0xff]  }
 0x4c8   :  { %v3992_v9 = vmax.f32 %v3991_v6, %v3009_v45  ;;  %v3011_v62 = vpop.f32.mrb[123].mxu0  ;;  %3346 = vmatprep.mubr.bf16.mxu1 %v8632_v56  ;;  %5659 = vmatpush1.bf16.msra.mxu0 %v6544_v30 }
 0x4c9   :  { %v4029_v23 = vmax.f32 %v4028_v12, %v3011_v62  ;;  %5706 = vmatpush1.bf16.msra.mxu1 %v6547_v7  ;;  %5660 = vmatprep.subr.bf16.mxu0 %v6552_v1  ;;  %v7032_v12 = vmov 1983009808   ;;  %v6570_v1 = vld [vmem:[#allocation15 + $0x74] ss:$8 sps:$4 sm:$0xff]  }
 0x4ca   :  { %3660 = vmatmul.mubr.bf16.gmra.mrb[228].mxu0 %v7957_v58  ;;  %5707 = vmatprep.subr.bf16.mxu1 %v6555_v63  ;;  %v4505_v45 = vunpack.c.l.s4 %v7032_v12  ;;  %v6573_v63 = vld [vmem:[#allocation15 + $0x1a4] ss:$8 sps:$4 sm:$0xff]  }
 0x4cb   :  { %v2762_v36 = vpop.f32.mrb[100].mxu1  ;;  %3669 = vmatprep.mubr.bf16.mxu0 %v8632_v56 }
 0x4cc   :  { %v8370_v28 = vmax.f32 %v4202_v29, %v2762_v36  ;;  %v2764_v26 = vpop.f32.mrb[101].mxu1  ;;  %5661 = vmatpush1.bf16.msra.mxu0 %v6550_v37  ;;  %v4506_v30 = vunpack.c.0.s8 %v4505_v45 }
 0x4cd   :  { %v8372_v2 = vmax.f32 %v4239_v33, %v2764_v26  ;;  %v8374_v50 = vpop.f32.mrb[102].mxu1  ;;  %v3015_v57 = vpop.f32.mrb[124].mxu0  ;;  %v6561_v33 = vld [vmem:[#allocation15 + $0x184] ss:$8 sps:$4 sm:$0xff]   ;;  %5708 = vmatpush1.bf16.msra.mxu1 %v6553_v42  ;;  %5662 = vmatprep.subr.bf16.mxu0 %v6558_v41 }
 0x4ce   :  { %v4204_v58 = vmax.f32 %v8370_v28, %v8374_v50  ;;  %v3993_v14 = vmax.f32 %v3992_v9, %v3015_v57  ;;  %v8378_v61 = vpop.f32.mrb[103].mxu1  ;;  %v3017_v13 = vpop.f32.mrb[125].mxu0  ;;  %5709 = vmatprep.subr.bf16.mxu1 %v6561_v33  ;;  %v6567_v57 = vld [vmem:[#allocation15 + $0x194] ss:$8 sps:$4 sm:$0xff]  }
 0x4cf   :  { %v4241_v24 = vmax.f32 %v8372_v2, %v8378_v61  ;;  %v4030_v43 = vmax.f32 %v4029_v23, %v3017_v13  ;;  %v3019_v47 = vpop.f32.mrb[126].mxu0  ;;  %3347 = vmatmul.mubr.bf16.gmra.mrb[180].mxu1 %v8054_v32  ;;  %v6562_v13 = vld [vmem:[#allocation15 + $0x60] ss:$8 sps:$4 sm:$0xff]   ;;  %v6591_v2 = vld [vmem:[#allocation15 + $0x1d4] ss:$8 sps:$4 sm:$0xff]  }
 0x4d0   :  { %v3994_v60 = vmax.f32 %v3993_v14, %v3019_v47  ;;  %v3021_v40 = vpop.f32.mrb[127].mxu0  ;;  %3356 = vmatprep.mubr.bf16.mxu1 %v8632_v56  ;;  %5663 = vmatpush1.bf16.msra.mxu0 %v6556_v55  ;;  %v6576_v55 = vld [vmem:[#allocation15 + $0x84] ss:$8 sps:$4 sm:$0xff]  }
 0x4d1   :  { %v4031_v15 = vmax.f32 %v4030_v43, %v3021_v40  ;;  %5710 = vmatpush1.bf16.msra.mxu1 %v6559_v49  ;;  %v6565_v43 = vld [vmem:[#allocation15 + $0x190] ss:$8 sps:$4 sm:$0xff]   ;;  %5664 = vmatprep.subr.bf16.mxu0 %v6564_v51  ;;  %v6579_v49 = vld [vmem:[#allocation15 + $0x1b4] ss:$8 sps:$4 sm:$0xff]  }
 0x4d2   :  { %v3995_v29 = vrot.slane %v3994_v60, 4  ;;  %3670 = vmatmul.mubr.bf16.gmra.mrb[232].mxu0 %v8018_v38  ;;  %5711 = vmatprep.subr.bf16.mxu1 %v6567_v57 }
 0x4d3   :  { %v4032_v6 = vrot.slane %v4031_v15, 4  ;;  %3679 = vmatprep.mubr.bf16.mxu0 %v8632_v56 }
 0x4d4   :  { %v3996_v19 = vmax.f32 %v3994_v60, %v3995_v29  ;;  %5665 = vmatpush1.bf16.msra.mxu0 %v6562_v13 }
 0x4d5   :  { %v4033_v9 = vmax.f32 %v4031_v15, %v4032_v6  ;;  %v3025_v62 = vpop.f32.mrb[128].mxu0  ;;  %v8644_v15 = vld [vmem:[#allocation30_spill] sm:$0xff]  ;;  %5712 = vmatpush1.bf16.msra.mxu1 %v6565_v43  ;;  %5666 = vmatprep.subr.bf16.mxu0 %v6570_v1 }
 0x4d6   :  { %v3997_v23 = vrot.slane %v3996_v19, 2  ;;  %v3027_v17 = vpop.f32.mrb[129].mxu0  ;;  %v8391_v37 = vsub.s32 %v4506_v30, %v8644_v15  ;;  %v6568_v6 = vld [vmem:[#allocation15 + $0x70] ss:$8 sps:$4 sm:$0xff]   ;;  %5713 = vmatprep.subr.bf16.mxu1 %v6573_v63  ;;  %v6588_v63 = vld [vmem:[#allocation15 + $0xa4] ss:$8 sps:$4 sm:$0xff]  }
 0x4d7   :  { %v4034_v38 = vrot.slane %v4033_v9, 2  ;;  %v3029_v18 = vpop.f32.mrb[130].mxu0  ;;  %3357 = vmatmul.mubr.bf16.gmra.mrb[184].mxu1 %v8096_v0  ;;  %v6580_v30 = vld [vmem:[#allocation15 + $0x90] ss:$8 sps:$4 sm:$0xff]  }
 0x4d8   :  { %v3998_v36 = vmax.f32 %v3996_v19, %v3997_v23  ;;  %v4260_v26 = vmax.f32 %v3025_v62, %v3029_v18  ;;  %v3031_v4 = vpop.f32.mrb[131].mxu0  ;;  %3366 = vmatprep.mubr.bf16.mxu1 %v8632_v56  ;;  %v6571_v19 = vld [vmem:[#allocation15 + $0x1a0] ss:$8 sps:$4 sm:$0xff]   ;;  %5667 = vmatpush1.bf16.msra.mxu0 %v6568_v6  ;;  %v8399_v23 = vrot.slane %v4502_v27, %v8391_v37  ;;  %v6594_v6 = vld [vmem:[#allocation15 + $0xb4] ss:$8 sps:$4 sm:$0xff]  }
 0x4d9   :  { %v4035_v7 = vmax.f32 %v4033_v9, %v4034_v38  ;;  %v4297_v14 = vmax.f32 %v3027_v17, %v3031_v4  ;;  %5714 = vmatpush1.bf16.msra.mxu1 %v6571_v19  ;;  %v6574_v18 = vld [vmem:[#allocation15 + $0x80] ss:$8 sps:$4 sm:$0xff]   ;;  %5668 = vmatprep.subr.bf16.mxu0 %v6576_v55  ;;  %v6597_v19 = vld [vmem:[#allocation15 + $0x1e4] ss:$8 sps:$4 sm:$0xff]  }
 0x4da   :  { %v3999_v47 = vrot.slane %v3998_v36, 1  ;;  %3680 = vmatmul.mubr.bf16.gmra.mrb[236].mxu0 %v8011_v20  ;;  %5715 = vmatprep.subr.bf16.mxu1 %v6579_v49 }
 0x4db   :  { %v4036_v60 = vrot.slane %v4035_v7, 1  ;;  %3689 = vmatprep.mubr.bf16.mxu0 %v8632_v56 }
 0x4dc   :  { %v4000_v40 = vmax.f32 %v3998_v36, %v3999_v47  ;;  %v6577_v36 = vld [vmem:[#allocation15 + $0x1b0] ss:$8 sps:$4 sm:$0xff]   ;;  %5669 = vmatpush1.bf16.msra.mxu0 %v6574_v18 }
 0x4dd   :  { %v4037_v42 = vmax.f32 %v4035_v7, %v4036_v60  ;;  %v3035_v29 = vpop.f32.mrb[132].mxu0  ;;  %5716 = vmatpush1.bf16.msra.mxu1 %v6577_v36  ;;  %5670 = vmatprep.subr.bf16.mxu0 %v6582_v21 }
 0x4de   :  { %v4261_v41 = vmax.f32 %v4260_v26, %v3035_v29  ;;  %v3037_v33 = vpop.f32.mrb[133].mxu0  ;;  %5717 = vmatprep.subr.bf16.mxu1 %v6585_v11 }
 0x4df   :  { %v4503_v20 = vcombine.low %v4000_v40, %v4037_v42  ;;  %v4298_v12 = vmax.f32 %v4297_v14, %v3037_v33  ;;  %v3039_v45 = vpop.f32.mrb[134].mxu0  ;;  %3367 = vmatmul.mubr.bf16.gmra.mrb[188].mxu1 %v8094_v46  ;;  %v6589_v42 = vld [vmem:[#allocation15 + $0x1d0] ss:$8 sps:$4 sm:$0xff]  }
 0x4e0   :  { %v4262_v9 = vmax.f32 %v4261_v41, %v3039_v45  ;;  %v3041_v62 = vpop.f32.mrb[135].mxu0  ;;  %3376 = vmatprep.mubr.bf16.mxu1 %v8632_v56  ;;  %5671 = vmatpush1.bf16.msra.mxu0 %v6580_v30  ;;  %v6595_v45 = vld [vmem:[#allocation15 + $0x1e0] ss:$8 sps:$4 sm:$0xff]  }
 0x4e1   :  { %v8402_v17 = vrot.slane %v4503_v20, %v8391_v37  ;;  %v4299_v38 = vmax.f32 %v4298_v12, %v3041_v62  ;;  %5672 = vmatprep.subr.bf16.mxu0 %v6588_v63  ;;  %v6592_v12 = vld [vmem:[#allocation15 + $0xb0] ss:$8 sps:$4 sm:$0xff]   ;;  %v6598_v30 = vld [vmem:[#allocation15 + $0xc0] ss:$8 sps:$4 sm:$0xff]   ;;  %v6612_v63 = vld [vmem:[#allocation15 + $0xf4] ss:$8 sps:$4 sm:$0xff]  }
 0x4e2   :  { %3690 = vmatmul.mubr.bf16.gmra.mrb[240].mxu0 %v8059_v8  ;;  %v6583_v8 = vld [vmem:[#allocation15 + $0x1c0] ss:$8 sps:$4 sm:$0xff]  }
 0x4e3   :  { %v4518_v26 = vcombine.low %v8399_v23, %v8402_v17  ;;  %3699 = vmatprep.mubr.bf16.mxu0 %v8632_v56  ;;  %5718 = vmatpush1.bf16.msra.mxu1 %v6583_v8  ;;  %v6601_v8 = vld [vmem:[#allocation15 + $0x1f0] ss:$8 sps:$4 sm:$0xff]  }
 0x4e4   :  { %v2772_v4 = vpop.f32.mrb[104].mxu1  ;;  %5719 = vmatprep.subr.bf16.mxu1 %v6591_v2 }
 0x4e5   :  { %v4205_v27 = vmax.f32 %v4204_v58, %v2772_v4  ;;  %v2774_v51 = vpop.f32.mrb[105].mxu1  ;;  %v3045_v57 = vpop.f32.mrb[136].mxu0 }
 0x4e6   :  { %v4242_v7 = vmax.f32 %v4241_v24, %v2774_v51  ;;  %v4263_v14 = vmax.f32 %v4262_v9, %v3045_v57  ;;  %v2776_v13 = vpop.f32.mrb[106].mxu1  ;;  %v3047_v43 = vpop.f32.mrb[137].mxu0  ;;  %v6586_v24 = vld [vmem:[#allocation15 + $0xa0] ss:$8 sps:$4 sm:$0xff]   ;;  %v6603_v51 = vld [vmem:[#allocation15 + $0x1f4] ss:$8 sps:$4 sm:$0xff]  }
 0x4e7   :  { %v4206_v47 = vmax.f32 %v4205_v27, %v2776_v13  ;;  %v4300_v60 = vmax.f32 %v4299_v38, %v3047_v43  ;;  %v2778_v40 = vpop.f32.mrb[107].mxu1  ;;  %v3049_v1 = vpop.f32.mrb[138].mxu0  ;;  %3377 = vmatmul.mubr.bf16.gmra.mrb[192].mxu1 %v8127_v54  ;;  %5673 = vmatpush1.bf16.msra.mxu0 %v6586_v24  ;;  %v6600_v27 = vld [vmem:[#allocation15 + $0xc4] ss:$8 sps:$4 sm:$0xff]   ;;  %v6604_v13 = vld [vmem:[#allocation15 + $0xd0] ss:$8 sps:$4 sm:$0xff]  }
 0x4e8   :  { %v4243_v28 = vmax.f32 %v4242_v7, %v2778_v40  ;;  %v4264_v50 = vmax.f32 %v4263_v14, %v3049_v1  ;;  %v3051_v58 = vpop.f32.mrb[139].mxu0  ;;  %3386 = vmatprep.mubr.bf16.mxu1 %v8632_v56  ;;  %5720 = vmatpush1.bf16.msra.mxu1 %v6589_v42  ;;  %v6606_v7 = vld [vmem:[#allocation15 + $0xd4] ss:$8 sps:$4 sm:$0xff]  }
 0x4e9   :  { %v4301_v61 = vmax.f32 %v4300_v60, %v3051_v58  ;;  %5674 = vmatprep.subr.bf16.mxu0 %v6594_v6  ;;  %5721 = vmatprep.subr.bf16.mxu1 %v6597_v19  ;;  %v6607_v58 = vld [vmem:[#allocation15 + $0xe0] ss:$8 sps:$4 sm:$0xff]  }
 0x4ea   :  { %3700 = vmatmul.mubr.bf16.gmra.mrb[244].mxu0 %v8054_v32 }
 0x4eb   :  { %3709 = vmatprep.mubr.bf16.mxu0 %v8632_v56  ;;  %5675 = vmatpush1.bf16.msra.mxu0 %v6592_v12 }
 0x4ec   :  { %v2782_v29 = vpop.f32.mrb[108].mxu1  ;;  %5722 = vmatpush1.bf16.msra.mxu1 %v6595_v45  ;;  %5676 = vmatprep.subr.bf16.mxu0 %v6600_v27 }
 0x4ed   :  { %v8418_v41 = vmax.f32 %v4206_v47, %v2782_v29  ;;  %v2784_v33 = vpop.f32.mrb[109].mxu1  ;;  %v3055_v20 = vpop.f32.mrb[140].mxu0  ;;  %5723 = vmatprep.subr.bf16.mxu1 %v6603_v51 }
 0x4ee   :  { %v8420_v9 = vmax.f32 %v4243_v28, %v2784_v33  ;;  %v4265_v62 = vmax.f32 %v4264_v50, %v3055_v20  ;;  %v8422_v55 = vpop.f32.mrb[110].mxu1  ;;  %v3057_v32 = vpop.f32.mrb[141].mxu0 }
 0x4ef   :  { %v4208_v49 = vmax.f32 %v8418_v41, %v8422_v55  ;;  %v4302_v38 = vmax.f32 %v4301_v61, %v3057_v32  ;;  %v8426_v18 = vpop.f32.mrb[111].mxu1  ;;  %v3059_v36 = vpop.f32.mrb[142].mxu0  ;;  %3387 = vmatmul.mubr.bf16.gmra.mrb[196].mxu1 %v8125_v52  ;;  %5677 = vmatpush1.bf16.msra.mxu0 %v6598_v30  ;;  %v6610_v61 = vld [vmem:[#allocation15 + $0xf0] ss:$8 sps:$4 sm:$0xff]  }
 0x4f0   :  { %v4245_v4 = vmax.f32 %v8420_v9, %v8426_v18  ;;  %v4266_v21 = vmax.f32 %v4265_v62, %v3059_v36  ;;  %v3061_v11 = vpop.f32.mrb[143].mxu0  ;;  %3396 = vmatprep.mubr.bf16.mxu1 %v8632_v56  ;;  %5724 = vmatpush1.bf16.msra.mxu1 %v6601_v8 }
 0x4f1   :  { %v4303_v57 = vmax.f32 %v4302_v38, %v3061_v11  ;;  %5678 = vmatprep.subr.bf16.mxu0 %v6606_v7 }
 0x4f2   :  { %3710 = vmatmul.mubr.bf16.gmra.mrb[248].mxu0 %v8096_v0  ;;  %v6609_v0 = vld [vmem:[#allocation15 + $0xe4] ss:$8 sps:$4 sm:$0xff]  }
 0x4f3   :  { %3719 = vmatprep.mubr.bf16.mxu0 %v8632_v56  ;;  %5679 = vmatpush1.bf16.msra.mxu0 %v6604_v13 }
 0x4f4   :  { %5680 = vmatprep.subr.bf16.mxu0 %v6609_v0 }
 0x4f5   :  { %v3065_v14 = vpop.f32.mrb[144].mxu0 }
 0x4f6   :  { %v4267_v43 = vmax.f32 %v4266_v21, %v3065_v14  ;;  %v3067_v47 = vpop.f32.mrb[145].mxu0 }
 0x4f7   :  { %v4304_v60 = vmax.f32 %v4303_v57, %v3067_v47  ;;  %v3069_v40 = vpop.f32.mrb[146].mxu0  ;;  %3397 = vmatmul.mubr.bf16.gmra.mrb[200].mxu1 %v8159_v16  ;;  %5681 = vmatpush1.bf16.msra.mxu0 %v6607_v58 }
 0x4f8   :  { %v4268_v1 = vmax.f32 %v4267_v43, %v3069_v40  ;;  %v3071_v28 = vpop.f32.mrb[147].mxu0  ;;  %3406 = vmatprep.mubr.bf16.mxu1 %v8632_v56  ;;  %5682 = vmatprep.subr.bf16.mxu0 %v6612_v63 }
 0x4f9   :  { %v4305_v50 = vmax.f32 %v4304_v60, %v3071_v28 }
 0x4fa   :  { %3720 = vmatmul.mubr.bf16.gmra.mrb[252].mxu0 %v8094_v46 }
 0x4fb   :  { %3729 = vmatprep.mubr.bf16.mxu0 %v8632_v56  ;;  %5683 = vmatpush1.bf16.msra.mxu0 %v6610_v61 }
 0x4fd   :  { %v3075_v2 = vpop.f32.mrb[148].mxu0 }
 0x4fe   :  { %v4269_v24 = vmax.f32 %v4268_v1, %v3075_v2  ;;  %v3077_v42 = vpop.f32.mrb[149].mxu0 }
 0x4ff   :  { %v4306_v29 = vmax.f32 %v4305_v50, %v3077_v42  ;;  %v3079_v6 = vpop.f32.mrb[150].mxu0  ;;  %3407 = vmatmul.mubr.bf16.gmra.mrb[204].mxu1 %v8156_v3 }
 0x500   :  { %v4270_v19 = vmax.f32 %v4269_v24, %v3079_v6  ;;  %v3081_v33 = vpop.f32.mrb[151].mxu0  ;;  %3416 = vmatprep.mubr.bf16.mxu1 %v8632_v56 }
 0x501   :  { %v4307_v46 = vmax.f32 %v4306_v29, %v3081_v33 }
 0x502   :  { %3730 = vmatmul.mubr.bf16.gmra.mrb[0].mxu0 %v8127_v54 }
 0x503   :  { %3739 = vmatprep.mubr.bf16.mxu0 %v8632_v56 }
 0x505   :  { %v3085_v20 = vpop.f32.mrb[152].mxu0 }
 0x506   :  { %v4271_v12 = vmax.f32 %v4270_v19, %v3085_v20  ;;  %v3087_v45 = vpop.f32.mrb[153].mxu0 }
 0x507   :  { %v4308_v62 = vmax.f32 %v4307_v46, %v3087_v45  ;;  %v3089_v32 = vpop.f32.mrb[154].mxu0  ;;  %3417 = vmatmul.mubr.bf16.gmra.mrb[208].mxu1 %v8183_v5 }
 0x508   :  { %v4272_v38 = vmax.f32 %v4271_v12, %v3089_v32  ;;  %v3091_v36 = vpop.f32.mrb[155].mxu0  ;;  %3426 = vmatprep.mubr.bf16.mxu1 %v8632_v56 }
 0x509   :  { %v4309_v21 = vmax.f32 %v4308_v62, %v3091_v36  ;;  %v2792_v11 = vpop.f32.mrb[112].mxu1 }
 0x50a   :  { %v4209_v27 = vmax.f32 %v4208_v49, %v2792_v11  ;;  %v2794_v54 = vpop.f32.mrb[113].mxu1  ;;  %3740 = vmatmul.mubr.bf16.gmra.mrb[4].mxu0 %v8125_v52 }
 0x50b   :  { %v4246_v51 = vmax.f32 %v4245_v4, %v2794_v54  ;;  %v2796_v57 = vpop.f32.mrb[114].mxu1  ;;  %3749 = vmatprep.mubr.bf16.mxu0 %v8632_v56 }
 0x50c   :  { %v4210_v30 = vmax.f32 %v4209_v27, %v2796_v57  ;;  %v2798_v8 = vpop.f32.mrb[115].mxu1 }
 0x50d   :  { %v4247_v7 = vmax.f32 %v4246_v51, %v2798_v8  ;;  %v3095_v14 = vpop.f32.mrb[156].mxu0 }
 0x50e   :  { %v4273_v13 = vmax.f32 %v4272_v38, %v3095_v14  ;;  %v3097_v43 = vpop.f32.mrb[157].mxu0 }
 0x50f   :  { %v4310_v47 = vmax.f32 %v4309_v21, %v3097_v43  ;;  %v3099_v60 = vpop.f32.mrb[158].mxu0  ;;  %3427 = vmatmul.mubr.bf16.gmra.mrb[212].mxu1 %v8181_v25 }
 0x510   :  { %v4274_v41 = vmax.f32 %v4273_v13, %v3099_v60  ;;  %v3101_v55 = vpop.f32.mrb[159].mxu0  ;;  %3436 = vmatprep.mubr.bf16.mxu1 %v8632_v56 }
 0x511   :  { %v4311_v52 = vmax.f32 %v4310_v47, %v3101_v55  ;;  %v2802_v9 = vpop.f32.mrb[116].mxu1 }
 0x512   :  { %v4211_v49 = vmax.f32 %v4210_v30, %v2802_v9  ;;  %v2804_v18 = vpop.f32.mrb[117].mxu1  ;;  %3750 = vmatmul.mubr.bf16.gmra.mrb[8].mxu0 %v8159_v16 }
 0x513   :  { %v4248_v4 = vmax.f32 %v4247_v7, %v2804_v18  ;;  %v2806_v40 = vpop.f32.mrb[118].mxu1  ;;  %3759 = vmatprep.mubr.bf16.mxu0 %v8632_v56 }
 0x514   :  { %v4212_v1 = vmax.f32 %v4211_v49, %v2806_v40  ;;  %v2808_v28 = vpop.f32.mrb[119].mxu1 }
 0x515   :  { %v4249_v0 = vmax.f32 %v4248_v4, %v2808_v28  ;;  %v3105_v50 = vpop.f32.mrb[160].mxu0 }
 0x516   :  { %v4275_v58 = vmax.f32 %v4274_v41, %v3105_v50  ;;  %v3107_v63 = vpop.f32.mrb[161].mxu0 }
 0x517   :  { %v4312_v2 = vmax.f32 %v4311_v52, %v3107_v63  ;;  %v3109_v61 = vpop.f32.mrb[162].mxu0  ;;  %3437 = vmatmul.mubr.bf16.gmra.mrb[216].mxu1 %v8203_v31 }
 0x518   :  { %v4276_v24 = vmax.f32 %v4275_v58, %v3109_v61  ;;  %v3111_v42 = vpop.f32.mrb[163].mxu0  ;;  %3446 = vmatprep.mubr.bf16.mxu1 %v8632_v56 }
 0x519   :  { %v4313_v29 = vmax.f32 %v4312_v2, %v3111_v42 }
 0x51a   :  { %3760 = vmatmul.mubr.bf16.gmra.mrb[12].mxu0 %v8156_v3 }
 0x51b   :  { %3769 = vmatprep.mubr.bf16.mxu0 %v8632_v56 }
 0x51d   :  { %v3115_v16 = vpop.f32.mrb[164].mxu0 }
 0x51e   :  { %v4277_v6 = vmax.f32 %v4276_v24, %v3115_v16  ;;  %v3117_v19 = vpop.f32.mrb[165].mxu0 }
 0x51f   :  { %v4314_v33 = vmax.f32 %v4313_v29, %v3117_v19  ;;  %v3119_v46 = vpop.f32.mrb[166].mxu0  ;;  %3447 = vmatmul.mubr.bf16.gmra.mrb[220].mxu1 %v8201_v35 }
 0x520   :  { %v4278_v20 = vmax.f32 %v4277_v6, %v3119_v46  ;;  %v3121_v12 = vpop.f32.mrb[167].mxu0  ;;  %3456 = vmatprep.mubr.bf16.mxu1 %v8632_v56 }
 0x521   :  { %v4315_v45 = vmax.f32 %v4314_v33, %v3121_v12 }
 0x522   :  { %3770 = vmatmul.mubr.bf16.gmra.mrb[16].mxu0 %v8183_v5 }
 0x523   :  { %3779 = vmatprep.mubr.bf16.mxu0 %v8632_v56 }
 0x525   :  { %v3125_v62 = vpop.f32.mrb[168].mxu0 }
 0x526   :  { %v4279_v3 = vmax.f32 %v4278_v20, %v3125_v62  ;;  %v3127_v32 = vpop.f32.mrb[169].mxu0 }
 0x527   :  { %v4316_v38 = vmax.f32 %v4315_v45, %v3127_v32  ;;  %v3129_v36 = vpop.f32.mrb[170].mxu0  ;;  %3457 = vmatmul.mubr.bf16.gmra.mrb[224].mxu1 %v8225_v44 }
 0x528   :  { %v4280_v21 = vmax.f32 %v4279_v3, %v3129_v36  ;;  %v3131_v11 = vpop.f32.mrb[171].mxu0  ;;  %3466 = vmatprep.mubr.bf16.mxu1 %v8632_v56 }
 0x529   :  { %v4317_v27 = vmax.f32 %v4316_v38, %v3131_v11 }
 0x52a   :  { %v2812_v54 = vpop.f32.mrb[120].mxu1  ;;  %3780 = vmatmul.mubr.bf16.gmra.mrb[20].mxu0 %v8181_v25 }
 0x52b   :  { %v4213_v51 = vmax.f32 %v4212_v1, %v2812_v54  ;;  %v2814_v57 = vpop.f32.mrb[121].mxu1  ;;  %3789 = vmatprep.mubr.bf16.mxu0 %v8632_v56 }
 0x52c   :  { %v4250_v5 = vmax.f32 %v4249_v0, %v2814_v57  ;;  %v2816_v30 = vpop.f32.mrb[122].mxu1 }
 0x52d   :  { %v4214_v8 = vmax.f32 %v4213_v51, %v2816_v30  ;;  %v2818_v7 = vpop.f32.mrb[123].mxu1  ;;  %v3135_v14 = vpop.f32.mrb[172].mxu0 }
 0x52e   :  { %v4251_v13 = vmax.f32 %v4250_v5, %v2818_v7  ;;  %v4281_v43 = vmax.f32 %v4280_v21, %v3135_v14  ;;  %v3137_v47 = vpop.f32.mrb[173].mxu0 }
 0x52f   :  { %v4318_v60 = vmax.f32 %v4317_v27, %v3137_v47  ;;  %v3139_v41 = vpop.f32.mrb[174].mxu0  ;;  %3467 = vmatmul.mubr.bf16.gmra.mrb[228].mxu1 %v8223_v39 }
 0x530   :  { %v4282_v55 = vmax.f32 %v4281_v43, %v3139_v41  ;;  %v3141_v52 = vpop.f32.mrb[175].mxu0  ;;  %3476 = vmatprep.mubr.bf16.mxu1 %v8632_v56 }
 0x531   :  { %v4319_v25 = vmax.f32 %v4318_v60, %v3141_v52 }
 0x532   :  { %v2822_v9 = vpop.f32.mrb[124].mxu1  ;;  %3790 = vmatmul.mubr.bf16.gmra.mrb[24].mxu0 %v8203_v31 }
 0x533   :  { %v4215_v49 = vmax.f32 %v4214_v8, %v2822_v9  ;;  %v2824_v18 = vpop.f32.mrb[125].mxu1  ;;  %3799 = vmatprep.mubr.bf16.mxu0 %v8632_v56 }
 0x534   :  { %v4252_v4 = vmax.f32 %v4251_v13, %v2824_v18  ;;  %v2826_v40 = vpop.f32.mrb[126].mxu1 }
 0x535   :  { %v4216_v1 = vmax.f32 %v4215_v49, %v2826_v40  ;;  %v2828_v28 = vpop.f32.mrb[127].mxu1  ;;  %v3145_v0 = vpop.f32.mrb[176].mxu0 }
 0x536   :  { %v4253_v50 = vmax.f32 %v4252_v4, %v2828_v28  ;;  %v4283_v58 = vmax.f32 %v4282_v55, %v3145_v0  ;;  %v3147_v63 = vpop.f32.mrb[177].mxu0 }
 0x537   :  { %v4217_v2 = vrot.slane %v4216_v1, 4  ;;  %v4320_v61 = vmax.f32 %v4319_v25, %v3147_v63  ;;  %v3149_v24 = vpop.f32.mrb[178].mxu0  ;;  %3477 = vmatmul.mubr.bf16.gmra.mrb[232].mxu1 %v8245_v34 }
 0x538   :  { %v4254_v42 = vrot.slane %v4253_v50, 4  ;;  %v4284_v29 = vmax.f32 %v4283_v58, %v3149_v24  ;;  %v3151_v31 = vpop.f32.mrb[179].mxu0  ;;  %3486 = vmatprep.mubr.bf16.mxu1 %v8632_v56 }
 0x539   :  { %v4218_v16 = vmax.f32 %v4216_v1, %v4217_v2  ;;  %v4321_v6 = vmax.f32 %v4320_v61, %v3151_v31 }
 0x53a   :  { %v4255_v19 = vmax.f32 %v4253_v50, %v4254_v42  ;;  %v3218_v33 = vpop.f32.mrb[128].mxu1  ;;  %3800 = vmatmul.mubr.bf16.gmra.mrb[28].mxu0 %v8201_v35 }
 0x53b   :  { %v4219_v46 = vrot.slane %v4218_v16, 2  ;;  %v3220_v20 = vpop.f32.mrb[129].mxu1  ;;  %3809 = vmatprep.mubr.bf16.mxu0 %v8632_v56 }
 0x53c   :  { %v4256_v12 = vrot.slane %v4255_v19, 2  ;;  %v3222_v45 = vpop.f32.mrb[130].mxu1 }
 0x53d   :  { %v4220_v62 = vmax.f32 %v4218_v16, %v4219_v46  ;;  %v4038_v3 = vmax.f32 %v3218_v33, %v3222_v45  ;;  %v3155_v32 = vpop.f32.mrb[180].mxu0  ;;  %v3224_v38 = vpop.f32.mrb[131].mxu1 }
 0x53e   :  { %v4257_v36 = vmax.f32 %v4255_v19, %v4256_v12  ;;  %v4285_v21 = vmax.f32 %v4284_v29, %v3155_v32  ;;  %v4075_v11 = vmax.f32 %v3220_v20, %v3224_v38  ;;  %v3157_v27 = vpop.f32.mrb[181].mxu0 }
 0x53f   :  { %v4221_v54 = vrot.slane %v4220_v62, 1  ;;  %v4322_v51 = vmax.f32 %v4321_v6, %v3157_v27  ;;  %v3159_v57 = vpop.f32.mrb[182].mxu0  ;;  %3487 = vmatmul.mubr.bf16.gmra.mrb[236].mxu1 %v8243_v10 }
 0x540   :  { %v4258_v35 = vrot.slane %v4257_v36, 1  ;;  %v4286_v5 = vmax.f32 %v4285_v21, %v3159_v57  ;;  %v3161_v30 = vpop.f32.mrb[183].mxu0  ;;  %3496 = vmatprep.mubr.bf16.mxu1 %v8632_v56 }
 0x541   :  { %v8478_v8 = vmax.f32 %v4220_v62, %v4221_v54  ;;  %v4323_v7 = vmax.f32 %v4322_v51, %v3161_v30 }
 0x542   :  { %v8480_v14 = vmax.f32 %v4257_v36, %v4258_v35  ;;  %v3228_v13 = vpop.f32.mrb[132].mxu1  ;;  %3810 = vmatmul.mubr.bf16.gmra.mrb[32].mxu0 %v8225_v44 }
 0x543   :  { %v4039_v43 = vmax.f32 %v4038_v3, %v3228_v13  ;;  %v3230_v47 = vpop.f32.mrb[133].mxu1  ;;  %3819 = vmatprep.mubr.bf16.mxu0 %v8632_v56  ;;  %v4893_v13 = vsub.s32 3, %v8644_v15 }
 0x544   :  { %v4536_v60 = vcombine.low %v8478_v8, %v8480_v14  ;;  %v4076_v41 = vmax.f32 %v4075_v11, %v3230_v47  ;;  %v3232_v55 = vpop.f32.mrb[134].mxu1 }
 0x545   :  { %v4040_v52 = vmax.f32 %v4039_v43, %v3232_v55  ;;  %v3165_v25 = vpop.f32.mrb[184].mxu0  ;;  %v3234_v9 = vpop.f32.mrb[135].mxu1 }
 0x546   :  { %v4287_v49 = vmax.f32 %v4286_v5, %v3165_v25  ;;  %v4077_v18 = vmax.f32 %v4076_v41, %v3234_v9  ;;  %v3167_v4 = vpop.f32.mrb[185].mxu0 }
 0x547   :  { %v4324_v40 = vmax.f32 %v4323_v7, %v3167_v4  ;;  %v3169_v1 = vpop.f32.mrb[186].mxu0  ;;  %3497 = vmatmul.mubr.bf16.gmra.mrb[240].mxu1 %v8273_v59  ;;  %v8646_v4 = vld [vmem:[#allocation31_spill] sm:$0xff] }
 0x548   :  { %v4288_v44 = vmax.f32 %v4287_v49, %v3169_v1  ;;  %v3171_v28 = vpop.f32.mrb[187].mxu0  ;;  %3506 = vmatprep.mubr.bf16.mxu1 %v8632_v56  ;;  %v8645_v49 = vld [vmem:[#allocation32_spill] sm:$0xff] }
 0x549   :  { %v4325_v0 = vmax.f32 %v4324_v40, %v3171_v28 }
 0x54a   :  { %v3238_v50 = vpop.f32.mrb[136].mxu1  ;;  %3820 = vmatmul.mubr.bf16.gmra.mrb[36].mxu0 %v8223_v39 }
 0x54b   :  { %v4041_v58 = vmax.f32 %v4040_v52, %v3238_v50  ;;  %v3240_v63 = vpop.f32.mrb[137].mxu1  ;;  %3829 = vmatprep.mubr.bf16.mxu0 %v8632_v56 }
 0x54c   :  { %v4078_v2 = vmax.f32 %v4077_v18, %v3240_v63  ;;  %v3242_v61 = vpop.f32.mrb[138].mxu1 }
 0x54d   :  { %v4042_v24 = vmax.f32 %v4041_v58, %v3242_v61  ;;  %v3175_v42 = vpop.f32.mrb[188].mxu0  ;;  %v3244_v29 = vpop.f32.mrb[139].mxu1 }
 0x54e   :  { %v4289_v31 = vmax.f32 %v4288_v44, %v3175_v42  ;;  %v4079_v16 = vmax.f32 %v4078_v2, %v3244_v29  ;;  %v3177_v6 = vpop.f32.mrb[189].mxu0 }
 0x54f   :  { %v4326_v19 = vmax.f32 %v4325_v0, %v3177_v6  ;;  %v3179_v33 = vpop.f32.mrb[190].mxu0  ;;  %3507 = vmatmul.mubr.bf16.gmra.mrb[244].mxu1 %v8270_v53  ;;  %v8647_v0 = vsub.s32 2, %v8644_v15 }
 0x550   :  { %v4290_v46 = vmax.f32 %v4289_v31, %v3179_v33  ;;  %v3181_v20 = vpop.f32.mrb[191].mxu0  ;;  %3516 = vmatprep.mubr.bf16.mxu1 %v8632_v56 }
 0x551   :  { %v4327_v39 = vmax.f32 %v4326_v19, %v3181_v20 }
 0x552   :  { %v4291_v12 = vrot.slane %v4290_v46, 4  ;;  %v3248_v45 = vpop.f32.mrb[140].mxu1  ;;  %3830 = vmatmul.mubr.bf16.gmra.mrb[40].mxu0 %v8245_v34  ;;  %v4715_v34 = vld [vmem:[#allocation14] sm:$0xff] }
 0x553   :  { %v4328_v62 = vrot.slane %v4327_v39, 4  ;;  %v4043_v3 = vmax.f32 %v4042_v24, %v3248_v45  ;;  %v3250_v32 = vpop.f32.mrb[141].mxu1  ;;  %3839 = vmatprep.mubr.bf16.mxu0 %v8632_v56  ;;  %v4882_v18 = vrot.slane %v4715_v34, %v8645_v49  ;;  %v4886_v40 = vrot.slane %v4715_v34, %v8646_v4 }
 0x554   :  { %v4292_v38 = vmax.f32 %v4290_v46, %v4291_v12  ;;  %v4080_v36 = vmax.f32 %v4079_v16, %v3250_v32  ;;  %v3252_v21 = vpop.f32.mrb[142].mxu1  ;;  %v4890_v50 = vrot.slane %v4715_v34, %v8647_v0  ;;  %v4894_v58 = vrot.slane %v4715_v34, %v4893_v13 }
 0x555   :  { %v4329_v11 = vmax.f32 %v4327_v39, %v4328_v62  ;;  %v4044_v27 = vmax.f32 %v4043_v3, %v3252_v21  ;;  %v3254_v54 = vpop.f32.mrb[143].mxu1  ;;  %v3571_v51 = vpop.f32.mrb[192].mxu0  ;;  %v4911_v20 = vcombine.low %v4882_v18, %v4886_v40  ;;  %v4544_v62 = vrot.slane %v4536_v60, %v8391_v37 }
 0x556   :  { %v4293_v57 = vrot.slane %v4292_v38, 2  ;;  %v4081_v35 = vmax.f32 %v4080_v36, %v3254_v54  ;;  %v3573_v5 = vpop.f32.mrb[193].mxu0  ;;  %v4912_v39 = vcombine.low %v4890_v50, %v4894_v58 }
 0x557   :  { %v4330_v30 = vrot.slane %v4329_v11, 2  ;;  %3517 = vmatmul.mubr.bf16.gmra.mrb[248].mxu1 %v8293_v48  ;;  %v3575_v7 = vpop.f32.mrb[194].mxu0 }
 0x558   :  { %v4294_v43 = vmax.f32 %v4292_v38, %v4293_v57  ;;  %v4112_v47 = vmax.f32 %v3571_v51, %v3575_v7  ;;  %v3577_v41 = vpop.f32.mrb[195].mxu0  ;;  %3526 = vmatprep.mubr.bf16.mxu1 %v8632_v56  ;;  %v4926_v54 = vrot.slane %v4912_v39, %v8391_v37 }
 0x559   :  { %v4331_v55 = vmax.f32 %v4329_v11, %v4330_v30  ;;  %v4149_v52 = vmax.f32 %v3573_v5, %v3577_v41 }
 0x55a   :  { %v4295_v25 = vrot.slane %v4294_v43, 1  ;;  %v3258_v9 = vpop.f32.mrb[144].mxu1  ;;  %3840 = vmatmul.mubr.bf16.gmra.mrb[44].mxu0 %v8243_v10 }
 0x55b   :  { %v4332_v1 = vrot.slane %v4331_v55, 1  ;;  %v4045_v44 = vmax.f32 %v4044_v27, %v3258_v9  ;;  %v3260_v28 = vpop.f32.mrb[145].mxu1  ;;  %3849 = vmatprep.mubr.bf16.mxu0 %v8632_v56  ;;  %v4919_v27 = vrot.slane %v4911_v20, %v8391_v37 }
 0x55c   :  { %v4296_v63 = vmax.f32 %v4294_v43, %v4295_v25  ;;  %v4082_v2 = vmax.f32 %v4081_v35, %v3260_v28  ;;  %v3262_v61 = vpop.f32.mrb[146].mxu1 }
 0x55d   :  { %v4333_v24 = vmax.f32 %v4331_v55, %v4332_v1  ;;  %v4046_v42 = vmax.f32 %v4045_v44, %v3262_v61  ;;  %v3264_v29 = vpop.f32.mrb[147].mxu1  ;;  %v3581_v10 = vpop.f32.mrb[196].mxu0  ;;  %v4927_v43 = vcombine.low %v4919_v27, %v4926_v54 }
 0x55e   :  { %v4083_v31 = vmax.f32 %v4082_v2, %v3264_v29  ;;  %v4113_v16 = vmax.f32 %v4112_v47, %v3581_v10  ;;  %v3583_v6 = vpop.f32.mrb[197].mxu0 }
 0x55f   :  { %v4537_v19 = vcombine.low %v4296_v63, %v4333_v24  ;;  %v4150_v33 = vmax.f32 %v4149_v52, %v3583_v6  ;;  %3527 = vmatmul.mubr.bf16.gmra.mrb[252].mxu1 %v8291_v22  ;;  %v3585_v46 = vpop.f32.mrb[198].mxu0 }
 0x560   :  { %v4114_v12 = vmax.f32 %v4113_v16, %v3585_v46  ;;  %v3587_v45 = vpop.f32.mrb[199].mxu0 }
 0x561   :  { %v4551_v3 = vrot.slane %v4537_v19, %v8391_v37  ;;  %v4151_v32 = vmax.f32 %v4150_v33, %v3587_v45 }
 0x562   :  { %v3268_v38 = vpop.f32.mrb[148].mxu1  ;;  %3850 = vmatmul.mubr.bf16.gmra.mrb[48].mxu0 %v8273_v59 }
 0x563   :  { %v4552_v36 = vcombine.low %v4544_v62, %v4551_v3  ;;  %v4047_v21 = vmax.f32 %v4046_v42, %v3268_v38  ;;  %v3270_v11 = vpop.f32.mrb[149].mxu1  ;;  %3859 = vmatprep.mubr.bf16.mxu0 %v8632_v56 }
 0x564   :  { %v4084_v51 = vmax.f32 %v4083_v31, %v3270_v11  ;;  %v3272_v57 = vpop.f32.mrb[150].mxu1 }
 0x565   :  { %v4574_v8 = vrot.slane %v4552_v36, 7  ;;  %v4048_v14 = vmax.f32 %v4047_v21, %v3272_v57  ;;  %v3274_v60 = vpop.f32.mrb[151].mxu1  ;;  %v3591_v35 = vpop.f32.mrb[200].mxu0 }
 0x566   :  { %v4085_v5 = vmax.f32 %v4084_v51, %v3274_v60  ;;  %v4115_v30 = vmax.f32 %v4114_v12, %v3591_v35  ;;  %v3593_v59 = vpop.f32.mrb[201].mxu0 }
 0x567   :  { %v4152_v7 = vmax.f32 %v4151_v32, %v3593_v59  ;;  %v3595_v34 = vpop.f32.mrb[202].mxu0  ;;  %v4576_v13 = vsel %vm4575_vm1, %v4574_v8, %v4518_v26 }
 0x568   :  { %v4116_v47 = vmax.f32 %v4115_v30, %v3595_v34  ;;  %v3597_v41 = vpop.f32.mrb[203].mxu0  ;;  %v4578_v55 = vsel %vm4577_vm2, %v4574_v8, %v4576_v13 }
 0x569   :  { %v4153_v52 = vmax.f32 %v4152_v7, %v3597_v41  ;;  %v4580_v25 = vsel %vm4579_vm3, %v4574_v8, %v4578_v55 }
 0x56a   :  { %v3278_v9 = vpop.f32.mrb[152].mxu1  ;;  %3860 = vmatmul.mubr.bf16.gmra.mrb[52].mxu0 %v8270_v53  ;;  %v4582_v18 = vsel %vm4581_vm4, %v4574_v8, %v4580_v25 }
 0x56b   :  { %v4049_v40 = vmax.f32 %v4048_v14, %v3278_v9  ;;  %v3280_v1 = vpop.f32.mrb[153].mxu1  ;;  %3869 = vmatprep.mubr.bf16.mxu0 %v8632_v56  ;;  %v4947_v23 = vadd.f32 %v4927_v43, %v4582_v18 }
 0x56c   :  { %v4086_v17 = vmax.f32 %v4085_v5, %v3280_v1  ;;  %v3282_v26 = vpop.f32.mrb[154].mxu1 }
 0x56d   :  { %v4050_v44 = vmax.f32 %v4049_v40, %v3282_v26  ;;  %v3284_v28 = vpop.f32.mrb[155].mxu1  ;;  %v3601_v0 = vpop.f32.mrb[204].mxu0  ;;  %v4951_v50 = vcombine.high %v4947_v23, %v4947_v23  ;;  %v4958_v16 = vrot.slane %v4947_v23, %v8391_v37 }
 0x56e   :  { %v4087_v58 = vmax.f32 %v4086_v17, %v3284_v28  ;;  %v4117_v63 = vmax.f32 %v4116_v47, %v3601_v0  ;;  %v3603_v2 = vpop.f32.mrb[205].mxu0 }
 0x56f   :  { %v4154_v61 = vmax.f32 %v4153_v52, %v3603_v2  ;;  %v3605_v24 = vpop.f32.mrb[206].mxu0  ;;  %v4965_v53 = vrot.slane %v4951_v50, %v8391_v37  ;;  %v4966_v32 = vcombine.high %v4958_v16, %v4958_v16  ;;  %v4993_v41 = vpack.c.bf16 %v4958_v16, %v4958_v16 }
 0x570   :  { %v4118_v42 = vmax.f32 %v4117_v63, %v3605_v24  ;;  %v3607_v29 = vpop.f32.mrb[207].mxu0 }
 0x571   :  { %v4155_v10 = vmax.f32 %v4154_v61, %v3607_v29  ;;  %v4967_v31 = vcombine.high %v4965_v53, %v4965_v53  ;;  %v4995_v12 = vpack.c.bf16 %v4965_v53, %v4965_v53  ;;  %v4994_v57 = vpack.c.bf16 %v4966_v32, %v4966_v32 }
 0x572   :  { %v3288_v6 = vpop.f32.mrb[156].mxu1  ;;  %3870 = vmatmul.mubr.bf16.gmra.mrb[56].mxu0 %v8293_v48 }
 0x573   :  { %v4051_v19 = vmax.f32 %v4050_v44, %v3288_v6  ;;  %v3290_v33 = vpop.f32.mrb[157].mxu1  ;;  %v4996_v46 = vpack.c.bf16 %v4967_v31, %v4967_v31  ;;  %3879 = vmatprep.mubr.bf16.mxu0 %v8632_v56 }
 0x574   :  { %v4088_v20 = vmax.f32 %v4087_v58, %v3290_v33  ;;  %v3292_v39 = vpop.f32.mrb[158].mxu1 }
 0x575   :  { %v4052_v45 = vmax.f32 %v4051_v19, %v3292_v39  ;;  %v3294_v62 = vpop.f32.mrb[159].mxu1  ;;  %v3611_v3 = vpop.f32.mrb[208].mxu0  ;;  %5725 = vmatprep.mubr.bf16.mxu1 %v4996_v46 }
 0x576   :  { %v4089_v38 = vmax.f32 %v4088_v20, %v3294_v62  ;;  %v4119_v36 = vmax.f32 %v4118_v42, %v3611_v3  ;;  %v3613_v21 = vpop.f32.mrb[209].mxu0  ;;  %5726 = vmatmul.mubr.bf16.vlgmr.msra.gmra.mrb[0].mxu1 %v4995_v12 }
 0x577   :  { %v4156_v11 = vmax.f32 %v4155_v10, %v3613_v21  ;;  %v3615_v27 = vpop.f32.mrb[210].mxu0 }
 0x578   :  { %v4120_v48 = vmax.f32 %v4119_v36, %v3615_v27  ;;  %v3617_v54 = vpop.f32.mrb[211].mxu0 }
 0x579   :  { %v4157_v51 = vmax.f32 %v4156_v11, %v3617_v54 }
 0x57a   :  { %v3298_v8 = vpop.f32.mrb[160].mxu1  ;;  %3880 = vmatmul.mubr.bf16.gmra.mrb[60].mxu0 %v8291_v22 }
 0x57b   :  { %v4053_v56 = vmax.f32 %v4052_v45, %v3298_v8  ;;  %v3300_v14 = vpop.f32.mrb[161].mxu1  ;;  %5684 = vmatprep.mubr.bf16.mxu0 %v4994_v57 }
 0x57c   :  { %v4090_v60 = vmax.f32 %v4089_v38, %v3300_v14  ;;  %v3302_v35 = vpop.f32.mrb[162].mxu1 }
 0x57d   :  { %v4054_v5 = vmax.f32 %v4053_v56, %v3302_v35  ;;  %v3304_v30 = vpop.f32.mrb[163].mxu1  ;;  %v3621_v59 = vpop.f32.mrb[212].mxu0 }
 0x57e   :  { %v4091_v7 = vmax.f32 %v4090_v60, %v3304_v30  ;;  %v4121_v34 = vmax.f32 %v4120_v48, %v3621_v59  ;;  %v3623_v13 = vpop.f32.mrb[213].mxu0 }
 0x57f   :  { %v4158_v43 = vmax.f32 %v4157_v51, %v3623_v13  ;;  %v3625_v47 = vpop.f32.mrb[214].mxu0 }
 0x580   :  { %v4122_v55 = vmax.f32 %v4121_v34, %v3625_v47  ;;  %v3627_v52 = vpop.f32.mrb[215].mxu0 }
 0x581   :  { %v4159_v25 = vmax.f32 %v4158_v43, %v3627_v52 }
 0x582   :  { %v3308_v9 = vpop.f32.mrb[164].mxu1  ;;  %5685 = vmatmul.mubr.bf16.vlgmr.msra.gmra.mrb[64].mxu0 %v4993_v41 }
 0x583   :  { %v4055_v22 = vmax.f32 %v4054_v5, %v3308_v9  ;;  %v3310_v18 = vpop.f32.mrb[165].mxu1 }
 0x584   :  { %v4092_v40 = vmax.f32 %v4091_v7, %v3310_v18  ;;  %v3312_v1 = vpop.f32.mrb[166].mxu1 }
 0x585   :  { %v4056_v23 = vmax.f32 %v4055_v22, %v3312_v1  ;;  %v3314_v17 = vpop.f32.mrb[167].mxu1  ;;  %v3631_v26 = vpop.f32.mrb[216].mxu0 }
 0x586   :  { %v4093_v44 = vmax.f32 %v4092_v40, %v3314_v17  ;;  %v4123_v28 = vmax.f32 %v4122_v55, %v3631_v26  ;;  %v3633_v0 = vpop.f32.mrb[217].mxu0 }
 0x587   :  { %v4160_v50 = vmax.f32 %v4159_v25, %v3633_v0  ;;  %v3635_v58 = vpop.f32.mrb[218].mxu0 }
 0x588   :  { %v4124_v63 = vmax.f32 %v4123_v28, %v3635_v58  ;;  %v3637_v2 = vpop.f32.mrb[219].mxu0 }
 0x589   :  { %v4161_v61 = vmax.f32 %v4160_v50, %v3637_v2 }
 0x58a   :  { %v3318_v24 = vpop.f32.mrb[168].mxu1 }
 0x58b   :  { %v4057_v53 = vmax.f32 %v4056_v23, %v3318_v24  ;;  %v3320_v42 = vpop.f32.mrb[169].mxu1 }
 0x58c   :  { %v4094_v29 = vmax.f32 %v4093_v44, %v3320_v42  ;;  %v3322_v10 = vpop.f32.mrb[170].mxu1 }
 0x58d   :  { %v4058_v31 = vmax.f32 %v4057_v53, %v3322_v10  ;;  %v3324_v16 = vpop.f32.mrb[171].mxu1  ;;  %v3641_v6 = vpop.f32.mrb[220].mxu0 }
 0x58e   :  { %v4095_v19 = vmax.f32 %v4094_v29, %v3324_v16  ;;  %v4125_v33 = vmax.f32 %v4124_v63, %v3641_v6  ;;  %v3643_v46 = vpop.f32.mrb[221].mxu0 }
 0x58f   :  { %v4162_v20 = vmax.f32 %v4161_v61, %v3643_v46  ;;  %v3645_v39 = vpop.f32.mrb[222].mxu0 }
 0x590   :  { %v4126_v12 = vmax.f32 %v4125_v33, %v3645_v39  ;;  %v3647_v45 = vpop.f32.mrb[223].mxu0 }
 0x591   :  { %v4163_v62 = vmax.f32 %v4162_v20, %v3647_v45 }
 0x592   :  { %v3328_v3 = vpop.f32.mrb[172].mxu1 }
 0x593   :  { %v4059_v32 = vmax.f32 %v4058_v31, %v3328_v3  ;;  %v3330_v38 = vpop.f32.mrb[173].mxu1 }
 0x594   :  { %v4096_v36 = vmax.f32 %v4095_v19, %v3330_v38  ;;  %v3332_v21 = vpop.f32.mrb[174].mxu1 }
 0x595   :  { %v4060_v11 = vmax.f32 %v4059_v32, %v3332_v21  ;;  %v3334_v27 = vpop.f32.mrb[175].mxu1  ;;  %v3651_v48 = vpop.f32.mrb[224].mxu0  ;;  %v6615_v21 = vld [vmem:[#allocation15 + $0x204] ss:$8 sps:$4 sm:$0xff]  }
 0x596   :  { %v4097_v54 = vmax.f32 %v4096_v36, %v3334_v27  ;;  %v4127_v51 = vmax.f32 %v4126_v12, %v3651_v48  ;;  %v3653_v57 = vpop.f32.mrb[225].mxu0  ;;  %v6613_v27 = vld [vmem:[#allocation15 + $0x200] ss:$8 sps:$4 sm:$0xff]   ;;  %5734 = vmatprep.subr.bf16.mxu1 %v6615_v21 }
 0x597   :  { %v4164_v8 = vmax.f32 %v4163_v62, %v3653_v57  ;;  %v3655_v56 = vpop.f32.mrb[226].mxu0  ;;  %5735 = vmatpush1.bf16.msra.mxu1 %v6613_v27 }
 0x598   :  { %v4128_v14 = vmax.f32 %v4127_v51, %v3655_v56  ;;  %v3657_v60 = vpop.f32.mrb[227].mxu0 }
 0x599   :  { %v4165_v35 = vmax.f32 %v4164_v8, %v3657_v60  ;;  %v6618_v60 = vld [vmem:[#allocation15 + $0x214] ss:$8 sps:$4 sm:$0xff]  }
 0x59a   :  { %v3338_v5 = vpop.f32.mrb[176].mxu1  ;;  %5736 = vmatprep.subr.bf16.mxu1 %v6618_v60 }
 0x59b   :  { %v4061_v30 = vmax.f32 %v4060_v11, %v3338_v5  ;;  %v3340_v59 = vpop.f32.mrb[177].mxu1 }
 0x59c   :  { %v4098_v7 = vmax.f32 %v4097_v54, %v3340_v59  ;;  %v3342_v34 = vpop.f32.mrb[178].mxu1  ;;  %v6616_v59 = vld [vmem:[#allocation15 + $0x210] ss:$8 sps:$4 sm:$0xff]  }
 0x59d   :  { %v4062_v13 = vmax.f32 %v4061_v30, %v3342_v34  ;;  %v3344_v43 = vpop.f32.mrb[179].mxu1  ;;  %v3661_v47 = vpop.f32.mrb[228].mxu0  ;;  %5737 = vmatpush1.bf16.msra.mxu1 %v6616_v59 }
 0x59e   :  { %v4099_v41 = vmax.f32 %v4098_v7, %v3344_v43  ;;  %v4129_v55 = vmax.f32 %v4128_v14, %v3661_v47  ;;  %v3663_v52 = vpop.f32.mrb[229].mxu0 }
 0x59f   :  { %v4166_v25 = vmax.f32 %v4165_v35, %v3663_v52  ;;  %v3665_v9 = vpop.f32.mrb[230].mxu0 }
 0x5a0   :  { %v4130_v22 = vmax.f32 %v4129_v55, %v3665_v9  ;;  %v3667_v18 = vpop.f32.mrb[231].mxu0 }
 0x5a1   :  { %v4167_v40 = vmax.f32 %v4166_v25, %v3667_v18  ;;  %v6621_v25 = vld [vmem:[#allocation15 + $0x224] ss:$8 sps:$4 sm:$0xff]   ;;  %v6619_v18 = vld [vmem:[#allocation15 + $0x220] ss:$8 sps:$4 sm:$0xff]  }
 0x5a2   :  { %v3348_v1 = vpop.f32.mrb[180].mxu1  ;;  %5738 = vmatprep.subr.bf16.mxu1 %v6621_v25 }
 0x5a3   :  { %v4063_v23 = vmax.f32 %v4062_v13, %v3348_v1  ;;  %v3350_v17 = vpop.f32.mrb[181].mxu1  ;;  %5739 = vmatpush1.bf16.msra.mxu1 %v6619_v18 }
 0x5a4   :  { %v4100_v26 = vmax.f32 %v4099_v41, %v3350_v17  ;;  %v3352_v44 = vpop.f32.mrb[182].mxu1 }
 0x5a5   :  { %v4064_v28 = vmax.f32 %v4063_v23, %v3352_v44  ;;  %v3354_v0 = vpop.f32.mrb[183].mxu1  ;;  %v3671_v50 = vpop.f32.mrb[232].mxu0 }
 0x5a6   :  { %v4101_v58 = vmax.f32 %v4100_v26, %v3354_v0  ;;  %v4131_v63 = vmax.f32 %v4130_v22, %v3671_v50  ;;  %v3673_v2 = vpop.f32.mrb[233].mxu0  ;;  %v6624_v50 = vld [vmem:[#allocation15 + $0x234] ss:$8 sps:$4 sm:$0xff]  }
 0x5a7   :  { %v4168_v61 = vmax.f32 %v4167_v40, %v3673_v2  ;;  %v3675_v24 = vpop.f32.mrb[234].mxu0  ;;  %5740 = vmatprep.subr.bf16.mxu1 %v6624_v50 }
 0x5a8   :  { %v4132_v53 = vmax.f32 %v4131_v63, %v3675_v24  ;;  %v3677_v42 = vpop.f32.mrb[235].mxu0  ;;  %v6622_v24 = vld [vmem:[#allocation15 + $0x230] ss:$8 sps:$4 sm:$0xff]  }
 0x5a9   :  { %v4169_v29 = vmax.f32 %v4168_v61, %v3677_v42  ;;  %5741 = vmatpush1.bf16.msra.mxu1 %v6622_v24 }
 0x5aa   :  { %v3358_v10 = vpop.f32.mrb[184].mxu1 }
 0x5ab   :  { %v4065_v31 = vmax.f32 %v4064_v28, %v3358_v10  ;;  %v3360_v16 = vpop.f32.mrb[185].mxu1 }
 0x5ac   :  { %v4102_v6 = vmax.f32 %v4101_v58, %v3360_v16  ;;  %v3362_v19 = vpop.f32.mrb[186].mxu1 }
 0x5ad   :  { %v4066_v33 = vmax.f32 %v4065_v31, %v3362_v19  ;;  %v3364_v46 = vpop.f32.mrb[187].mxu1  ;;  %v3681_v20 = vpop.f32.mrb[236].mxu0 }
 0x5ae   :  { %v4103_v39 = vmax.f32 %v4102_v6, %v3364_v46  ;;  %v4133_v12 = vmax.f32 %v4132_v53, %v3681_v20  ;;  %v3683_v45 = vpop.f32.mrb[237].mxu0 }
 0x5af   :  { %v4170_v62 = vmax.f32 %v4169_v29, %v3683_v45  ;;  %v3685_v3 = vpop.f32.mrb[238].mxu0 }
 0x5b0   :  { %v4134_v32 = vmax.f32 %v4133_v12, %v3685_v3  ;;  %v3687_v38 = vpop.f32.mrb[239].mxu0 }
 0x5b1   :  { %v4171_v36 = vmax.f32 %v4170_v62, %v3687_v38 }
 0x5b2   :  { %v3368_v11 = vpop.f32.mrb[188].mxu1 }
 0x5b3   :  { %v4067_v48 = vmax.f32 %v4066_v33, %v3368_v11  ;;  %v3370_v54 = vpop.f32.mrb[189].mxu1  ;;  %v6627_v33 = vld [vmem:[#allocation15 + $0x244] ss:$8 sps:$4 sm:$0xff]   ;;  %v6630_v11 = vld [vmem:[#allocation15 + $0x254] ss:$8 sps:$4 sm:$0xff]  }
 0x5b4   :  { %v4104_v51 = vmax.f32 %v4103_v39, %v3370_v54  ;;  %v3372_v57 = vpop.f32.mrb[190].mxu1  ;;  %v6625_v39 = vld [vmem:[#allocation15 + $0x240] ss:$8 sps:$4 sm:$0xff]   ;;  %5742 = vmatprep.subr.bf16.mxu1 %v6627_v33 }
 0x5b5   :  { %v4068_v8 = vmax.f32 %v4067_v48, %v3372_v57  ;;  %v3374_v56 = vpop.f32.mrb[191].mxu1  ;;  %v3691_v14 = vpop.f32.mrb[240].mxu0  ;;  %5743 = vmatpush1.bf16.msra.mxu1 %v6625_v39 }
 0x5b6   :  { %v4105_v35 = vmax.f32 %v4104_v51, %v3374_v56  ;;  %v4135_v5 = vmax.f32 %v4134_v32, %v3691_v14  ;;  %v3693_v30 = vpop.f32.mrb[241].mxu0  ;;  %v6628_v51 = vld [vmem:[#allocation15 + $0x250] ss:$8 sps:$4 sm:$0xff]   ;;  %5744 = vmatprep.subr.bf16.mxu1 %v6630_v11 }
 0x5b7   :  { %v4069_v7 = vrot.slane %v4068_v8, 4  ;;  %v4172_v34 = vmax.f32 %v4171_v36, %v3693_v30  ;;  %v3695_v13 = vpop.f32.mrb[242].mxu0 }
 0x5b8   :  { %v4106_v43 = vrot.slane %v4105_v35, 4  ;;  %v4136_v47 = vmax.f32 %v4135_v5, %v3695_v13  ;;  %v3697_v41 = vpop.f32.mrb[243].mxu0  ;;  %v6633_v5 = vld [vmem:[#allocation15 + $0x264] ss:$8 sps:$4 sm:$0xff]  }
 0x5b9   :  { %v4070_v55 = vmax.f32 %v4068_v8, %v4069_v7  ;;  %v4173_v52 = vmax.f32 %v4172_v34, %v3697_v41  ;;  %5745 = vmatpush1.bf16.msra.mxu1 %v6628_v51 }
 0x5ba   :  { %v4107_v9 = vmax.f32 %v4105_v35, %v4106_v43  ;;  %v3378_v22 = vpop.f32.mrb[192].mxu1  ;;  %v6631_v35 = vld [vmem:[#allocation15 + $0x260] ss:$8 sps:$4 sm:$0xff]   ;;  %5746 = vmatprep.subr.bf16.mxu1 %v6633_v5 }
 0x5bb   :  { %v4071_v40 = vrot.slane %v4070_v55, 2  ;;  %v3380_v1 = vpop.f32.mrb[193].mxu1 }
 0x5bc   :  { %v4108_v23 = vrot.slane %v4107_v9, 2  ;;  %v3382_v17 = vpop.f32.mrb[194].mxu1 }
 0x5bd   :  { %v4072_v26 = vmax.f32 %v4070_v55, %v4071_v40  ;;  %v4334_v44 = vmax.f32 %v3378_v22, %v3382_v17  ;;  %v3384_v28 = vpop.f32.mrb[195].mxu1  ;;  %v3701_v0 = vpop.f32.mrb[244].mxu0  ;;  %5747 = vmatpush1.bf16.msra.mxu1 %v6631_v35  ;;  %v6636_v55 = vld [vmem:[#allocation15 + $0x274] ss:$8 sps:$4 sm:$0xff]   ;;  %v6634_v22 = vld [vmem:[#allocation15 + $0x270] ss:$8 sps:$4 sm:$0xff]  }
 0x5be   :  { %v4109_v58 = vmax.f32 %v4107_v9, %v4108_v23  ;;  %v4371_v63 = vmax.f32 %v3380_v1, %v3384_v28  ;;  %v4137_v2 = vmax.f32 %v4136_v47, %v3701_v0  ;;  %v3703_v61 = vpop.f32.mrb[245].mxu0  ;;  %5748 = vmatprep.subr.bf16.mxu1 %v6636_v55  ;;  %v6637_v0 = vld [vmem:[#allocation15 + $0x280] ss:$8 sps:$4 sm:$0xff]  }
 0x5bf   :  { %v4073_v53 = vrot.slane %v4072_v26, 1  ;;  %v4174_v42 = vmax.f32 %v4173_v52, %v3703_v61  ;;  %v3705_v29 = vpop.f32.mrb[246].mxu0 }
 0x5c0   :  { %v4110_v10 = vrot.slane %v4109_v58, 1  ;;  %v4138_v31 = vmax.f32 %v4137_v2, %v3705_v29  ;;  %v3707_v16 = vpop.f32.mrb[247].mxu0 }
 0x5c1   :  { %v8527_v6 = vmax.f32 %v4072_v26, %v4073_v53  ;;  %v4175_v19 = vmax.f32 %v4174_v42, %v3707_v16  ;;  %5749 = vmatpush1.bf16.msra.mxu1 %v6634_v22  ;;  %v6639_v26 = vld [vmem:[#allocation15 + $0x284] ss:$8 sps:$4 sm:$0xff]  }
 0x5c2   :  { %v8529_v46 = vmax.f32 %v4109_v58, %v4110_v10  ;;  %v3388_v20 = vpop.f32.mrb[196].mxu1  ;;  %5750 = vmatprep.subr.bf16.mxu1 %v6639_v26 }
 0x5c3   :  { %v4335_v12 = vmax.f32 %v4334_v44, %v3388_v20  ;;  %v3390_v45 = vpop.f32.mrb[197].mxu1  ;;  %v6640_v20 = vld [vmem:[#allocation15 + $0x290] ss:$8 sps:$4 sm:$0xff]  }
 0x5c4   :  { %v4519_v62 = vcombine.low %v8527_v6, %v8529_v46  ;;  %v4372_v3 = vmax.f32 %v4371_v63, %v3390_v45  ;;  %v3392_v32 = vpop.f32.mrb[198].mxu1 }
 0x5c5   :  { %v4336_v38 = vmax.f32 %v4335_v12, %v3392_v32  ;;  %v3394_v36 = vpop.f32.mrb[199].mxu1  ;;  %v3711_v21 = vpop.f32.mrb[248].mxu0  ;;  %5751 = vmatpush1.bf16.msra.mxu1 %v6637_v0 }
 0x5c6   :  { %v4373_v27 = vmax.f32 %v4372_v3, %v3394_v36  ;;  %v4139_v48 = vmax.f32 %v4138_v31, %v3711_v21  ;;  %v3713_v54 = vpop.f32.mrb[249].mxu0  ;;  %v6642_v31 = vld [vmem:[#allocation15 + $0x294] ss:$8 sps:$4 sm:$0xff]   ;;  %v6645_v21 = vld [vmem:[#allocation15 + $0x2a4] ss:$8 sps:$4 sm:$0xff]  }
 0x5c7   :  { %v4176_v57 = vmax.f32 %v4175_v19, %v3713_v54  ;;  %v3715_v8 = vpop.f32.mrb[250].mxu0  ;;  %5752 = vmatprep.subr.bf16.mxu1 %v6642_v31  ;;  %v6655_v31 = vld [vmem:[#allocation15 + $0x2e0] ss:$8 sps:$4 sm:$0xff]  }
 0x5c8   :  { %v4140_v56 = vmax.f32 %v4139_v48, %v3715_v8  ;;  %v3717_v14 = vpop.f32.mrb[251].mxu0  ;;  %v6643_v48 = vld [vmem:[#allocation15 + $0x2a0] ss:$8 sps:$4 sm:$0xff]  }
 0x5c9   :  { %v4177_v60 = vmax.f32 %v4176_v57, %v3717_v14  ;;  %5753 = vmatpush1.bf16.msra.mxu1 %v6640_v20 }
 0x5ca   :  { %v3398_v30 = vpop.f32.mrb[200].mxu1  ;;  %5754 = vmatprep.subr.bf16.mxu1 %v6645_v21 }
 0x5cb   :  { %v4337_v59 = vmax.f32 %v4336_v38, %v3398_v30  ;;  %v3400_v7 = vpop.f32.mrb[201].mxu1 }
 0x5cc   :  { %v4374_v34 = vmax.f32 %v4373_v27, %v3400_v7  ;;  %v3402_v13 = vpop.f32.mrb[202].mxu1 }
 0x5cd   :  { %v4338_v43 = vmax.f32 %v4337_v59, %v3402_v13  ;;  %v3404_v47 = vpop.f32.mrb[203].mxu1  ;;  %v3721_v41 = vpop.f32.mrb[252].mxu0  ;;  %5755 = vmatpush1.bf16.msra.mxu1 %v6643_v48  ;;  %v6648_v59 = vld [vmem:[#allocation15 + $0x2b4] ss:$8 sps:$4 sm:$0xff]  }
 0x5ce   :  { %v4375_v52 = vmax.f32 %v4374_v34, %v3404_v47  ;;  %v4141_v25 = vmax.f32 %v4140_v56, %v3721_v41  ;;  %v3723_v9 = vpop.f32.mrb[253].mxu0  ;;  %5756 = vmatprep.subr.bf16.mxu1 %v6648_v59 }
 0x5cf   :  { %v4178_v18 = vmax.f32 %v4177_v60, %v3723_v9  ;;  %v3725_v40 = vpop.f32.mrb[254].mxu0  ;;  %v8537_v9 = vrot.slane %v4519_v62, %v8391_v37  ;;  %v6652_v62 = vld [vmem:[#allocation15 + $0x2d0] ss:$8 sps:$4 sm:$0xff]  }
 0x5d0   :  { %v4142_v1 = vmax.f32 %v4141_v25, %v3725_v40  ;;  %v3727_v23 = vpop.f32.mrb[255].mxu0  ;;  %v6651_v40 = vld [vmem:[#allocation15 + $0x2c4] ss:$8 sps:$4 sm:$0xff]  }
 0x5d1   :  { %v4179_v17 = vmax.f32 %v4178_v18, %v3727_v23  ;;  %v6649_v23 = vld [vmem:[#allocation15 + $0x2c0] ss:$8 sps:$4 sm:$0xff]  }
 0x5d2   :  { %v4143_v44 = vrot.slane %v4142_v1, 4  ;;  %v3408_v28 = vpop.f32.mrb[204].mxu1 }
 0x5d3   :  { %v4180_v50 = vrot.slane %v4179_v17, 4  ;;  %v4339_v58 = vmax.f32 %v4338_v43, %v3408_v28  ;;  %v3410_v63 = vpop.f32.mrb[205].mxu1  ;;  %v6646_v43 = vld [vmem:[#allocation15 + $0x2b0] ss:$8 sps:$4 sm:$0xff]  }
 0x5d4   :  { %v4144_v2 = vmax.f32 %v4142_v1, %v4143_v44  ;;  %v4376_v61 = vmax.f32 %v4375_v52, %v3410_v63  ;;  %v3412_v24 = vpop.f32.mrb[206].mxu1  ;;  %5757 = vmatpush1.bf16.msra.mxu1 %v6646_v43 }
 0x5d5   :  { %v4181_v53 = vmax.f32 %v4179_v17, %v4180_v50  ;;  %v4340_v42 = vmax.f32 %v4339_v58, %v3412_v24  ;;  %v3414_v29 = vpop.f32.mrb[207].mxu1  ;;  %v3731_v10 = vpop.f32.mrb[0].mxu0  ;;  %5758 = vmatprep.subr.bf16.mxu1 %v6651_v40  ;;  %v6654_v58 = vld [vmem:[#allocation15 + $0x2d4] ss:$8 sps:$4 sm:$0xff]   ;;  %v6657_v24 = vld [vmem:[#allocation15 + $0x2e4] ss:$8 sps:$4 sm:$0xff]  }
 0x5d6   :  { %v4145_v16 = vrot.slane %v4144_v2, 2  ;;  %v4377_v19 = vmax.f32 %v4376_v61, %v3414_v29  ;;  %v3733_v33 = vpop.f32.mrb[1].mxu0 }
 0x5d7   :  { %v4182_v39 = vrot.slane %v4181_v53, 2  ;;  %v3735_v12 = vpop.f32.mrb[2].mxu0 }
 0x5d8   :  { %v4146_v45 = vmax.f32 %v4144_v2, %v4145_v16  ;;  %v4408_v3 = vmax.f32 %v3731_v10, %v3735_v12  ;;  %v3737_v32 = vpop.f32.mrb[3].mxu0  ;;  %5759 = vmatpush1.bf16.msra.mxu1 %v6649_v23 }
 0x5d9   :  { %v4183_v38 = vmax.f32 %v4181_v53, %v4182_v39  ;;  %v4445_v36 = vmax.f32 %v3733_v33, %v3737_v32  ;;  %5760 = vmatprep.subr.bf16.mxu1 %v6654_v58 }
 0x5da   :  { %v4147_v11 = vrot.slane %v4146_v45, 1  ;;  %v3418_v27 = vpop.f32.mrb[208].mxu1 }
 0x5db   :  { %v4184_v54 = vrot.slane %v4183_v38, 1  ;;  %v4341_v51 = vmax.f32 %v4340_v42, %v3418_v27  ;;  %v3420_v57 = vpop.f32.mrb[209].mxu1 }
 0x5dc   :  { %v4148_v8 = vmax.f32 %v4146_v45, %v4147_v11  ;;  %v4378_v56 = vmax.f32 %v4377_v19, %v3420_v57  ;;  %v3422_v14 = vpop.f32.mrb[210].mxu1  ;;  %5761 = vmatpush1.bf16.msra.mxu1 %v6652_v62  ;;  %v6660_v19 = vld [vmem:[#allocation15 + $0x2f4] ss:$8 sps:$4 sm:$0xff]  }
 0x5dd   :  { %v4185_v60 = vmax.f32 %v4183_v38, %v4184_v54  ;;  %v4342_v35 = vmax.f32 %v4341_v51, %v3422_v14  ;;  %v3424_v5 = vpop.f32.mrb[211].mxu1  ;;  %v3741_v30 = vpop.f32.mrb[4].mxu0  ;;  %5762 = vmatprep.subr.bf16.mxu1 %v6657_v24 }
 0x5de   :  { %v4379_v7 = vmax.f32 %v4378_v56, %v3424_v5  ;;  %v4409_v34 = vmax.f32 %v4408_v3, %v3741_v30  ;;  %v3743_v13 = vpop.f32.mrb[5].mxu0  ;;  %v6658_v3 = vld [vmem:[#allocation15 + $0x2f0] ss:$8 sps:$4 sm:$0xff]   ;;  %v6663_v56 = vld [vmem:[#allocation15 + $0x304] ss:$8 sps:$4 sm:$0xff]  }
 0x5df   :  { %v4520_v47 = vcombine.low %v4148_v8, %v4185_v60  ;;  %v4446_v41 = vmax.f32 %v4445_v36, %v3743_v13  ;;  %v3745_v55 = vpop.f32.mrb[6].mxu0 }
 0x5e0   :  { %v4410_v52 = vmax.f32 %v4409_v34, %v3745_v55  ;;  %v3747_v25 = vpop.f32.mrb[7].mxu0  ;;  %5763 = vmatpush1.bf16.msra.mxu1 %v6655_v31 }
 0x5e1   :  { %v8540_v22 = vrot.slane %v4520_v47, %v8391_v37  ;;  %v4447_v18 = vmax.f32 %v4446_v41, %v3747_v25  ;;  %5764 = vmatprep.subr.bf16.mxu1 %v6660_v19 }
 0x5e2   :  { %v3428_v1 = vpop.f32.mrb[212].mxu1 }
 0x5e3   :  { %v4535_v17 = vcombine.low %v8537_v9, %v8540_v22  ;;  %v4343_v26 = vmax.f32 %v4342_v35, %v3428_v1  ;;  %v3430_v44 = vpop.f32.mrb[213].mxu1 }
 0x5e4   :  { %v4380_v28 = vmax.f32 %v4379_v7, %v3430_v44  ;;  %v3432_v0 = vpop.f32.mrb[214].mxu1  ;;  %5765 = vmatpush1.bf16.msra.mxu1 %v6658_v3 }
 0x5e5   :  { %v4344_v50 = vmax.f32 %v4343_v26, %v3432_v0  ;;  %v3434_v6 = vpop.f32.mrb[215].mxu1  ;;  %v3751_v46 = vpop.f32.mrb[8].mxu0  ;;  %5775 = vmatprep.subr.bf16.mxu1 %v6663_v56 }
 0x5e6   :  { %v4381_v63 = vmax.f32 %v4380_v28, %v3434_v6  ;;  %v4411_v2 = vmax.f32 %v4410_v52, %v3751_v46  ;;  %v3753_v61 = vpop.f32.mrb[9].mxu0 }
 0x5e7   :  { %v4448_v53 = vmax.f32 %v4447_v18, %v3753_v61  ;;  %v3755_v42 = vpop.f32.mrb[10].mxu0 }
 0x5e8   :  { %v4412_v29 = vmax.f32 %v4411_v2, %v3755_v42  ;;  %v3757_v10 = vpop.f32.mrb[11].mxu0 }
 0x5e9   :  { %v4449_v16 = vmax.f32 %v4448_v53, %v3757_v10 }
 0x5ea   :  { %v3438_v33 = vpop.f32.mrb[216].mxu1 }
 0x5eb   :  { %v4345_v20 = vmax.f32 %v4344_v50, %v3438_v33  ;;  %v3440_v39 = vpop.f32.mrb[217].mxu1 }
 0x5ec   :  { %v4382_v12 = vmax.f32 %v4381_v63, %v3440_v39  ;;  %v3442_v45 = vpop.f32.mrb[218].mxu1 }
 0x5ed   :  { %v4346_v32 = vmax.f32 %v4345_v20, %v3442_v45  ;;  %v3444_v38 = vpop.f32.mrb[219].mxu1  ;;  %v3761_v36 = vpop.f32.mrb[12].mxu0 }
 0x5ee   :  { %v4383_v21 = vmax.f32 %v4382_v12, %v3444_v38  ;;  %v4413_v11 = vmax.f32 %v4412_v29, %v3761_v36  ;;  %v3763_v27 = vpop.f32.mrb[13].mxu0 }
 0x5ef   :  { %v4450_v48 = vmax.f32 %v4449_v16, %v3763_v27  ;;  %v3765_v54 = vpop.f32.mrb[14].mxu0 }
 0x5f0   :  { %v4414_v51 = vmax.f32 %v4413_v11, %v3765_v54  ;;  %v3767_v57 = vpop.f32.mrb[15].mxu0 }
 0x5f1   :  { %v4451_v8 = vmax.f32 %v4450_v48, %v3767_v57 }
 0x5f2   :  { %v3448_v14 = vpop.f32.mrb[220].mxu1 }
 0x5f3   :  { %v4347_v60 = vmax.f32 %v4346_v32, %v3448_v14  ;;  %v3450_v35 = vpop.f32.mrb[221].mxu1 }
 0x5f4   :  { %v4384_v5 = vmax.f32 %v4383_v21, %v3450_v35  ;;  %v3452_v30 = vpop.f32.mrb[222].mxu1 }
 0x5f5   :  { %v4348_v59 = vmax.f32 %v4347_v60, %v3452_v30  ;;  %v3454_v7 = vpop.f32.mrb[223].mxu1  ;;  %v3771_v34 = vpop.f32.mrb[16].mxu0 }
 0x5f6   :  { %v4385_v13 = vmax.f32 %v4384_v5, %v3454_v7  ;;  %v4415_v43 = vmax.f32 %v4414_v51, %v3771_v34  ;;  %v3773_v47 = vpop.f32.mrb[17].mxu0 }
 0x5f7   :  { %v4452_v41 = vmax.f32 %v4451_v8, %v3773_v47  ;;  %v3775_v55 = vpop.f32.mrb[18].mxu0 }
 0x5f8   :  { %v4416_v52 = vmax.f32 %v4415_v43, %v3775_v55  ;;  %v3777_v25 = vpop.f32.mrb[19].mxu0 }
 0x5f9   :  { %v4453_v18 = vmax.f32 %v4452_v41, %v3777_v25 }
 0x5fa   :  { %v3458_v40 = vpop.f32.mrb[224].mxu1 }
 0x5fb   :  { %v4349_v1 = vmax.f32 %v4348_v59, %v3458_v40  ;;  %v3460_v23 = vpop.f32.mrb[225].mxu1 }
 0x5fc   :  { %v4386_v26 = vmax.f32 %v4385_v13, %v3460_v23  ;;  %v3462_v44 = vpop.f32.mrb[226].mxu1 }
 0x5fd   :  { %v4350_v28 = vmax.f32 %v4349_v1, %v3462_v44  ;;  %v3464_v0 = vpop.f32.mrb[227].mxu1  ;;  %v3781_v50 = vpop.f32.mrb[20].mxu0 }
 0x5fe   :  { %v4387_v6 = vmax.f32 %v4386_v26, %v3464_v0  ;;  %v4417_v46 = vmax.f32 %v4416_v52, %v3781_v50  ;;  %v3783_v62 = vpop.f32.mrb[21].mxu0 }
 0x5ff   :  { %v4454_v58 = vmax.f32 %v4453_v18, %v3783_v62  ;;  %v3785_v63 = vpop.f32.mrb[22].mxu0 }
 0x600   :  { %v4418_v2 = vmax.f32 %v4417_v46, %v3785_v63  ;;  %v3787_v61 = vpop.f32.mrb[23].mxu0 }
 0x601   :  { %v4455_v24 = vmax.f32 %v4454_v58, %v3787_v61 }
 0x602   :  { %v3468_v53 = vpop.f32.mrb[228].mxu1 }
 0x603   :  { %v4351_v42 = vmax.f32 %v4350_v28, %v3468_v53  ;;  %v3470_v29 = vpop.f32.mrb[229].mxu1 }
 0x604   :  { %v4388_v10 = vmax.f32 %v4387_v6, %v3470_v29  ;;  %v3472_v31 = vpop.f32.mrb[230].mxu1 }
 0x605   :  { %v4352_v16 = vmax.f32 %v4351_v42, %v3472_v31  ;;  %v3474_v19 = vpop.f32.mrb[231].mxu1  ;;  %v3791_v33 = vpop.f32.mrb[24].mxu0 }
 0x606   :  { %v4389_v20 = vmax.f32 %v4388_v10, %v3474_v19  ;;  %v4419_v39 = vmax.f32 %v4418_v2, %v3791_v33  ;;  %v3793_v12 = vpop.f32.mrb[25].mxu0 }
 0x607   :  { %v4456_v45 = vmax.f32 %v4455_v24, %v3793_v12  ;;  %v3795_v3 = vpop.f32.mrb[26].mxu0 }
 0x608   :  { %v4420_v32 = vmax.f32 %v4419_v39, %v3795_v3  ;;  %v3797_v38 = vpop.f32.mrb[27].mxu0 }
 0x609   :  { %v4457_v36 = vmax.f32 %v4456_v45, %v3797_v38 }
 0x60a   :  { %v3478_v21 = vpop.f32.mrb[232].mxu1 }
 0x60b   :  { %v4353_v11 = vmax.f32 %v4352_v16, %v3478_v21  ;;  %v3480_v27 = vpop.f32.mrb[233].mxu1 }
 0x60c   :  { %v4390_v48 = vmax.f32 %v4389_v20, %v3480_v27  ;;  %v3482_v54 = vpop.f32.mrb[234].mxu1 }
 0x60d   :  { %v4354_v51 = vmax.f32 %v4353_v11, %v3482_v54  ;;  %v3484_v57 = vpop.f32.mrb[235].mxu1  ;;  %v3801_v8 = vpop.f32.mrb[28].mxu0 }
 0x60e   :  { %v4391_v56 = vmax.f32 %v4390_v48, %v3484_v57  ;;  %v4421_v14 = vmax.f32 %v4420_v32, %v3801_v8  ;;  %v3803_v60 = vpop.f32.mrb[29].mxu0 }
 0x60f   :  { %v4458_v35 = vmax.f32 %v4457_v36, %v3803_v60  ;;  %v3805_v5 = vpop.f32.mrb[30].mxu0 }
 0x610   :  { %v4422_v30 = vmax.f32 %v4421_v14, %v3805_v5  ;;  %v3807_v59 = vpop.f32.mrb[31].mxu0 }
 0x611   :  { %v4459_v7 = vmax.f32 %v4458_v35, %v3807_v59 }
 0x612   :  { %v3488_v34 = vpop.f32.mrb[236].mxu1 }
 0x613   :  { %v4355_v13 = vmax.f32 %v4354_v51, %v3488_v34  ;;  %v3490_v43 = vpop.f32.mrb[237].mxu1 }
 0x614   :  { %v4392_v47 = vmax.f32 %v4391_v56, %v3490_v43  ;;  %v3492_v41 = vpop.f32.mrb[238].mxu1 }
 0x615   :  { %v4356_v55 = vmax.f32 %v4355_v13, %v3492_v41  ;;  %v3494_v52 = vpop.f32.mrb[239].mxu1  ;;  %v3811_v25 = vpop.f32.mrb[32].mxu0 }
 0x616   :  { %v4393_v18 = vmax.f32 %v4392_v47, %v3494_v52  ;;  %v4423_v40 = vmax.f32 %v4422_v30, %v3811_v25  ;;  %v3813_v1 = vpop.f32.mrb[33].mxu0 }
 0x617   :  { %v4460_v23 = vmax.f32 %v4459_v7, %v3813_v1  ;;  %v3815_v26 = vpop.f32.mrb[34].mxu0 }
 0x618   :  { %v4424_v44 = vmax.f32 %v4423_v40, %v3815_v26  ;;  %v3817_v28 = vpop.f32.mrb[35].mxu0  ;;  %v6709_v26 = vld [vmem:[#allocation18 + $0x40] sm:$0xff]  }
 0x619   :  { %v4461_v0 = vmax.f32 %v4460_v23, %v3817_v28  ;;  %v6711_v28 = vld [vmem:[#allocation18 + $0x48] sm:$0xff]   ;;  %6296 = vmatprep.subr.bf16.mxu0 %v6709_v26 }
 0x61a   :  { %v3498_v50 = vpop.f32.mrb[240].mxu1 }
 0x61b   :  { %v4357_v6 = vmax.f32 %v4356_v55, %v3498_v50  ;;  %v3500_v46 = vpop.f32.mrb[241].mxu1 }
 0x61c   :  { %v4394_v62 = vmax.f32 %v4393_v18, %v3500_v46  ;;  %v3502_v58 = vpop.f32.mrb[242].mxu1 }
 0x61d   :  { %v4358_v63 = vmax.f32 %v4357_v6, %v3502_v58  ;;  %v3504_v2 = vpop.f32.mrb[243].mxu1  ;;  %v3821_v61 = vpop.f32.mrb[36].mxu0 }
 0x61e   :  { %v4395_v24 = vmax.f32 %v4394_v62, %v3504_v2  ;;  %v4425_v53 = vmax.f32 %v4424_v44, %v3821_v61  ;;  %v3823_v42 = vpop.f32.mrb[37].mxu0  ;;  %v6710_v44 = vld [vmem:[#allocation18] sm:$0xff]  }
 0x61f   :  { %v4462_v29 = vmax.f32 %v4461_v0, %v3823_v42  ;;  %v3825_v10 = vpop.f32.mrb[38].mxu0  ;;  %6297 = vmatpush3.bf16.msra.mxu0 %v6710_v44 }
 0x620   :  { %v4426_v31 = vmax.f32 %v4425_v53, %v3825_v10  ;;  %v3827_v16 = vpop.f32.mrb[39].mxu0  ;;  %6298 = vmatprep.subr.bf16.mxu0 %v6711_v28  ;;  %v6713_v10 = vld [vmem:[#allocation18 + $0x50] sm:$0xff]  }
 0x621   :  { %v4463_v19 = vmax.f32 %v4462_v29, %v3827_v16 }
 0x622   :  { %v3508_v33 = vpop.f32.mrb[244].mxu1 }
 0x623   :  { %v4359_v20 = vmax.f32 %v4358_v63, %v3508_v33  ;;  %v3510_v39 = vpop.f32.mrb[245].mxu1 }
 0x624   :  { %v4396_v12 = vmax.f32 %v4395_v24, %v3510_v39  ;;  %v3512_v45 = vpop.f32.mrb[246].mxu1  ;;  %v6712_v24 = vld [vmem:[#allocation18 + $0x8] sm:$0xff]  }
 0x625   :  { %v4360_v3 = vmax.f32 %v4359_v20, %v3512_v45  ;;  %v3514_v32 = vpop.f32.mrb[247].mxu1  ;;  %v3831_v38 = vpop.f32.mrb[40].mxu0  ;;  %6299 = vmatpush3.bf16.msra.mxu0 %v6712_v24  ;;  %v6714_v20 = vld [vmem:[#allocation18 + $0x10] sm:$0xff]  }
 0x626   :  { %v4397_v36 = vmax.f32 %v4396_v12, %v3514_v32  ;;  %v4427_v21 = vmax.f32 %v4426_v31, %v3831_v38  ;;  %v3833_v11 = vpop.f32.mrb[41].mxu0  ;;  %6300 = vmatprep.subr.bf16.mxu0 %v6713_v10  ;;  %v6715_v12 = vld [vmem:[#allocation18 + $0x58] sm:$0xff]  }
 0x627   :  { %v4464_v27 = vmax.f32 %v4463_v19, %v3833_v11  ;;  %v3835_v48 = vpop.f32.mrb[42].mxu0 }
 0x628   :  { %v4428_v54 = vmax.f32 %v4427_v21, %v3835_v48  ;;  %v3837_v51 = vpop.f32.mrb[43].mxu0  ;;  %v6716_v48 = vld [vmem:[#allocation18 + $0x18] sm:$0xff]  }
 0x629   :  { %v4465_v57 = vmax.f32 %v4464_v27, %v3837_v51  ;;  %6301 = vmatpush3.bf16.msra.mxu0 %v6714_v20 }
 0x62a   :  { %v3518_v8 = vpop.f32.mrb[248].mxu1  ;;  %6302 = vmatprep.subr.bf16.mxu0 %v6715_v12 }
 0x62b   :  { %v4361_v56 = vmax.f32 %v4360_v3, %v3518_v8  ;;  %v3520_v14 = vpop.f32.mrb[249].mxu1  ;;  %v6717_v8 = vld [vmem:[#allocation18 + $0x60] sm:$0xff]  }
 0x62c   :  { %v4398_v60 = vmax.f32 %v4397_v36, %v3520_v14  ;;  %v3522_v35 = vpop.f32.mrb[250].mxu1 }
 0x62d   :  { %v4362_v5 = vmax.f32 %v4361_v56, %v3522_v35  ;;  %v3524_v30 = vpop.f32.mrb[251].mxu1  ;;  %v3841_v59 = vpop.f32.mrb[44].mxu0  ;;  %6303 = vmatpush3.bf16.msra.mxu0 %v6716_v48  ;;  %v6718_v35 = vld [vmem:[#allocation18 + $0x20] sm:$0xff]  }
 0x62e   :  { %v4399_v7 = vmax.f32 %v4398_v60, %v3524_v30  ;;  %v4429_v34 = vmax.f32 %v4428_v54, %v3841_v59  ;;  %v3843_v13 = vpop.f32.mrb[45].mxu0  ;;  %6304 = vmatprep.subr.bf16.mxu0 %v6717_v8  ;;  %v6719_v30 = vld [vmem:[#allocation18 + $0x68] sm:$0xff]  }
 0x62f   :  { %v4466_v43 = vmax.f32 %v4465_v57, %v3843_v13  ;;  %v3845_v47 = vpop.f32.mrb[46].mxu0 }
 0x630   :  { %v4430_v41 = vmax.f32 %v4429_v34, %v3845_v47  ;;  %v3847_v55 = vpop.f32.mrb[47].mxu0  ;;  %v6720_v47 = vld [vmem:[#allocation18 + $0x28] sm:$0xff]  }
 0x631   :  { %v4467_v52 = vmax.f32 %v4466_v43, %v3847_v55  ;;  %6305 = vmatpush3.bf16.msra.mxu0 %v6718_v35 }
 0x632   :  { %v3528_v25 = vpop.f32.mrb[252].mxu1  ;;  %6306 = vmatprep.subr.bf16.mxu0 %v6719_v30 }
 0x633   :  { %v4363_v18 = vmax.f32 %v4362_v5, %v3528_v25  ;;  %v3530_v40 = vpop.f32.mrb[253].mxu1 }
 0x634   :  { %v4400_v1 = vmax.f32 %v4399_v7, %v3530_v40  ;;  %v3532_v23 = vpop.f32.mrb[254].mxu1 }
 0x635   :  { %v4364_v0 = vmax.f32 %v4363_v18, %v3532_v23  ;;  %v3534_v50 = vpop.f32.mrb[255].mxu1  ;;  %v3851_v6 = vpop.f32.mrb[48].mxu0  ;;  %6307 = vmatpush3.bf16.msra.mxu0 %v6720_v47  ;;  %v6661_v47 = vld [vmem:[#allocation15 + $0x300] ss:$8 sps:$4 sm:$0xff]  }
 0x636   :  { %v4401_v46 = vmax.f32 %v4400_v1, %v3534_v50  ;;  %v4431_v62 = vmax.f32 %v4430_v41, %v3851_v6  ;;  %v3853_v58 = vpop.f32.mrb[49].mxu0 }
 0x637   :  { %v4365_v63 = vrot.slane %v4364_v0, 4  ;;  %v4468_v2 = vmax.f32 %v4467_v52, %v3853_v58  ;;  %v3855_v61 = vpop.f32.mrb[50].mxu0 }
 0x638   :  { %v4402_v53 = vrot.slane %v4401_v46, 4  ;;  %v4432_v42 = vmax.f32 %v4431_v62, %v3855_v61  ;;  %v3857_v29 = vpop.f32.mrb[51].mxu0 }
 0x639   :  { %v4366_v31 = vmax.f32 %v4364_v0, %v4365_v63  ;;  %v4469_v16 = vmax.f32 %v4468_v2, %v3857_v29  ;;  %v4897_v2 = vsub.s32 4, %v8644_v15  ;;  %v4909_v29 = vsub.s32 7, %v8644_v15 }
 0x63a   :  { %v4403_v19 = vmax.f32 %v4401_v46, %v4402_v53  ;;  %v4901_v53 = vsub.s32 5, %v8644_v15 }
 0x63b   :  { %v4367_v33 = vrot.slane %v4366_v31, 2 }
 0x63c   :  { %v4404_v39 = vrot.slane %v4403_v19, 2 }
 0x63d   :  { %v4368_v45 = vmax.f32 %v4366_v31, %v4367_v33  ;;  %v3861_v3 = vpop.f32.mrb[52].mxu0  ;;  %v6733_v33 = vld [vmem:[#allocation14] sm:$0xff] }
 0x63e   :  { %v4405_v32 = vmax.f32 %v4403_v19, %v4404_v39  ;;  %v4433_v38 = vmax.f32 %v4432_v42, %v3861_v3  ;;  %v3863_v36 = vpop.f32.mrb[53].mxu0  ;;  %v4905_v42 = vsub.s32 6, %v8644_v15  ;;  %v4898_v20 = vrot.slane %v6733_v33, %v4897_v2  ;;  %v6688_v2 = vld [vmem:[#allocation15 + $0x390] ss:$8 sps:$4 sm:$0xff]  }
 0x63f   :  { %v4369_v21 = vrot.slane %v4368_v45, 1  ;;  %v4470_v11 = vmax.f32 %v4469_v16, %v3863_v36  ;;  %v3865_v27 = vpop.f32.mrb[54].mxu0  ;;  %v4902_v12 = vrot.slane %v6733_v33, %v4901_v53  ;;  %v4910_v3 = vrot.slane %v6733_v33, %v4909_v29  ;;  %v6696_v53 = vld [vmem:[#allocation15 + $0x3b4] ss:$8 sps:$4 sm:$0xff]   ;;  %v6699_v29 = vld [vmem:[#allocation15 + $0x3c4] ss:$8 sps:$4 sm:$0xff]  }
 0x640   :  { %v4406_v54 = vrot.slane %v4405_v32, 1  ;;  %v4434_v51 = vmax.f32 %v4433_v38, %v3865_v27  ;;  %v3867_v57 = vpop.f32.mrb[55].mxu0 }
 0x641   :  { %v4370_v56 = vmax.f32 %v4368_v45, %v4369_v21  ;;  %v4471_v14 = vmax.f32 %v4470_v11, %v3867_v57  ;;  %v4906_v45 = vrot.slane %v6733_v33, %v4905_v42  ;;  %v4928_v21 = vcombine.low %v4898_v20, %v4902_v12  ;;  %v6694_v42 = vld [vmem:[#allocation15 + $0x3b0] ss:$8 sps:$4 sm:$0xff]   ;;  %v6703_v33 = vld [vmem:[#allocation15 + $0x3e0] ss:$8 sps:$4 sm:$0xff]   ;;  %v6708_v20 = vld [vmem:[#allocation15 + $0x3f4] ss:$8 sps:$4 sm:$0xff]  }
 0x642   :  { %v4407_v60 = vmax.f32 %v4405_v32, %v4406_v54 }
 0x643   :  { %v4929_v11 = vcombine.low %v4906_v45, %v4910_v3  ;;  %v6721_v45 = vld [vmem:[#allocation18 + $0x70] sm:$0xff]  }
 0x644   :  { %v4553_v5 = vcombine.low %v4370_v56, %v4407_v60  ;;  %v6722_v3 = vld [vmem:[#allocation18 + $0x30] sm:$0xff]   ;;  %6308 = vmatprep.subr.bf16.mxu0 %v6721_v45 }
 0x645   :  { %v3871_v59 = vpop.f32.mrb[56].mxu0  ;;  %v4943_v57 = vrot.slane %v4929_v11, %v8391_v37  ;;  %6309 = vmatpush3.bf16.msra.mxu0 %v6722_v3 }
 0x646   :  { %v4435_v7 = vmax.f32 %v4434_v51, %v3871_v59  ;;  %v3873_v34 = vpop.f32.mrb[57].mxu0  ;;  %v4561_v27 = vrot.slane %v4553_v5, %v8391_v37  ;;  %v4936_v51 = vrot.slane %v4928_v21, %v8391_v37 }
 0x647   :  { %v4472_v13 = vmax.f32 %v4471_v14, %v3873_v34  ;;  %v3875_v43 = vpop.f32.mrb[58].mxu0 }
 0x648   :  { %v4436_v41 = vmax.f32 %v4435_v7, %v3875_v43  ;;  %v3877_v55 = vpop.f32.mrb[59].mxu0  ;;  %v4944_v14 = vcombine.low %v4936_v51, %v4943_v57 }
 0x649   :  { %v4473_v52 = vmax.f32 %v4472_v13, %v3877_v55  ;;  %v6664_v55 = vld [vmem:[#allocation15 + $0x310] ss:$8 sps:$4 sm:$0xff]  }
 0x64d   :  { %v3881_v25 = vpop.f32.mrb[60].mxu0 }
 0x64e   :  { %v4437_v18 = vmax.f32 %v4436_v41, %v3881_v25  ;;  %v3883_v40 = vpop.f32.mrb[61].mxu0  ;;  %v6667_v25 = vld [vmem:[#allocation15 + $0x320] ss:$8 sps:$4 sm:$0xff]  }
 0x64f   :  { %v4474_v1 = vmax.f32 %v4473_v52, %v3883_v40  ;;  %v3885_v23 = vpop.f32.mrb[62].mxu0  ;;  %v6669_v52 = vld [vmem:[#allocation15 + $0x324] ss:$8 sps:$4 sm:$0xff]  }
 0x650   :  { %v4438_v26 = vmax.f32 %v4437_v18, %v3885_v23  ;;  %v3887_v44 = vpop.f32.mrb[63].mxu0  ;;  %v6670_v18 = vld [vmem:[#allocation15 + $0x330] ss:$8 sps:$4 sm:$0xff]   ;;  %v6675_v40 = vld [vmem:[#allocation15 + $0x344] ss:$8 sps:$4 sm:$0xff]  }
 0x651   :  { %v4475_v28 = vmax.f32 %v4474_v1, %v3887_v44  ;;  %v6673_v1 = vld [vmem:[#allocation15 + $0x340] ss:$8 sps:$4 sm:$0xff]   ;;  %v6678_v23 = vld [vmem:[#allocation15 + $0x354] ss:$8 sps:$4 sm:$0xff]   ;;  %v6681_v44 = vld [vmem:[#allocation15 + $0x364] ss:$8 sps:$4 sm:$0xff]  }
 0x652   :  { %v4439_v0 = vrot.slane %v4438_v26, 4 }
 0x653   :  { %v4476_v50 = vrot.slane %v4475_v28, 4 }
 0x654   :  { %v4440_v6 = vmax.f32 %v4438_v26, %v4439_v0  ;;  %v6676_v26 = vld [vmem:[#allocation15 + $0x350] ss:$8 sps:$4 sm:$0xff]   ;;  %v6684_v0 = vld [vmem:[#allocation15 + $0x374] ss:$8 sps:$4 sm:$0xff]  }
 0x655   :  { %v4477_v46 = vmax.f32 %v4475_v28, %v4476_v50  ;;  %v8544_v62 = vpop.f32.mrb[64].mxu0  ;;  %v6679_v28 = vld [vmem:[#allocation15 + $0x360] ss:$8 sps:$4 sm:$0xff]   ;;  %v6682_v50 = vld [vmem:[#allocation15 + $0x370] ss:$8 sps:$4 sm:$0xff]  }
 0x656   :  { %v4441_v58 = vrot.slane %v4440_v6, 2  ;;  %v8546_v63 = vpop.f32.mrb[65].mxu0 }
 0x657   :  { %v4478_v61 = vrot.slane %v4477_v46, 2  ;;  %v5690_v24 = vpop.f32.mrb[66].mxu0 }
 0x658   :  { %v4442_v10 = vmax.f32 %v4440_v6, %v4441_v58  ;;  %v5691_v31 = vpop.f32.mrb[67].mxu0  ;;  %v6687_v6 = vld [vmem:[#allocation15 + $0x384] ss:$8 sps:$4 sm:$0xff]   ;;  %v6690_v58 = vld [vmem:[#allocation15 + $0x394] ss:$8 sps:$4 sm:$0xff]  }
 0x659   :  { %v4479_v16 = vmax.f32 %v4477_v46, %v4478_v61  ;;  %v6685_v46 = vld [vmem:[#allocation15 + $0x380] ss:$8 sps:$4 sm:$0xff]   ;;  %v6693_v61 = vld [vmem:[#allocation15 + $0x3a4] ss:$8 sps:$4 sm:$0xff]   ;;  %v6702_v31 = vld [vmem:[#allocation15 + $0x3d4] ss:$8 sps:$4 sm:$0xff]  }
 0x65a   :  { %v4443_v19 = vrot.slane %v4442_v10, 1  ;;  %v6691_v24 = vld [vmem:[#allocation15 + $0x3a0] ss:$8 sps:$4 sm:$0xff]  }
 0x65b   :  { %v4480_v39 = vrot.slane %v4479_v16, 1 }
 0x65c   :  { %v4444_v32 = vmax.f32 %v4442_v10, %v4443_v19  ;;  %v6697_v10 = vld [vmem:[#allocation15 + $0x3c0] ss:$8 sps:$4 sm:$0xff]   ;;  %v6705_v19 = vld [vmem:[#allocation15 + $0x3e4] ss:$8 sps:$4 sm:$0xff]  }
 0x65d   :  { %v4481_v38 = vmax.f32 %v4479_v16, %v4480_v39  ;;  %v6700_v16 = vld [vmem:[#allocation15 + $0x3d0] ss:$8 sps:$4 sm:$0xff]  }
 0x65e   :  { %v6706_v39 = vld [vmem:[#allocation15 + $0x3f0] ss:$8 sps:$4 sm:$0xff]  }
 0x65f   :  { %v4554_v36 = vcombine.low %v4444_v32, %v4481_v38  ;;  %v6723_v32 = vld [vmem:[#allocation18 + $0x78] sm:$0xff]  }
 0x660   :  { %v6724_v38 = vld [vmem:[#allocation18 + $0x38] sm:$0xff]   ;;  %6310 = vmatprep.subr.bf16.mxu0 %v6723_v32 }
 0x661   :  { %v4568_v48 = vrot.slane %v4554_v36, %v8391_v37  ;;  %6311 = vmatpush3.bf16.msra.mxu0 %v6724_v38  ;;  %v4844_v36 = vld [vmem:[#allocation17] sm:$0x3] }
 0x662   :  { %v5005_v21 = vrot.slane %v4844_v36, %v8645_v49  ;;  %v5009_v11 = vrot.slane %v4844_v36, %v8646_v4 }
 0x663   :  { %v4569_v54 = vcombine.low %v4561_v27, %v4568_v48 }
 0x664   :  { %v5687_v27 = vadd.f32 %v8544_v62, %v5005_v21  ;;  %v5689_v48 = vadd.f32 %v8546_v63, %v5009_v11 }
 0x665   :  { %v4585_v8 = vrot.slane %v4569_v54, 7 }
 0x667   :  { %v4586_v56 = vsel %vm4575_vm1, %v4585_v8, %v4535_v17  ;;  %v6666_v17 = vld [vmem:[#allocation15 + $0x314] ss:$8 sps:$4 sm:$0xff]  }
 0x668   :  { %v4587_v60 = vsel %vm4577_vm2, %v4585_v8, %v4586_v56 }
 0x669   :  { %v4588_v35 = vsel %vm4579_vm3, %v4585_v8, %v4587_v60 }
 0x66a   :  { %v4589_v5 = vsel %vm4581_vm4, %v4585_v8, %v4588_v35 }
 0x66b   :  { %v4948_v30 = vadd.f32 %v4944_v14, %v4589_v5 }
 0x66d   :  { %v4975_v59 = vrot.slane %v4948_v30, %v8391_v37  ;;  %v4968_v7 = vcombine.high %v4948_v30, %v4948_v30 }
 0x66f   :  { %v4983_v34 = vcombine.high %v4975_v59, %v4975_v59  ;;  %v8565_v13 = vrot.slane %v4968_v7, %v8391_v37  ;;  %v4997_v22 = vpack.c.bf16 %v4975_v59, %v4975_v59  ;;  %v6672_v37 = vld [vmem:[#allocation15 + $0x334] ss:$8 sps:$4 sm:$0xff]   ;;  %v7033_v59 = vmov 1966171168  }
 0x670   :  { %v5964_v49 = vunpack.c.l.s4 %v7033_v59 }
 0x671   :  { %v4998_v43 = vpack.c.bf16 %v4983_v34, %v4983_v34  ;;  %v4984_v9 = vcombine.high %v8565_v13, %v8565_v13  ;;  %v4999_v12 = vpack.c.bf16 %v8565_v13, %v8565_v13  ;;  %v6241_v34 = vld [vmem:[#allocation20] ss:$0 sm:$0xff] }
 0x672   :  { %v5965_v7 = vunpack.c.0.s8 %v5964_v49 }
 0x673   :  { %5766 = vmatprep.mubr.bf16.mxu1 %v4998_v43  ;;  %v5000_v41 = vpack.c.bf16 %v4984_v9, %v4984_v9 }
 0x674   :  { %5767 = vmatmul.mubr.bf16.vlgmr.msra.gmra.mrb[0].mxu1 %v4997_v22  ;;  %v5968_v63 = vsub.s32 %v5965_v7, %v8644_v15 }
 0x675   :  { %5776 = vmatpush1.bf16.msra.mxu1 %v6661_v47  ;;  %5807 = vmatprep.mubr.bf16.mxu1 %v5000_v41 }
 0x676   :  { %5777 = vmatprep.subr.bf16.mxu1 %v6666_v17 }
 0x679   :  { %5778 = vmatpush1.bf16.msra.mxu1 %v6664_v55 }
 0x67a   :  { %5779 = vmatprep.subr.bf16.mxu1 %v6669_v52 }
 0x67d   :  { %5780 = vmatpush1.bf16.msra.mxu1 %v6667_v25 }
 0x67e   :  { %5781 = vmatprep.subr.bf16.mxu1 %v6672_v37 }
 0x681   :  { %5782 = vmatpush1.bf16.msra.mxu1 %v6670_v18 }
 0x682   :  { %5783 = vmatprep.subr.bf16.mxu1 %v6675_v40 }
 0x685   :  { %5784 = vmatpush1.bf16.msra.mxu1 %v6673_v1 }
 0x686   :  { %5785 = vmatprep.subr.bf16.mxu1 %v6678_v23 }
 0x689   :  { %5786 = vmatpush1.bf16.msra.mxu1 %v6676_v26 }
 0x68a   :  { %5787 = vmatprep.subr.bf16.mxu1 %v6681_v44 }
 0x68d   :  { %5788 = vmatpush1.bf16.msra.mxu1 %v6679_v28 }
 0x68e   :  { %5789 = vmatprep.subr.bf16.mxu1 %v6684_v0 }
 0x691   :  { %5790 = vmatpush1.bf16.msra.mxu1 %v6682_v50 }
 0x692   :  { %5791 = vmatprep.subr.bf16.mxu1 %v6687_v6 }
 0x695   :  { %5792 = vmatpush1.bf16.msra.mxu1 %v6685_v46 }
 0x696   :  { %5793 = vmatprep.subr.bf16.mxu1 %v6690_v58 }
 0x699   :  { %5794 = vmatpush1.bf16.msra.mxu1 %v6688_v2 }
 0x69a   :  { %5795 = vmatprep.subr.bf16.mxu1 %v6693_v61 }
 0x69d   :  { %5796 = vmatpush1.bf16.msra.mxu1 %v6691_v24 }
 0x69e   :  { %5797 = vmatprep.subr.bf16.mxu1 %v6696_v53 }
 0x6a1   :  { %5798 = vmatpush1.bf16.msra.mxu1 %v6694_v42 }
 0x6a2   :  { %5799 = vmatprep.subr.bf16.mxu1 %v6699_v29 }
 0x6a5   :  { %5800 = vmatpush1.bf16.msra.mxu1 %v6697_v10 }
 0x6a6   :  { %5801 = vmatprep.subr.bf16.mxu1 %v6702_v31 }
 0x6a9   :  { %5802 = vmatpush1.bf16.msra.mxu1 %v6700_v16 }
 0x6aa   :  { %5803 = vmatprep.subr.bf16.mxu1 %v6705_v19 }
 0x6ad   :  { %5804 = vmatpush1.bf16.msra.mxu1 %v6703_v33 }
 0x6ae   :  { %5805 = vmatprep.subr.bf16.mxu1 %v6708_v20 }
 0x6b1   :  { %5806 = vmatpush1.bf16.msra.mxu1 %v6706_v39 }
 0x6b4   :  { %5808 = vmatmul.mubr.bf16.vlgmr.msra.gmra.mrb[0].mxu1 %v4999_v12 }
 0x787   :  { %v5809_v54 = vpop.f32.mrb[0].mxu1 }
 0x788   :  { %v6391_v51 = vadd.f32 %v5809_v54, %v5687_v27  ;;  %v5811_v57 = vpop.f32.mrb[1].mxu1 }
 0x789   :  { %v6393_v8 = vadd.f32 %v5811_v57, %v5689_v48  ;;  %v5813_v56 = vpop.f32.mrb[2].mxu1 }
 0x78a   :  { %v5816_v14 = vmax.f32 %v6391_v51, 0.0  ;;  %v5814_v60 = vpop.f32.mrb[3].mxu1 }
 0x78b   :  { %v5817_v35 = vmax.f32 %v6393_v8, 0.0 }
 0x78c   :  { %v5818_v30 = vpack.c.bf16 %v5816_v14, %v5816_v14 }
 0x78d   :  { %v5819_v5 = vpack.c.bf16 %v5817_v35, %v5817_v35 }
 0x78f   :  { %5954 = vmatprep.mubr.bf16.mxu0 %v5819_v5 }
 0x790   :  { %5955 = vmatmul.mubr.bf16.vlgmr.msra.gmra.mrb[68].mxu0 %v5818_v30 }
 0x863   :  { %v6312_v4 = vpop.f32.mrb[68].mxu0 }
 0x864   :  { %v6313_v62 = vpop.f32.mrb[69].mxu0 }
 0x865   :  { %v6314_v13 = vadd.f32 %v6313_v62, %v6312_v4  ;;  %v6315_v43 = vpop.f32.mrb[70].mxu0 }
 0x866   :  { %v6316_v47 = vpop.f32.mrb[71].mxu0 }
 0x867   :  { %v5957_v9 = vadd.f32 %v6314_v13, %v6241_v34 }
 0x869   :  { %v5969_v22 = vrot.slane %v5957_v9, %v5968_v63 }
 0x86b   :  { %v5970_v17 = vcombine.high %v5969_v22, %v5969_v22  ;;  %6258 = vst.sshfl [vmem:[#allocation21] sm:$0x1 pattern:$0x73625140] %v5969_v22 }
 0x86d   :  { %6259 = vst.sshfl [vmem:[#allocation21 + $0x1] sm:$0x1 pattern:$0x73625140] %v5970_v17 }
 0x86e   :  { %6987 = shalt.err (!%p6984_p8)
}
 0x86f   :  { %s6988_s0 = scalar_lea.hbm %s8599_s11, 32 }
 0x870   :  { %p6989_p9 = scmp.ne.s32.totalorder %s8599_s11, %s6988_s0  ;;  %p6992_p10 = scmp.lt.u32.totalorder %s6988_s0, %s8599_s11 }
 0x872   :  { %p6994_p11 = pnand %p6992_p10, %p6989_p9 }
 0x874   :  { %6997 = shalt.err (!%p6994_p11)
}
 0x875   :  { %s7035_s5 = smov 16   ;;  %s7036_s13 = smov 1  }
 0x876   :  { %6000 = dma.vmem_to_hbm [thread:$0]  %s5995_s7, 32, %s8599_s11, [#allocation5], %s7035_s5, %s7035_s5, %s7036_s13  }
 0x877   :  { %7010 = dma.done.wait [#allocation5], 32  }
 0x878   :  { %7011 = vsyncadd [#allocation5], 4294967264 }
 0x879   :  { %6004 = vsyncpa [#allocation4], 1 }
 0x87a   :  { %6005 = vsyncpa [#allocation7], 1 }
 0x87b   :  { %6006 = vsyncpa [#allocation10], 1 }
 0x87c   :  { %6007 = vsyncpa [#allocation13], 1 }
 0x87d   :  { %6008 = vsyncpa [#allocation16], 1 }
 0x87e   :  { %6009 = vsyncpa [#allocation19], 1 }
 0x87f   :  { %6010 = vsyncpa [#allocation5], 1 }

</bundles_post_ra>
